<compile_context>
chip_gen: v7x
topology: tpu7x:2x2x1
jax: 0.10.0
libtpu: 0.0.40
codegen_flags: <defaults>
</compile_context>

<pallas_src>
import jax
import jax.numpy as jnp
from jax import lax
from jax.experimental import pallas as pl
from jax.experimental.pallas import tpu as pltpu

N_TRAITS = 10
H1 = 256
H2 = 2048
LN_EPS = 1e-5


def _round_up(x, m):
    return (x + m - 1) // m * m


def _gelu_exact(x):
    # PyTorch nn.GELU() default = exact erf formulation.
    return 0.5 * x * (1.0 + lax.erf(x * 0.7071067811865476))


def _layernorm(x, gamma, beta):
    mean = jnp.mean(x, axis=-1, keepdims=True)
    centered = x - mean
    var = jnp.mean(centered * centered, axis=-1, keepdims=True)  # biased, as torch
    return centered * lax.rsqrt(var + LN_EPS) * gamma + beta


def hyperlora_kernel(x_ref,
                     w1_ref, b1_ref, g1_ref, be1_ref,
                     w2_ref, b2_ref, g2_ref, be2_ref,
                     w3_ref, b3_ref,
                     o_ref, h_ref):
    """Grid = (out_dim tiles j  [outer, arbitrary], batch tiles i [inner]).

    Layers 1+2 depend only on the batch tile, so they run once per batch tile
    (first out_dim tile, j == 0) into the resident bf16 scratch h_ref[i].
    Layer 3 streams lane-dense, pre-tiled w3 slabs; since j is the OUTER grid
    axis, each w3 slab is DMA'd once and reused across every batch tile.
    NOTE: the j == 0 gate means the out_dim axis must stay "arbitrary"; do
    not mark it "parallel" without removing the gate (h would be read
    uninitialized on the second core).
    """
    i = pl.program_id(1)  # batch tile (inner axis)

    @pl.when(pl.program_id(0) == 0)
    def _():
        x = x_ref[...]
        # Layer 1: Linear(10 -> 256) + GELU + LayerNorm(256)  (tiny, f32)
        h = jnp.dot(x, w1_ref[...], preferred_element_type=jnp.float32) + b1_ref[...]
        h = _layernorm(_gelu_exact(h), g1_ref[...], be1_ref[...])
        # Layer 2: Linear(256 -> 2048) + GELU + LayerNorm(2048)  (bf16 MXU, f32 acc)
        h = jnp.dot(h.astype(jnp.bfloat16), w2_ref[...],
                    preferred_element_type=jnp.float32) + b2_ref[...]
        h = _layernorm(_gelu_exact(h), g2_ref[...], be2_ref[...])
        # Store once in bf16: halves the scratch and avoids a per-out-tile cast.
        h_ref[i] = h.astype(jnp.bfloat16)

    # Layer 3: Linear(2048 -> out_dim), one contiguous pre-tiled w3 slab / step.
    o_ref[...] = (jnp.dot(h_ref[i], w3_ref[...],
                          preferred_element_type=jnp.float32)
                  + b3_ref[...]).astype(o_ref.dtype)


def prepare_params(params, *, block_n=None):
    """ONE-TIME weight prep — call at init / after each optimizer step, never
    per forward call.  Casts the two big matmul weights to bf16, pads w3/b3 to
    a multiple of block_n, and pre-tiles w3 into (n_tiles, H2, block_n) so the
    kernel's per-step w3 DMA is a single contiguous slab."""
    out_dim = params["w3"].shape[1]
    if block_n is None:
        # 1024 is lane-dense, gives 4 MiB contiguous w3 tiles, and keeps the
        # double-buffered footprint small enough for v7x's 64 MiB VMEM.
        block_n = min(1024, _round_up(out_dim, 128))
    n_pad = _round_up(out_dim, block_n)

    w3 = params["w3"].astype(jnp.bfloat16)
    b3 = params["b3"].astype(jnp.float32)
    if n_pad != out_dim:
        w3 = jnp.pad(w3, ((0, 0), (0, n_pad - out_dim)))
        b3 = jnp.pad(b3, ((0, 0), (0, n_pad - out_dim)))
    n_tiles = n_pad // block_n
    # (H2, n_pad) -> (n_tiles, H2, block_n): w3_tiled[j] == w3[:, j*bn:(j+1)*bn]
    w3_tiled = w3.reshape(H2, n_tiles, block_n).transpose(1, 0, 2)

    prepped = {
        "w1": params["w1"], "b1": params["b1"],
        "g1": params["g1"], "be1": params["be1"],
        "w2": params["w2"].astype(jnp.bfloat16),
        "b2": params["b2"], "g2": params["g2"], "be2": params["be2"],
        "w3t": w3_tiled, "b3p": b3,
        # static metadata (Python ints)
        "out_dim": int(out_dim), "block_n": int(block_n),
    }
    return prepped


def hyperlora_forward(x, prepped, *, block_b=None):
    """x: (B, N_TRAITS) f32.  prepped: output of prepare_params."""
    B = x.shape[0]
    out_dim = prepped["out_dim"]
    block_n = prepped["block_n"]
    n_tiles = prepped["w3t"].shape[0]
    n_pad = n_tiles * block_n

    if block_b is None:
        block_b = min(256, _round_up(B, 8))     # MXU-height tiles when B is big
    b_pad = _round_up(B, block_b)
    num_b_tiles = b_pad // block_b
    # Zero-padded batch rows flow through LayerNorm with var=0 -> rsqrt(eps)
    # (~316): finite, harmless, and sliced off below.  Do NOT "fix" into NaN.
    xp = x if b_pad == B else jnp.pad(x, ((0, b_pad - B), (0, 0)))

    def const(shape):
        # Block index never changes -> Pallas skips re-DMA across grid steps.
        return pl.BlockSpec(shape, lambda j, i: (0,) * len(shape))

    grid_spec = pltpu.PrefetchScalarGridSpec(
        num_scalar_prefetch=0,
        # out_dim tiles OUTER (arbitrary: j==0 gate), batch tiles INNER:
        # each w3 slab is DMA'd exactly once, total w3 traffic = 1x bf16 bytes.
        grid=(n_tiles, num_b_tiles),
        in_specs=[
            pl.BlockSpec((block_b, N_TRAITS), lambda j, i: (i, 0)),      # x
            const((N_TRAITS, H1)), const((1, H1)), const((1, H1)), const((1, H1)),
            const((H1, H2)), const((1, H2)), const((1, H2)), const((1, H2)),
            pl.BlockSpec((None, H2, block_n), lambda j, i: (j, 0, 0)),   # w3 slab
            pl.BlockSpec((1, block_n), lambda j, i: (0, j)),             # b3
        ],
        out_specs=pl.BlockSpec((block_b, block_n), lambda j, i: (i, j)),
        # Resident layer-2 activations, bf16, one slot per batch tile.
        scratch_shapes=[pltpu.VMEM((num_b_tiles, block_b, H2), jnp.bfloat16)],
    )

    out = pl.pallas_call(
        hyperlora_kernel,
        out_shape=jax.ShapeDtypeStruct((b_pad, n_pad), jnp.float32),
        grid_spec=grid_spec,
        compiler_params=pltpu.CompilerParams(
            # out_dim axis MUST stay "arbitrary" (j==0 gate + resident h).
            # Batch tiles are independent; annotate parallel (no-op if Mosaic
            # only partitions leading parallel dims).
            dimension_semantics=("arbitrary", "parallel"),
            # ~14-22 MiB actually used at block_b=256 / block_n=1024; 40 MiB
            # gives temp headroom and stays inside every generation's VMEM
            # (v7x physical = 64 MiB, v5e/v6e = 128 MiB).
            vmem_limit_bytes=40 * 1024 * 1024,
        ),
    )(xp,
      prepped["w1"], prepped["b1"], prepped["g1"], prepped["be1"],
      prepped["w2"], prepped["b2"], prepped["g2"], prepped["be2"],
      prepped["w3t"], prepped["b3p"])

    return out[:B, :out_dim]


def hyperlora_reference(x, params):
    h = x @ params["w1"] + params["b1"]
    h = jax.nn.gelu(h, approximate=False)
    h = _layernorm(h, params["g1"], params["be1"])
    h = h @ params["w2"] + params["b2"]
    h = jax.nn.gelu(h, approximate=False)
    h = _layernorm(h, params["g2"], params["be2"])
    return h @ params["w3"] + params["b3"]


def init_params(key, out_dim):
    ks = jax.random.split(key, 6)

    def linear(kw, kb, fan_in, fan_out):
        bound = 1.0 / jnp.sqrt(fan_in)
        w = jax.random.uniform(kw, (fan_in, fan_out), jnp.float32, -bound, bound)
        b = jax.random.uniform(kb, (1, fan_out), jnp.float32, -bound, bound)
        return w, b

    w1, b1 = linear(ks[0], ks[1], N_TRAITS, H1)
    w2, b2 = linear(ks[2], ks[3], H1, H2)
    w3, b3 = linear(ks[4], ks[5], H2, out_dim)
    return {
        "w1": w1, "b1": b1,
        "g1": jnp.ones((1, H1), jnp.float32), "be1": jnp.zeros((1, H1), jnp.float32),
        "w2": w2, "b2": b2,
        "g2": jnp.ones((1, H2), jnp.float32), "be2": jnp.zeros((1, H2), jnp.float32),
        "w3": w3, "b3": b3,
    }


if __name__ == "__main__":
    key = jax.random.PRNGKey(0)
    k_param, k_x = jax.random.split(key)

    out_dim = 512      # small synthetic out_dim for the LoRA-parameter head
    batch = 8          # trait vectors: (batch, 10)

    params = init_params(k_param, out_dim)
    x = jax.random.normal(k_x, (batch, N_TRAITS), jnp.float32)

    # One-time weight prep (cast / pad / pre-tile) — outside the hot path.
    prepped = prepare_params(params)
    prepped = jax.tree_util.tree_map(
        lambda v: jax.block_until_ready(v) if isinstance(v, jax.Array) else v, prepped)

    out = hyperlora_forward(x, prepped)
    out = jax.block_until_ready(out)

    ref = hyperlora_reference(x, params)
    assert out.shape == (batch, out_dim)
    # bf16 w2/w3 (f32 accumulation) vs pure-f32 reference.
    assert jnp.allclose(out, ref, rtol=5e-2, atol=5e-2), "mismatch vs reference"

    print("KERNEL_OK")
</pallas_src>

<mosaic_0001>
module attributes {stable_mosaic.version = 11 : i64} {
  func.func @hyperlora_kernel(%arg0: i32, %arg1: i32, %arg2: memref<8x10xf32, #tpu.memory_space<vmem>>, %arg3: memref<10x256xf32, #tpu.memory_space<vmem>>, %arg4: memref<1x256xf32, #tpu.memory_space<vmem>>, %arg5: memref<1x256xf32, #tpu.memory_space<vmem>>, %arg6: memref<1x256xf32, #tpu.memory_space<vmem>>, %arg7: memref<256x2048xbf16, #tpu.memory_space<vmem>>, %arg8: memref<1x2048xf32, #tpu.memory_space<vmem>>, %arg9: memref<1x2048xf32, #tpu.memory_space<vmem>>, %arg10: memref<1x2048xf32, #tpu.memory_space<vmem>>, %arg11: memref<1x2048x512xbf16, #tpu.memory_space<vmem>>, %arg12: memref<1x512xf32, #tpu.memory_space<vmem>>, %arg13: memref<8x512xf32, #tpu.memory_space<vmem>>, %arg14: memref<1x8x2048xbf16, #tpu.memory_space<vmem>>) attributes {dimension_semantics = [#tpu.dimension_semantics<arbitrary>, #tpu.dimension_semantics<parallel>], iteration_bounds = array<i64: 1, 1>, scalar_prefetch = 0 : i64, scratch_operands = 1 : i64, tpu.core_type = #tpu.core_type<tc>, window_params = [{transform_indices = @transform_0, window_bounds = array<i64: 8, 10>}, {pipeline_mode = #tpu.pipeline_mode<synchronous>, transform_indices = @transform_1, window_bounds = array<i64: 10, 256>}, {pipeline_mode = #tpu.pipeline_mode<synchronous>, transform_indices = @transform_2, window_bounds = array<i64: 1, 256>}, {pipeline_mode = #tpu.pipeline_mode<synchronous>, transform_indices = @transform_3, window_bounds = array<i64: 1, 256>}, {pipeline_mode = #tpu.pipeline_mode<synchronous>, transform_indices = @transform_4, window_bounds = array<i64: 1, 256>}, {pipeline_mode = #tpu.pipeline_mode<synchronous>, transform_indices = @transform_5, window_bounds = array<i64: 256, 2048>}, {pipeline_mode = #tpu.pipeline_mode<synchronous>, transform_indices = @transform_6, window_bounds = array<i64: 1, 2048>}, {pipeline_mode = #tpu.pipeline_mode<synchronous>, transform_indices = @transform_7, window_bounds = array<i64: 1, 2048>}, {pipeline_mode = #tpu.pipeline_mode<synchronous>, transform_indices = @transform_8, window_bounds = array<i64: 1, 2048>}, {transform_indices = @transform_9, window_bounds = array<i64: 1, 2048, 512>}, {transform_indices = @transform_10, window_bounds = array<i64: 1, 512>}, {transform_indices = @transform_11, window_bounds = array<i64: 8, 512>}]} {
    %c0_i32 = arith.constant 0 : i32
    %0 = arith.cmpi eq, %arg0, %c0_i32 : i32
    %1 = arith.extui %0 : i1 to i32
    %c0_i32_0 = arith.constant 0 : i32
    %2 = arith.cmpi ne, %1, %c0_i32_0 : i32
    scf.if %2 {
      %c0_9 = arith.constant 0 : index
      %c0_10 = arith.constant 0 : index
      %13 = vector.load %arg2[%c0_9, %c0_10] : memref<8x10xf32, #tpu.memory_space<vmem>>, vector<8x10xf32>
      %c0_11 = arith.constant 0 : index
      %c0_12 = arith.constant 0 : index
      %14 = vector.load %arg3[%c0_11, %c0_12] : memref<10x256xf32, #tpu.memory_space<vmem>>, vector<10x256xf32>
      %cst_13 = arith.constant dense<0.000000e+00> : vector<8x256xf32>
      %15 = tpu.matmul %13, %14, %cst_13 {dimension_numbers = #tpu.dot_dimension_numbers<[1], [0], [0], [1], [0, 0, 1, 1], [], []>} : vector<8x10xf32>, vector<10x256xf32>, vector<8x256xf32> -> vector<8x256xf32>
      %c0_14 = arith.constant 0 : index
      %c0_15 = arith.constant 0 : index
      %16 = vector.load %arg4[%c0_14, %c0_15] : memref<1x256xf32, #tpu.memory_space<vmem>>, vector<1x256xf32>
      %17 = vector.broadcast %16 : vector<1x256xf32> to vector<8x256xf32>
      %18 = arith.addf %15, %17 : vector<8x256xf32>
      %cst_16 = arith.constant 5.000000e-01 : f32
      %19 = vector.broadcast %cst_16 : f32 to vector<8x256xf32>
      %20 = arith.mulf %19, %18 : vector<8x256xf32>
      %cst_17 = arith.constant 0.707106769 : f32
      %21 = vector.broadcast %cst_17 : f32 to vector<8x256xf32>
      %22 = arith.mulf %18, %21 : vector<8x256xf32>
      %23 = math.erf %22 : vector<8x256xf32>
      %cst_18 = arith.constant 1.000000e+00 : f32
      %24 = vector.broadcast %cst_18 : f32 to vector<8x256xf32>
      %25 = arith.addf %24, %23 : vector<8x256xf32>
      %26 = arith.mulf %20, %25 : vector<8x256xf32>
      %c0_19 = arith.constant 0 : index
      %c0_20 = arith.constant 0 : index
      %27 = vector.load %arg5[%c0_19, %c0_20] : memref<1x256xf32, #tpu.memory_space<vmem>>, vector<1x256xf32>
      %c0_21 = arith.constant 0 : index
      %c0_22 = arith.constant 0 : index
      %28 = vector.load %arg6[%c0_21, %c0_22] : memref<1x256xf32, #tpu.memory_space<vmem>>, vector<1x256xf32>
      %cst_23 = arith.constant dense<0.000000e+00> : vector<8xf32>
      %29 = vector.multi_reduction <add>, %26, %cst_23 [1] : vector<8x256xf32> to vector<8xf32>
      %30 = vector.shape_cast %29 : vector<8xf32> to vector<8x1xf32>
      %cst_24 = arith.constant 2.560000e+02 : f32
      %31 = vector.broadcast %cst_24 : f32 to vector<8x1xf32>
      %32 = arith.divf %30, %31 : vector<8x1xf32>
      %33 = vector.broadcast %32 : vector<8x1xf32> to vector<8x256xf32>
      %34 = arith.subf %26, %33 : vector<8x256xf32>
      %35 = arith.mulf %34, %34 : vector<8x256xf32>
      %cst_25 = arith.constant dense<0.000000e+00> : vector<8xf32>
      %36 = vector.multi_reduction <add>, %35, %cst_25 [1] : vector<8x256xf32> to vector<8xf32>
      %37 = vector.shape_cast %36 : vector<8xf32> to vector<8x1xf32>
      %cst_26 = arith.constant 2.560000e+02 : f32
      %38 = vector.broadcast %cst_26 : f32 to vector<8x1xf32>
      %39 = arith.divf %37, %38 : vector<8x1xf32>
      %cst_27 = arith.constant 9.99999974E-6 : f32
      %40 = vector.broadcast %cst_27 : f32 to vector<8x1xf32>
      %41 = arith.addf %39, %40 : vector<8x1xf32>
      %42 = math.rsqrt %41 : vector<8x1xf32>
      %43 = vector.broadcast %42 : vector<8x1xf32> to vector<8x256xf32>
      %44 = arith.mulf %34, %43 : vector<8x256xf32>
      %45 = vector.broadcast %27 : vector<1x256xf32> to vector<8x256xf32>
      %46 = arith.mulf %44, %45 : vector<8x256xf32>
      %47 = vector.broadcast %28 : vector<1x256xf32> to vector<8x256xf32>
      %48 = arith.addf %46, %47 : vector<8x256xf32>
      %49 = arith.truncf %48 : vector<8x256xf32> to vector<8x256xbf16>
      %c0_28 = arith.constant 0 : index
      %c0_29 = arith.constant 0 : index
      %50 = vector.load %arg7[%c0_28, %c0_29] : memref<256x2048xbf16, #tpu.memory_space<vmem>>, vector<256x2048xbf16>
      %cst_30 = arith.constant dense<0.000000e+00> : vector<8x2048xf32>
      %51 = tpu.matmul %49, %50, %cst_30 {dimension_numbers = #tpu.dot_dimension_numbers<[1], [0], [0], [1], [0, 0, 1, 1], [], []>} : vector<8x256xbf16>, vector<256x2048xbf16>, vector<8x2048xf32> -> vector<8x2048xf32>
      %c0_31 = arith.constant 0 : index
      %c0_32 = arith.constant 0 : index
      %52 = vector.load %arg8[%c0_31, %c0_32] : memref<1x2048xf32, #tpu.memory_space<vmem>>, vector<1x2048xf32>
      %53 = vector.broadcast %52 : vector<1x2048xf32> to vector<8x2048xf32>
      %54 = arith.addf %51, %53 : vector<8x2048xf32>
      %cst_33 = arith.constant 5.000000e-01 : f32
      %55 = vector.broadcast %cst_33 : f32 to vector<8x2048xf32>
      %56 = arith.mulf %55, %54 : vector<8x2048xf32>
      %cst_34 = arith.constant 0.707106769 : f32
      %57 = vector.broadcast %cst_34 : f32 to vector<8x2048xf32>
      %58 = arith.mulf %54, %57 : vector<8x2048xf32>
      %59 = math.erf %58 : vector<8x2048xf32>
      %cst_35 = arith.constant 1.000000e+00 : f32
      %60 = vector.broadcast %cst_35 : f32 to vector<8x2048xf32>
      %61 = arith.addf %60, %59 : vector<8x2048xf32>
      %62 = arith.mulf %56, %61 : vector<8x2048xf32>
      %c0_36 = arith.constant 0 : index
      %c0_37 = arith.constant 0 : index
      %63 = vector.load %arg9[%c0_36, %c0_37] : memref<1x2048xf32, #tpu.memory_space<vmem>>, vector<1x2048xf32>
      %c0_38 = arith.constant 0 : index
      %c0_39 = arith.constant 0 : index
      %64 = vector.load %arg10[%c0_38, %c0_39] : memref<1x2048xf32, #tpu.memory_space<vmem>>, vector<1x2048xf32>
      %cst_40 = arith.constant dense<0.000000e+00> : vector<8xf32>
      %65 = vector.multi_reduction <add>, %62, %cst_40 [1] : vector<8x2048xf32> to vector<8xf32>
      %66 = vector.shape_cast %65 : vector<8xf32> to vector<8x1xf32>
      %cst_41 = arith.constant 2.048000e+03 : f32
      %67 = vector.broadcast %cst_41 : f32 to vector<8x1xf32>
      %68 = arith.divf %66, %67 : vector<8x1xf32>
      %69 = vector.broadcast %68 : vector<8x1xf32> to vector<8x2048xf32>
      %70 = arith.subf %62, %69 : vector<8x2048xf32>
      %71 = arith.mulf %70, %70 : vector<8x2048xf32>
      %cst_42 = arith.constant dense<0.000000e+00> : vector<8xf32>
      %72 = vector.multi_reduction <add>, %71, %cst_42 [1] : vector<8x2048xf32> to vector<8xf32>
      %73 = vector.shape_cast %72 : vector<8xf32> to vector<8x1xf32>
      %cst_43 = arith.constant 2.048000e+03 : f32
      %74 = vector.broadcast %cst_43 : f32 to vector<8x1xf32>
      %75 = arith.divf %73, %74 : vector<8x1xf32>
      %cst_44 = arith.constant 9.99999974E-6 : f32
      %76 = vector.broadcast %cst_44 : f32 to vector<8x1xf32>
      %77 = arith.addf %75, %76 : vector<8x1xf32>
      %78 = math.rsqrt %77 : vector<8x1xf32>
      %79 = vector.broadcast %78 : vector<8x1xf32> to vector<8x2048xf32>
      %80 = arith.mulf %70, %79 : vector<8x2048xf32>
      %81 = vector.broadcast %63 : vector<1x2048xf32> to vector<8x2048xf32>
      %82 = arith.mulf %80, %81 : vector<8x2048xf32>
      %83 = vector.broadcast %64 : vector<1x2048xf32> to vector<8x2048xf32>
      %84 = arith.addf %82, %83 : vector<8x2048xf32>
      %85 = arith.truncf %84 : vector<8x2048xf32> to vector<8x2048xbf16>
      %86 = arith.index_cast %arg1 : i32 to index
      %c0_45 = arith.constant 0 : index
      %c0_46 = arith.constant 0 : index
      %87 = vector.load %arg14[%86, %c0_45, %c0_46] : memref<1x8x2048xbf16, #tpu.memory_space<vmem>>, vector<1x8x2048xbf16>
      %88 = vector.shape_cast %87 : vector<1x8x2048xbf16> to vector<8x2048xbf16>
      %89 = vector.shape_cast %85 : vector<8x2048xbf16> to vector<1x8x2048xbf16>
      tpu.vector_store %arg14[%86, %c0_45, %c0_46], %89 {strides = array<i32>} : memref<1x8x2048xbf16, #tpu.memory_space<vmem>>, vector<1x8x2048xbf16>,
    } else {
    }
    %3 = arith.index_cast %arg1 : i32 to index
    %c0 = arith.constant 0 : index
    %c0_1 = arith.constant 0 : index
    %4 = vector.load %arg14[%3, %c0, %c0_1] : memref<1x8x2048xbf16, #tpu.memory_space<vmem>>, vector<1x8x2048xbf16>
    %5 = vector.shape_cast %4 : vector<1x8x2048xbf16> to vector<8x2048xbf16>
    %c0_2 = arith.constant 0 : index
    %c0_3 = arith.constant 0 : index
    %c0_4 = arith.constant 0 : index
    %6 = vector.load %arg11[%c0_2, %c0_3, %c0_4] : memref<1x2048x512xbf16, #tpu.memory_space<vmem>>, vector<1x2048x512xbf16>
    %7 = vector.shape_cast %6 : vector<1x2048x512xbf16> to vector<2048x512xbf16>
    %cst = arith.constant dense<0.000000e+00> : vector<8x512xf32>
    %8 = tpu.matmul %5, %7, %cst {dimension_numbers = #tpu.dot_dimension_numbers<[1], [0], [0], [1], [0, 0, 1, 1], [], []>} : vector<8x2048xbf16>, vector<2048x512xbf16>, vector<8x512xf32> -> vector<8x512xf32>
    %c0_5 = arith.constant 0 : index
    %c0_6 = arith.constant 0 : index
    %9 = vector.load %arg12[%c0_5, %c0_6] : memref<1x512xf32, #tpu.memory_space<vmem>>, vector<1x512xf32>
    %10 = vector.broadcast %9 : vector<1x512xf32> to vector<8x512xf32>
    %11 = arith.addf %8, %10 : vector<8x512xf32>
    %c0_7 = arith.constant 0 : index
    %c0_8 = arith.constant 0 : index
    %12 = vector.load %arg13[%c0_7, %c0_8] : memref<8x512xf32, #tpu.memory_space<vmem>>, vector<8x512xf32>
    tpu.vector_store %arg13[%c0_7, %c0_8], %11 {strides = array<i32>} : memref<8x512xf32, #tpu.memory_space<vmem>>, vector<8x512xf32>,
    return
  }
  func.func @transform_0(%arg0: i32, %arg1: i32) -> (i32, i32) {
    %c0_i32 = arith.constant 0 : i32
    %c0_i32_0 = arith.constant 0 : i32
    return %arg1, %c0_i32 : i32, i32
  }
  func.func @transform_1(%arg0: i32, %arg1: i32) -> (i32, i32) {
    %c0_i32 = arith.constant 0 : i32
    %c0_i32_0 = arith.constant 0 : i32
    %c0_i32_1 = arith.constant 0 : i32
    return %c0_i32, %c0_i32_0 : i32, i32
  }
  func.func @transform_2(%arg0: i32, %arg1: i32) -> (i32, i32) {
    %c0_i32 = arith.constant 0 : i32
    %c0_i32_0 = arith.constant 0 : i32
    %c0_i32_1 = arith.constant 0 : i32
    return %c0_i32, %c0_i32_0 : i32, i32
  }
  func.func @transform_3(%arg0: i32, %arg1: i32) -> (i32, i32) {
    %c0_i32 = arith.constant 0 : i32
    %c0_i32_0 = arith.constant 0 : i32
    %c0_i32_1 = arith.constant 0 : i32
    return %c0_i32, %c0_i32_0 : i32, i32
  }
  func.func @transform_4(%arg0: i32, %arg1: i32) -> (i32, i32) {
    %c0_i32 = arith.constant 0 : i32
    %c0_i32_0 = arith.constant 0 : i32
    %c0_i32_1 = arith.constant 0 : i32
    return %c0_i32, %c0_i32_0 : i32, i32
  }
  func.func @transform_5(%arg0: i32, %arg1: i32) -> (i32, i32) {
    %c0_i32 = arith.constant 0 : i32
    %c0_i32_0 = arith.constant 0 : i32
    %c0_i32_1 = arith.constant 0 : i32
    return %c0_i32, %c0_i32_0 : i32, i32
  }
  func.func @transform_6(%arg0: i32, %arg1: i32) -> (i32, i32) {
    %c0_i32 = arith.constant 0 : i32
    %c0_i32_0 = arith.constant 0 : i32
    %c0_i32_1 = arith.constant 0 : i32
    return %c0_i32, %c0_i32_0 : i32, i32
  }
  func.func @transform_7(%arg0: i32, %arg1: i32) -> (i32, i32) {
    %c0_i32 = arith.constant 0 : i32
    %c0_i32_0 = arith.constant 0 : i32
    %c0_i32_1 = arith.constant 0 : i32
    return %c0_i32, %c0_i32_0 : i32, i32
  }
  func.func @transform_8(%arg0: i32, %arg1: i32) -> (i32, i32) {
    %c0_i32 = arith.constant 0 : i32
    %c0_i32_0 = arith.constant 0 : i32
    %c0_i32_1 = arith.constant 0 : i32
    return %c0_i32, %c0_i32_0 : i32, i32
  }
  func.func @transform_9(%arg0: i32, %arg1: i32) -> (i32, i32, i32) {
    %c0_i32 = arith.constant 0 : i32
    %c0_i32_0 = arith.constant 0 : i32
    %c0_i32_1 = arith.constant 0 : i32
    return %arg0, %c0_i32, %c0_i32_0 : i32, i32, i32
  }
  func.func @transform_10(%arg0: i32, %arg1: i32) -> (i32, i32) {
    %c0_i32 = arith.constant 0 : i32
    %c0_i32_0 = arith.constant 0 : i32
    return %c0_i32, %arg0 : i32, i32
  }
  func.func @transform_11(%arg0: i32, %arg1: i32) -> (i32, i32) {
    %c0_i32 = arith.constant 0 : i32
    return %arg1, %arg0 : i32, i32
  }
}

</mosaic_0001>

<bundles_post_ra>
// kernel: tpu_custom_call.1
= control target key start
LH: loop header
LB: loop body
LE: loop exit
PB: predicated region body
PF: predicated region fallthrough
CT: control target
= control target key end

     0   :  { %16 = vsyncpa [#allocation4], 0  ;;  %s9144_s0 = inlined_call_operand.hbm [shape: f32[8,10], index: 0, kind: input, shape index: {}]   ;;  %s9145_s1 = inlined_call_operand.hbm [shape: f32[10,256], index: 1, kind: input, shape index: {}]   ;;  %s9146_s2 = inlined_call_operand.hbm [shape: f32[1,256], index: 2, kind: input, shape index: {}]   ;;  %s9147_s3 = inlined_call_operand.hbm [shape: f32[1,256], index: 3, kind: input, shape index: {}]   ;;  %s9148_s4 = inlined_call_operand.hbm [shape: f32[1,256], index: 4, kind: input, shape index: {}]   ;;  %s9149_s5 = inlined_call_operand.hbm [shape: bf16[256,2048], index: 5, kind: input, shape index: {}]   ;;  %s9150_s6 = inlined_call_operand.hbm [shape: f32[1,2048], index: 6, kind: input, shape index: {}]   ;;  %s9151_s7 = inlined_call_operand.hbm [shape: f32[1,2048], index: 7, kind: input, shape index: {}]   ;;  %s9152_s8 = inlined_call_operand.hbm [shape: f32[1,2048], index: 8, kind: input, shape index: {}]   ;;  %s9153_s9 = inlined_call_operand.hbm [shape: bf16[1,2048,512], index: 9, kind: input, shape index: {}]   ;;  %s9154_s10 = inlined_call_operand.hbm [shape: f32[1,512], index: 10, kind: input, shape index: {}]   ;;  %s9155_s11 = inlined_call_operand.hbm [shape: f32[8,512], index: 11, kind: output, shape index: {}]  }
   0x1   :  { %17 = vsyncpa [#allocation7], 0 }
   0x2   :  { %18 = vsyncpa [#allocation10], 0 }
   0x3   :  { %19 = vsyncpa [#allocation13], 0 }
   0x4   :  { %20 = vsyncpa [#allocation16], 0 }
   0x5   :  { %21 = vsyncpa [#allocation19], 0 }
   0x6   :  { %22 = vsyncpa [#allocation5], 0  ;;  %s8554_s17 = smov [#allocation6]   ;;  %s8276_s21 = scalar_lea.hbm %s9145_s1, 512 }
   0x7   :  { %s38_s18 = sshll.u32 %s8554_s17, 4  ;;  %p8277_p0 = scmp.ne.s32.totalorder %s9145_s1, %s8276_s21  ;;  %s39_s18 = int_to_ptr.vmem [resolvable:$true] %s38_s18 }
   0x8   :  { %p8280_p1 = scmp.lt.u32.totalorder %s8276_s21, %s9145_s1 }
   0xa   :  { %p8282_p2 = pnand %p8280_p1, %p8277_p0 }
   0xc   :  { %8285 = shalt.err (!%p8282_p2)
}
   0xd   :  { %s8286_s26 = scalar_lea.vmem %s39_s18, 512  ;;  %p8291_p4 = scmp.lt.s32.totalorder %s39_s18, %s39_s18 }
   0xe   :  { %p8287_p3 = scmp.ne.s32.totalorder %s39_s18, %s8286_s26  ;;  %p8292_p5 = scmp.lt.s32.totalorder %s8286_s26, %s8286_s26 }
  0x10   :  { %p8293_p6 = por %p8292_p5, %p8291_p4 }
  0x12   :  { %p8294_p7 = pnand %p8293_p6, %p8287_p3 }
  0x14   :  { %8297 = shalt.err (!%p8294_p7)
}
  0x15   :  { %s8555_s27 = smov 256   ;;  %s8556_s28 = smov 16  }
  0x16   :  { %44 = dma.hbm_to_vmem [thread:$0]  %s9145_s1, 512, %s39_s18, [#allocation7], %s8555_s27, %s8555_s27, %s8556_s28  }
  0x17   :  { %s8557_s12 = smov [#allocation9]   ;;  %s8558_s14 = smov [#allocation12]  }
  0x18   :  { %s61_s13 = sshll.u32 %s8557_s12, 4  ;;  %s80_s15 = sshll.u32 %s8558_s14, 4  ;;  %s62_s13 = int_to_ptr.vmem [resolvable:$true] %s61_s13  ;;  %s81_s15 = int_to_ptr.vmem [resolvable:$true] %s80_s15 }
  0x19   :  { %s8298_s19 = scalar_lea.hbm %s9147_s3, 32 }
  0x1a   :  { %p8299_p8 = scmp.ne.s32.totalorder %s9147_s3, %s8298_s19  ;;  %p8302_p9 = scmp.lt.u32.totalorder %s8298_s19, %s9147_s3 }
  0x1c   :  { %p8304_p10 = pnand %p8302_p9, %p8299_p8 }
  0x1e   :  { %8307 = shalt.err (!%p8304_p10)
}
  0x1f   :  { %s8308_s1 = scalar_lea.vmem %s62_s13, 32  ;;  %p8313_p12 = scmp.lt.s32.totalorder %s62_s13, %s62_s13 }
  0x20   :  { %p8309_p11 = scmp.ne.s32.totalorder %s62_s13, %s8308_s1  ;;  %p8314_p13 = scmp.lt.s32.totalorder %s8308_s1, %s8308_s1 }
  0x22   :  { %p8315_p0 = por %p8314_p13, %p8313_p12 }
  0x24   :  { %p8316_p1 = pnand %p8315_p0, %p8309_p11 }
  0x26   :  { %8319 = shalt.err (!%p8316_p1)
}
  0x27   :  { %64 = dma.hbm_to_vmem [thread:$0]  %s9147_s3, 32, %s62_s13, [#allocation10]  }
  0x28   :  { %s8320_s29 = scalar_lea.hbm %s9149_s5, 32768 }
  0x29   :  { %p8321_p2 = scmp.ne.s32.totalorder %s9149_s5, %s8320_s29  ;;  %p8324_p3 = scmp.lt.u32.totalorder %s8320_s29, %s9149_s5 }
  0x2b   :  { %p8326_p4 = pnand %p8324_p3, %p8321_p2 }
  0x2d   :  { %8329 = shalt.err (!%p8326_p4)
}
  0x2e   :  { %s8330_s17 = scalar_lea.vmem %s81_s15, 32768  ;;  %p8335_p6 = scmp.lt.s32.totalorder %s81_s15, %s81_s15 }
  0x2f   :  { %p8331_p5 = scmp.ne.s32.totalorder %s81_s15, %s8330_s17  ;;  %p8336_p7 = scmp.lt.s32.totalorder %s8330_s17, %s8330_s17 }
  0x31   :  { %p8337_p8 = por %p8336_p7, %p8335_p6 }
  0x33   :  { %p8338_p9 = pnand %p8337_p8, %p8331_p5 }
  0x35   :  { %8341 = shalt.err (!%p8338_p9)
}
  0x36   :  { %s8559_s3 = smov 1024   ;;  %s8560_s13 = smov 64  }
  0x37   :  { %86 = dma.hbm_to_vmem [thread:$0]  %s9149_s5, 32768, %s81_s15, [#allocation13], %s8559_s3, %s8559_s3, %s8560_s13  }
  0x38   :  { %s8561_s21 = smov [#allocation15]   ;;  %s8562_s23 = smov [#allocation18]  }
  0x39   :  { %s103_s22 = sshll.u32 %s8561_s21, 4  ;;  %s122_s1 = sshll.u32 %s8562_s23, 4  ;;  %s104_s22 = int_to_ptr.vmem [resolvable:$true] %s103_s22  ;;  %s123_s1 = int_to_ptr.vmem [resolvable:$true] %s122_s1 }
  0x3a   :  { %s8342_s25 = scalar_lea.hbm %s9151_s7, 256 }
  0x3b   :  { %p8343_p10 = scmp.ne.s32.totalorder %s9151_s7, %s8342_s25  ;;  %p8346_p11 = scmp.lt.u32.totalorder %s8342_s25, %s9151_s7 }
  0x3d   :  { %p8348_p12 = pnand %p8346_p11, %p8343_p10 }
  0x3f   :  { %8351 = shalt.err (!%p8348_p12)
}
  0x40   :  { %s8352_s5 = scalar_lea.vmem %s104_s22, 256  ;;  %p8357_p0 = scmp.lt.s32.totalorder %s104_s22, %s104_s22 }
  0x41   :  { %p8353_p13 = scmp.ne.s32.totalorder %s104_s22, %s8352_s5  ;;  %p8358_p1 = scmp.lt.s32.totalorder %s8352_s5, %s8352_s5 }
  0x43   :  { %p8359_p2 = por %p8358_p1, %p8357_p0 }
  0x45   :  { %p8360_p3 = pnand %p8359_p2, %p8353_p13 }
  0x47   :  { %8363 = shalt.err (!%p8360_p3)
}
  0x48   :  { %106 = dma.hbm_to_vmem [thread:$0]  %s9151_s7, 256, %s104_s22, [#allocation16]  }
  0x49   :  { %s8364_s3 = scalar_lea.hbm %s9153_s9, 65536 }
  0x4a   :  { %p8365_p4 = scmp.ne.s32.totalorder %s9153_s9, %s8364_s3  ;;  %p8368_p5 = scmp.lt.u32.totalorder %s8364_s3, %s9153_s9 }
  0x4c   :  { %p8370_p6 = pnand %p8368_p5, %p8365_p4 }
  0x4e   :  { %8373 = shalt.err (!%p8370_p6)
}
  0x4f   :  { %s8374_s23 = scalar_lea.vmem %s123_s1, 65536  ;;  %p8379_p8 = scmp.lt.s32.totalorder %s123_s1, %s123_s1 }
  0x50   :  { %p8375_p7 = scmp.ne.s32.totalorder %s123_s1, %s8374_s23  ;;  %p8380_p9 = scmp.lt.s32.totalorder %s8374_s23, %s8374_s23 }
  0x52   :  { %p8381_p10 = por %p8380_p9, %p8379_p8 }
  0x54   :  { %p8382_p11 = pnand %p8381_p10, %p8375_p7 }
  0x56   :  { %8385 = shalt.err (!%p8382_p11)
}
  0x57   :  { %128 = dma.hbm_to_vmem [thread:$0]  %s9153_s9, 65536, %s123_s1, [#allocation19], %s8555_s27, %s8555_s27, %s8556_s28  }
  0x58   :  { %s8563_s18 = smov [#allocation3]   ;;  %s8564_s25 = smov [#allocation8]  }
  0x59   :  { %s29_s24 = sshll.u32 %s8563_s18, 4  ;;  %s51_s26 = sshll.u32 %s8564_s25, 4  ;;  %s30_s24 = int_to_ptr.vmem [resolvable:$true] %s29_s24  ;;  %s52_s26 = int_to_ptr.vmem [resolvable:$true] %s51_s26 }
  0x5a   :  { %s8386_s12 = scalar_lea.hbm %s9144_s0, 128 }
  0x5b   :  { %p8387_p12 = scmp.ne.s32.totalorder %s9144_s0, %s8386_s12  ;;  %p8390_p13 = scmp.lt.u32.totalorder %s8386_s12, %s9144_s0 }
  0x5d   :  { %p8392_p0 = pnand %p8390_p13, %p8387_p12 }
  0x5f   :  { %8395 = shalt.err (!%p8392_p0)
}
  0x60   :  { %s8396_s9 = scalar_lea.vmem %s30_s24, 128  ;;  %p8401_p2 = scmp.lt.s32.totalorder %s30_s24, %s30_s24 }
  0x61   :  { %p8397_p1 = scmp.ne.s32.totalorder %s30_s24, %s8396_s9  ;;  %p8402_p3 = scmp.lt.s32.totalorder %s8396_s9, %s8396_s9 }
  0x63   :  { %p8403_p4 = por %p8402_p3, %p8401_p2 }
  0x65   :  { %p8404_p5 = pnand %p8403_p4, %p8397_p1 }
  0x67   :  { %8407 = shalt.err (!%p8404_p5)
}
  0x68   :  { %32 = dma.hbm_to_vmem [thread:$0]  %s9144_s0, 128, %s30_s24, [#allocation4]  }
  0x69   :  { %s8408_s3 = scalar_lea.hbm %s9146_s2, 32 }
  0x6a   :  { %p8409_p6 = scmp.ne.s32.totalorder %s9146_s2, %s8408_s3  ;;  %p8412_p7 = scmp.lt.u32.totalorder %s8408_s3, %s9146_s2 }
  0x6c   :  { %p8414_p8 = pnand %p8412_p7, %p8409_p6 }
  0x6e   :  { %8417 = shalt.err (!%p8414_p8)
}
  0x6f   :  { %s8418_s23 = scalar_lea.vmem %s52_s26, 32  ;;  %p8423_p10 = scmp.lt.s32.totalorder %s52_s26, %s52_s26 }
  0x70   :  { %p8419_p9 = scmp.ne.s32.totalorder %s52_s26, %s8418_s23  ;;  %p8424_p11 = scmp.lt.s32.totalorder %s8418_s23, %s8418_s23 }
  0x72   :  { %p8425_p12 = por %p8424_p11, %p8423_p10 }
  0x74   :  { %p8426_p13 = pnand %p8425_p12, %p8419_p9 }
  0x76   :  { %8429 = shalt.err (!%p8426_p13)
}
  0x77   :  { %54 = dma.hbm_to_vmem [thread:$0]  %s9146_s2, 32, %s52_s26, [#allocation7]  }
  0x78   :  { %s8565_s22 = smov [#allocation11]   ;;  %s8566_s24 = smov [#allocation14]  }
  0x79   :  { %s71_s18 = sshll.u32 %s8565_s22, 4  ;;  %s93_s25 = sshll.u32 %s8566_s24, 4  ;;  %s72_s18 = int_to_ptr.vmem [resolvable:$true] %s71_s18  ;;  %s94_s25 = int_to_ptr.vmem [resolvable:$true] %s93_s25 }
  0x7a   :  { %s8430_s12 = scalar_lea.hbm %s9148_s4, 32 }
  0x7b   :  { %p8431_p0 = scmp.ne.s32.totalorder %s9148_s4, %s8430_s12  ;;  %p8434_p1 = scmp.lt.u32.totalorder %s8430_s12, %s9148_s4 }
  0x7d   :  { %p8436_p2 = pnand %p8434_p1, %p8431_p0 }
  0x7f   :  { %8439 = shalt.err (!%p8436_p2)
}
  0x80   :  { %s8440_s2 = scalar_lea.vmem %s72_s18, 32  ;;  %p8445_p4 = scmp.lt.s32.totalorder %s72_s18, %s72_s18 }
  0x81   :  { %p8441_p3 = scmp.ne.s32.totalorder %s72_s18, %s8440_s2  ;;  %p8446_p5 = scmp.lt.s32.totalorder %s8440_s2, %s8440_s2 }
  0x83   :  { %p8447_p6 = por %p8446_p5, %p8445_p4 }
  0x85   :  { %p8448_p7 = pnand %p8447_p6, %p8441_p3 }
  0x87   :  { %8451 = shalt.err (!%p8448_p7)
}
  0x88   :  { %74 = dma.hbm_to_vmem [thread:$0]  %s9148_s4, 32, %s72_s18, [#allocation10]  }
  0x89   :  { %s8452_s1 = scalar_lea.hbm %s9150_s6, 256 }
  0x8a   :  { %p8453_p8 = scmp.ne.s32.totalorder %s9150_s6, %s8452_s1  ;;  %p8456_p9 = scmp.lt.u32.totalorder %s8452_s1, %s9150_s6 }
  0x8c   :  { %p8458_p10 = pnand %p8456_p9, %p8453_p8 }
  0x8e   :  { %8461 = shalt.err (!%p8458_p10)
}
  0x8f   :  { %s8462_s20 = scalar_lea.vmem %s94_s25, 256  ;;  %p8467_p12 = scmp.lt.s32.totalorder %s94_s25, %s94_s25 }
  0x90   :  { %p8463_p11 = scmp.ne.s32.totalorder %s94_s25, %s8462_s20  ;;  %p8468_p13 = scmp.lt.s32.totalorder %s8462_s20, %s8462_s20 }
  0x92   :  { %p8469_p0 = por %p8468_p13, %p8467_p12 }
  0x94   :  { %p8470_p1 = pnand %p8469_p0, %p8463_p11 }
  0x96   :  { %8473 = shalt.err (!%p8470_p1)
}
  0x97   :  { %96 = dma.hbm_to_vmem [thread:$0]  %s9150_s6, 256, %s94_s25, [#allocation13]  }
  0x98   :  { %s8567_s23 = smov [#allocation17]   ;;  %s8568_s7 = smov [#allocation20]  }
  0x99   :  { %s113_s0 = sshll.u32 %s8567_s23, 4  ;;  %s135_s22 = sshll.u32 %s8568_s7, 4  ;;  %s114_s0 = int_to_ptr.vmem [resolvable:$true] %s113_s0  ;;  %s136_s22 = int_to_ptr.vmem [resolvable:$true] %s135_s22 }
  0x9a   :  { %s8474_s29 = scalar_lea.hbm %s9152_s8, 256 }
  0x9b   :  { %p8475_p2 = scmp.ne.s32.totalorder %s9152_s8, %s8474_s29  ;;  %p8478_p3 = scmp.lt.u32.totalorder %s8474_s29, %s9152_s8 }
  0x9d   :  { %p8480_p4 = pnand %p8478_p3, %p8475_p2 }
  0x9f   :  { %8483 = shalt.err (!%p8480_p4)
}
  0xa0   :  { %s8484_s6 = scalar_lea.vmem %s114_s0, 256  ;;  %p8489_p6 = scmp.lt.s32.totalorder %s114_s0, %s114_s0 }
  0xa1   :  { %p8485_p5 = scmp.ne.s32.totalorder %s114_s0, %s8484_s6  ;;  %p8490_p7 = scmp.lt.s32.totalorder %s8484_s6, %s8484_s6 }
  0xa3   :  { %p8491_p8 = por %p8490_p7, %p8489_p6 }
  0xa5   :  { %p8492_p9 = pnand %p8491_p8, %p8485_p5 }
  0xa7   :  { %8495 = shalt.err (!%p8492_p9)
}
  0xa8   :  { %116 = dma.hbm_to_vmem [thread:$0]  %s9152_s8, 256, %s114_s0, [#allocation16]  }
  0xa9   :  { %s8496_s26 = scalar_lea.hbm %s9154_s10, 64 }
  0xaa   :  { %p8497_p10 = scmp.ne.s32.totalorder %s9154_s10, %s8496_s26  ;;  %p8500_p11 = scmp.lt.u32.totalorder %s8496_s26, %s9154_s10 }
  0xac   :  { %p8502_p12 = pnand %p8500_p11, %p8497_p10 }
  0xae   :  { %8505 = shalt.err (!%p8502_p12)
}
  0xaf   :  { %s8506_s17 = scalar_lea.vmem %s136_s22, 64  ;;  %p8511_p0 = scmp.lt.s32.totalorder %s136_s22, %s136_s22 }
  0xb0   :  { %p8507_p13 = scmp.ne.s32.totalorder %s136_s22, %s8506_s17  ;;  %p8512_p1 = scmp.lt.s32.totalorder %s8506_s17, %s8506_s17 }
  0xb2   :  { %p8513_p2 = por %p8512_p1, %p8511_p0 }
  0xb4   :  { %p8514_p3 = pnand %p8513_p2, %p8507_p13 }
  0xb6   :  { %8517 = shalt.err (!%p8514_p3)
}
  0xb7   :  { %138 = dma.hbm_to_vmem [thread:$0]  %s9154_s10, 64, %s136_s22, [#allocation19]  }
  0xb8   :  { %8540 = dma.done.wait [#allocation4], 128  }
  0xb9   :  { %8541 = vsyncadd [#allocation4], 4294967168 }
  0xba   :  { %8542 = dma.done.wait [#allocation7], 544  }
  0xbb   :  { %8543 = vsyncadd [#allocation7], 4294966752 }
  0xbc   :  { %8544 = dma.done.wait [#allocation10], 64  }
  0xbd   :  { %8545 = vsyncadd [#allocation10], 4294967232 }
  0xbe   :  { %8546 = dma.done.wait [#allocation13], 33024  }
  0xbf   :  { %8547 = vsyncadd [#allocation13], 4294934272 }
  0xc0   :  { %8548 = dma.done.wait [#allocation16], 512  }
  0xc1   :  { %8549 = vsyncadd [#allocation16], 4294966784 }
  0xc2   :  { %8550 = dma.done.wait [#allocation19], 65600  }
  0xc3   :  { %8551 = vsyncadd [#allocation19], 4294901696  ;;  %v8569_v0 = vmov 0.0   ;;  %vm197_vm0 = vcmask 1041408   ;;  %vm8570_vm1 = vmmov 1   ;;  %v178_v1 = vld [vmem:[#allocation6 + $0x8] sm:$0xff]  ;;  %v183_v8 = vlaneseq }
  0xc4   :  { %268 = vmatprep.mubr.f32.mxu0 %v8569_v0  ;;  %vm7383_vm2 = vmpackc.low %vm197_vm0, %vm8570_vm1  ;;  %v180_v2 = vld [vmem:[#allocation6 + $0x18] sm:$0x3]  ;;  %v177_v3 = vld [vmem:[#allocation6] sm:$0xff]  ;;  %vm193_vm3 = vcmask 80896   ;;  %s8571_s10 = smov [#allocation21]  }
  0xc5   :  { %v7382_v4 = vpack.c.bf16 %v180_v2, %v178_v1  ;;  %v179_v5 = vld [vmem:[#allocation6 + $0x10] sm:$0x3]  ;;  %v176_v7 = vld [vmem:[#allocation3] sm:$0xff]  ;;  %v8770_v9 = vshrl.u32 %v183_v8, 7  ;;  %v181_v11 = vld [vmem:[#allocation8] sm:$0x3] }
  0xc6   :  { %v7385_v6 = vpack.c.bf16 %v179_v5, %v177_v3  ;;  %v332_v30 = vld [vmem:[#allocation12] sm:$0xff]  ;;  %v333_v32 = vld [vmem:[#allocation12 + $0x8] sm:$0xff]  ;;  %s6549_s13 = sshll.u32 %s8571_s10, 4  ;;  %s6550_s13 = int_to_ptr.vmem [resolvable:$true] %s6549_s13 }
  0xc7   :  { %7384 = vmatprep.subr.msk.bf16.mxu0 %vm7383_vm2, %v7382_v4  ;;  %v8773_v10 = vsub.s32 0, %v8770_v9  ;;  %v8776_v12 = vsub.s32 1, %v8770_v9  ;;  %v340_v31 = vld [vmem:[#allocation12 + $0x40] sm:$0xff]  ;;  %v341_v34 = vld [vmem:[#allocation12 + $0x48] sm:$0xff]  ;;  %s8518_s19 = scalar_lea.vmem %s6550_s13, 512  ;;  %p8523_p5 = scmp.lt.s32.totalorder %s6550_s13, %s6550_s13 }
  0xc8   :  { %7387 = vmatpush1.bf16.msk.msra.mxu0 %vm7383_vm2, %v7385_v6  ;;  %v6567_v33 = vcombine.high %v332_v30, %v340_v31  ;;  %v6566_v35 = vcombine.low %v332_v30, %v340_v31  ;;  %v348_v36 = vld [vmem:[#allocation12 + $0x80] sm:$0xff]  ;;  %v6568_v38 = vcombine.low %v333_v32, %v341_v34  ;;  %v6569_v39 = vcombine.high %v333_v32, %v341_v34  ;;  %v349_v41 = vld [vmem:[#allocation12 + $0x88] sm:$0xff]  ;;  %p8519_p4 = scmp.ne.s32.totalorder %s6550_s13, %s8518_s19  ;;  %p8524_p6 = scmp.lt.s32.totalorder %s8518_s19, %s8518_s19 }
  0xc9   :  { %v186_v13 = vrot.slane %v181_v11, %v8773_v10  ;;  %v190_v14 = vrot.slane %v181_v11, %v8776_v12  ;;  %v356_v37 = vld [vmem:[#allocation12 + $0xc0] sm:$0xff]  ;;  %v357_v42 = vld [vmem:[#allocation12 + $0xc8] sm:$0xff] }
  0xca   :  { %v6583_v40 = vcombine.high %v348_v36, %v356_v37  ;;  %v364_v43 = vld [vmem:[#allocation12 + $0x100] sm:$0xff]  ;;  %1952 = vmatprep.subr.bf16.mxu1 %v6567_v33  ;;  %v6585_v44 = vcombine.high %v349_v41, %v357_v42  ;;  %v365_v46 = vld [vmem:[#allocation12 + $0x108] sm:$0xff]  ;;  %1993 = vmatprep.subr.bf16.mxu0 %v6569_v39  ;;  %v6582_v48 = vcombine.low %v348_v36, %v356_v37  ;;  %p8525_p7 = por %p8524_p6, %p8523_p5 }
  0xcb   :  { %6565 = vmatmul.mubr.msk.f32.vlgmr.msra.gmra.mrb[0].mxu0 %vm193_vm3, %v176_v7  ;;  %v372_v45 = vld [vmem:[#allocation12 + $0x140] sm:$0xff]  ;;  %v373_v47 = vld [vmem:[#allocation12 + $0x148] sm:$0xff]  ;;  %1953 = vmatpush1.bf16.msra.mxu1 %v6566_v35  ;;  %v6584_v49 = vcombine.low %v349_v41, %v357_v42 }
  0xcc   :  { %1994 = vmatpush1.bf16.msra.mxu0 %v6568_v38  ;;  %1954 = vmatprep.subr.bf16.mxu1 %v6583_v40  ;;  %v6599_v50 = vcombine.high %v364_v43, %v372_v45  ;;  %v6601_v51 = vcombine.high %v365_v46, %v373_v47  ;;  %v380_v52 = vld [vmem:[#allocation12 + $0x180] sm:$0xff]  ;;  %v381_v54 = vld [vmem:[#allocation12 + $0x188] sm:$0xff]  ;;  %v6598_v56 = vcombine.low %v364_v43, %v372_v45  ;;  %p8526_p8 = pnand %p8525_p7, %p8519_p4 }
  0xcd   :  { %1995 = vmatprep.subr.bf16.mxu0 %v6585_v44  ;;  %v388_v53 = vld [vmem:[#allocation12 + $0x1c0] sm:$0xff]  ;;  %v389_v55 = vld [vmem:[#allocation12 + $0x1c8] sm:$0xff]  ;;  %v6600_v57 = vcombine.low %v365_v46, %v373_v47 }
  0xce   :  { %v6615_v58 = vcombine.high %v380_v52, %v388_v53  ;;  %v6617_v59 = vcombine.high %v381_v54, %v389_v55  ;;  %v396_v60 = vld [vmem:[#allocation12 + $0x200] sm:$0xff]  ;;  %v397_v62 = vld [vmem:[#allocation12 + $0x208] sm:$0xff]  ;;  %v6614_v0 = vcombine.low %v380_v52, %v388_v53  ;;  %v6616_v1 = vcombine.low %v381_v54, %v389_v55 }
  0xcf   :  { %1955 = vmatpush1.bf16.msra.mxu1 %v6582_v48  ;;  %v404_v61 = vld [vmem:[#allocation12 + $0x240] sm:$0xff]  ;;  %v405_v63 = vld [vmem:[#allocation12 + $0x248] sm:$0xff] }
  0xd0   :  { %1996 = vmatpush1.bf16.msra.mxu0 %v6584_v49  ;;  %1956 = vmatprep.subr.bf16.mxu1 %v6599_v50  ;;  %v6631_v2 = vcombine.high %v396_v60, %v404_v61  ;;  %v6633_v3 = vcombine.high %v397_v62, %v405_v63  ;;  %v412_v4 = vld [vmem:[#allocation12 + $0x280] sm:$0xff]  ;;  %v413_v6 = vld [vmem:[#allocation12 + $0x288] sm:$0xff]  ;;  %v6630_v8 = vcombine.low %v396_v60, %v404_v61 }
  0xd1   :  { %1997 = vmatprep.subr.bf16.mxu0 %v6601_v51  ;;  %v420_v5 = vld [vmem:[#allocation12 + $0x2c0] sm:$0xff]  ;;  %v421_v7 = vld [vmem:[#allocation12 + $0x2c8] sm:$0xff]  ;;  %v6632_v11 = vcombine.low %v397_v62, %v405_v63 }
  0xd2   :  { %v460_v33 = vld [vmem:[#allocation12 + $0x400] sm:$0xff]  ;;  %v461_v35 = vld [vmem:[#allocation12 + $0x408] sm:$0xff] }
  0xd3   :  { %1957 = vmatpush1.bf16.msra.mxu1 %v6598_v56  ;;  %v468_v34 = vld [vmem:[#allocation12 + $0x440] sm:$0xff]  ;;  %v469_v36 = vld [vmem:[#allocation12 + $0x448] sm:$0xff] }
  0xd4   :  { %1998 = vmatpush1.bf16.msra.mxu0 %v6600_v57  ;;  %1958 = vmatprep.subr.bf16.mxu1 %v6615_v58  ;;  %v6695_v39 = vcombine.high %v460_v33, %v468_v34  ;;  %v6697_v40 = vcombine.high %v461_v35, %v469_v36  ;;  %v476_v41 = vld [vmem:[#allocation12 + $0x480] sm:$0xff]  ;;  %v477_v43 = vld [vmem:[#allocation12 + $0x488] sm:$0xff]  ;;  %v6694_v45 = vcombine.low %v460_v33, %v468_v34 }
  0xd5   :  { %1999 = vmatprep.subr.bf16.mxu0 %v6617_v59  ;;  %v484_v42 = vld [vmem:[#allocation12 + $0x4c0] sm:$0xff]  ;;  %v485_v44 = vld [vmem:[#allocation12 + $0x4c8] sm:$0xff]  ;;  %v6696_v46 = vcombine.low %v461_v35, %v469_v36 }
  0xd6   :  { %v6711_v47 = vcombine.high %v476_v41, %v484_v42  ;;  %v6713_v48 = vcombine.high %v477_v43, %v485_v44  ;;  %v492_v49 = vld [vmem:[#allocation12 + $0x500] sm:$0xff]  ;;  %v493_v51 = vld [vmem:[#allocation12 + $0x508] sm:$0xff]  ;;  %v6710_v53 = vcombine.low %v476_v41, %v484_v42  ;;  %v6712_v54 = vcombine.low %v477_v43, %v485_v44 }
  0xd7   :  { %1959 = vmatpush1.bf16.msra.mxu1 %v6614_v0  ;;  %v500_v50 = vld [vmem:[#allocation12 + $0x540] sm:$0xff]  ;;  %v501_v52 = vld [vmem:[#allocation12 + $0x548] sm:$0xff] }
  0xd8   :  { %2000 = vmatpush1.bf16.msra.mxu0 %v6616_v1  ;;  %1960 = vmatprep.subr.bf16.mxu1 %v6631_v2  ;;  %v6727_v55 = vcombine.high %v492_v49, %v500_v50  ;;  %v6729_v56 = vcombine.high %v493_v51, %v501_v52  ;;  %v6728_v57 = vcombine.low %v493_v51, %v501_v52  ;;  %v508_v2 = vld [vmem:[#allocation12 + $0x580] sm:$0xff]  ;;  %v565_v33 = vld [vmem:[#allocation12 + $0x748] sm:$0xff] }
  0xd9   :  { %2001 = vmatprep.subr.bf16.mxu0 %v6633_v3  ;;  %v6726_v1 = vcombine.low %v492_v49, %v500_v50  ;;  %v516_v3 = vld [vmem:[#allocation12 + $0x5c0] sm:$0xff]  ;;  %v581_v41 = vld [vmem:[#allocation12 + $0x7c8] sm:$0xff]  ;;  %v343_v49 = vld [vmem:[#allocation12 + $0x58] sm:$0xff] }
  0xdb   :  { %1961 = vmatpush1.bf16.msra.mxu1 %v6630_v8  ;;  %v6742_v8 = vcombine.low %v508_v2, %v516_v3 }
  0xdc   :  { %2002 = vmatpush1.bf16.msra.mxu0 %v6632_v11  ;;  %v532_v11 = vld [vmem:[#allocation12 + $0x640] sm:$0xff] }
 0x19e   :  { %v270_v15 = vpop.f32.mrb[0].mxu0 }
 0x19f   :  { %v271_v16 = vadd.f32 %v270_v15, %v186_v13  ;;  %v272_v17 = vpop.f32.mrb[1].mxu0  ;;  %v6647_v13 = vcombine.high %v412_v4, %v420_v5  ;;  %v428_v15 = vld [vmem:[#allocation12 + $0x300] sm:$0xff] }
 0x1a0   :  { %v273_v18 = vadd.f32 %v272_v17, %v190_v14  ;;  %v6649_v14 = vcombine.high %v413_v6, %v421_v7  ;;  %v429_v17 = vld [vmem:[#allocation12 + $0x308] sm:$0xff] }
 0x1a1   :  { %v277_v19 = vmul.f32 0.70710677, %v271_v16  ;;  %v275_v23 = vmul.f32 0.5, %v271_v16  ;;  %v436_v16 = vld [vmem:[#allocation12 + $0x340] sm:$0xff]  ;;  %1962 = vmatprep.subr.bf16.mxu1 %v6647_v13  ;;  %v525_v13 = vld [vmem:[#allocation12 + $0x608] sm:$0xff] }
 0x1a2   :  { %v278_v20 = vmul.f32 0.70710677, %v273_v18  ;;  %v276_v25 = vmul.f32 0.5, %v273_v18  ;;  %v437_v18 = vld [vmem:[#allocation12 + $0x348] sm:$0xff]  ;;  %2003 = vmatprep.subr.bf16.mxu0 %v6649_v14 }
 0x1a3   :  { %8234 = verf.f32 %v277_v19  ;;  %v6646_v19 = vcombine.low %v412_v4, %v420_v5  ;;  %v6664_v30 = vcombine.low %v429_v17, %v437_v18  ;;  %v509_v4 = vld [vmem:[#allocation12 + $0x588] sm:$0xff]  ;;  %v6743_v5 = vcombine.high %v508_v2, %v516_v3 }
 0x1a4   :  { %8236 = verf.f32 %v278_v20  ;;  %v6648_v20 = vcombine.low %v413_v6, %v421_v7  ;;  %v517_v6 = vld [vmem:[#allocation12 + $0x5c8] sm:$0xff] }
 0x1a5   :  { %1963 = vmatpush1.bf16.msra.mxu1 %v6646_v19  ;;  %v6745_v7 = vcombine.high %v509_v4, %v517_v6  ;;  %v540_v19 = vld [vmem:[#allocation12 + $0x680] sm:$0xff] }
 0x1a6   :  { %2004 = vmatpush1.bf16.msra.mxu0 %v6648_v20  ;;  %v548_v20 = vld [vmem:[#allocation12 + $0x6c0] sm:$0xff] }
 0x1ad   :  { %v8235_v21 = vpop.eup %8234 }
 0x1ae   :  { %v8237_v22 = vpop.eup %8236  ;;  %v281_v24 = vadd.f32 1.0, %v8235_v21  ;;  %v6663_v21 = vcombine.high %v428_v15, %v436_v16 }
 0x1af   :  { %v282_v26 = vadd.f32 1.0, %v8237_v22  ;;  %v6665_v22 = vcombine.high %v429_v17, %v437_v18 }
 0x1b0   :  { %v8780_v27 = vmul.f32 %v281_v24, %v275_v23  ;;  %v444_v23 = vld [vmem:[#allocation12 + $0x380] sm:$0xff]  ;;  %1964 = vmatprep.subr.bf16.mxu1 %v6663_v21  ;;  %v541_v21 = vld [vmem:[#allocation12 + $0x688] sm:$0xff] }
 0x1b1   :  { %v8782_v28 = vmul.f32 %v282_v26, %v276_v25  ;;  %v452_v24 = vld [vmem:[#allocation12 + $0x3c0] sm:$0xff]  ;;  %v445_v25 = vld [vmem:[#allocation12 + $0x388] sm:$0xff]  ;;  %2005 = vmatprep.subr.bf16.mxu0 %v6665_v22  ;;  %v6775_v22 = vcombine.high %v540_v19, %v548_v20 }
 0x1b2   :  { %v453_v26 = vld [vmem:[#allocation12 + $0x3c8] sm:$0xff]  ;;  %v6679_v31 = vcombine.high %v444_v23, %v452_v24  ;;  %v6678_v37 = vcombine.low %v444_v23, %v452_v24  ;;  %2006 = vmatpush1.bf16.msra.mxu0 %v6664_v30  ;;  %v564_v30 = vld [vmem:[#allocation12 + $0x740] sm:$0xff] }
 0x1b3   :  { %v287_v29 = vadd.f32 %v8782_v28, %v8780_v27  ;;  %v6681_v32 = vcombine.high %v445_v25, %v453_v26  ;;  %v6680_v38 = vcombine.low %v445_v25, %v453_v26  ;;  %v549_v23 = vld [vmem:[#allocation12 + $0x6c8] sm:$0xff]  ;;  %v6774_v26 = vcombine.low %v540_v19, %v548_v20 }
 0x1b4   :  { %v6776_v24 = vcombine.low %v541_v21, %v549_v23  ;;  %v6777_v25 = vcombine.high %v541_v21, %v549_v23  ;;  %v390_v23 = vld [vmem:[#allocation12 + $0x1d0] sm:$0xff] }
 0x1b5   :  { %288 = vadd.xlane.f32.xlu0 %v287_v29  ;;  %v6662_v29 = vcombine.low %v428_v15, %v436_v16  ;;  %2007 = vmatprep.subr.bf16.mxu0 %v6681_v32  ;;  %v533_v15 = vld [vmem:[#allocation12 + $0x648] sm:$0xff] }
 0x1b6   :  { %2008 = vmatpush1.bf16.msra.mxu0 %v6680_v38  ;;  %v6760_v16 = vcombine.low %v525_v13, %v533_v15  ;;  %v6761_v17 = vcombine.high %v525_v13, %v533_v15  ;;  %v580_v38 = vld [vmem:[#allocation12 + $0x7c0] sm:$0xff] }
 0x1b7   :  { %1965 = vmatpush1.bf16.msra.mxu1 %v6662_v29  ;;  %2009 = vmatprep.subr.bf16.mxu0 %v6697_v40  ;;  %v556_v29 = vld [vmem:[#allocation12 + $0x700] sm:$0xff] }
 0x1b8   :  { %1966 = vmatprep.subr.bf16.mxu1 %v6679_v31  ;;  %v557_v31 = vld [vmem:[#allocation12 + $0x708] sm:$0xff]  ;;  %v6791_v32 = vcombine.high %v556_v29, %v564_v30  ;;  %v6790_v36 = vcombine.low %v556_v29, %v564_v30 }
 0x1b9   :  { %v6792_v34 = vcombine.low %v557_v31, %v565_v33  ;;  %v6793_v35 = vcombine.high %v557_v31, %v565_v33  ;;  %v406_v33 = vld [vmem:[#allocation12 + $0x250] sm:$0xff] }
 0x1ba   :  { %2010 = vmatpush1.bf16.msra.mxu0 %v6696_v46  ;;  %v342_v46 = vld [vmem:[#allocation12 + $0x50] sm:$0xff] }
 0x1bb   :  { %1967 = vmatpush1.bf16.msra.mxu1 %v6678_v37  ;;  %2011 = vmatprep.subr.bf16.mxu0 %v6713_v48  ;;  %v572_v37 = vld [vmem:[#allocation12 + $0x780] sm:$0xff] }
 0x1bc   :  { %1968 = vmatprep.subr.bf16.mxu1 %v6695_v39  ;;  %v573_v39 = vld [vmem:[#allocation12 + $0x788] sm:$0xff]  ;;  %v6807_v40 = vcombine.high %v572_v37, %v580_v38  ;;  %v6806_v44 = vcombine.low %v572_v37, %v580_v38 }
 0x1bd   :  { %v6808_v42 = vcombine.low %v573_v39, %v581_v41  ;;  %v6809_v43 = vcombine.high %v573_v39, %v581_v41  ;;  %v422_v41 = vld [vmem:[#allocation12 + $0x2d0] sm:$0xff] }
 0x1be   :  { %2012 = vmatpush1.bf16.msra.mxu0 %v6712_v54 }
 0x1bf   :  { %1969 = vmatpush1.bf16.msra.mxu1 %v6694_v45  ;;  %2013 = vmatprep.subr.bf16.mxu0 %v6729_v56  ;;  %v334_v45 = vld [vmem:[#allocation12 + $0x10] sm:$0xff]  ;;  %v285_v56 = vld [vmem:[#allocation9] sm:$0x3] }
 0x1c0   :  { %1970 = vmatprep.subr.bf16.mxu1 %v6711_v47  ;;  %v335_v47 = vld [vmem:[#allocation12 + $0x18] sm:$0xff]  ;;  %v6571_v48 = vcombine.high %v334_v45, %v342_v46  ;;  %v6570_v50 = vcombine.low %v334_v45, %v342_v46 }
 0x1c1   :  { %v6572_v51 = vcombine.low %v335_v47, %v343_v49  ;;  %v6573_v52 = vcombine.high %v335_v47, %v343_v49  ;;  %v438_v49 = vld [vmem:[#allocation12 + $0x350] sm:$0xff] }
 0x1c2   :  { %2014 = vmatpush1.bf16.msra.mxu0 %v6728_v57  ;;  %v286_v57 = vld [vmem:[#allocation11] sm:$0x3] }
 0x1c3   :  { %1971 = vmatpush1.bf16.msra.mxu1 %v6710_v53  ;;  %2015 = vmatprep.subr.bf16.mxu0 %v6745_v7  ;;  %v358_v7 = vld [vmem:[#allocation12 + $0xd0] sm:$0xff] }
 0x1c4   :  { %1972 = vmatprep.subr.bf16.mxu1 %v6727_v55 }
 0x1c7   :  { %1973 = vmatpush1.bf16.msra.mxu1 %v6726_v1 }
 0x1c8   :  { %1974 = vmatprep.subr.bf16.mxu1 %v6743_v5 }
 0x1cb   :  { %1975 = vmatpush1.bf16.msra.mxu1 %v6742_v8  ;;  %v351_v8 = vld [vmem:[#allocation12 + $0x98] sm:$0xff] }
 0x242   :  { %v289_v58 = vpop.xlane.xlu0 %288 }
 0x243   :  { %v291_v59 = vmul.f32 0.00390625, %v289_v58  ;;  %v308_v58 = vrot.slane %v285_v56, %v8773_v10 }
 0x245   :  { %v8787_v60 = vsub.f32 %v8780_v27, %v291_v59  ;;  %v8790_v61 = vsub.f32 %v8782_v28, %v291_v59  ;;  %v6744_v27 = vcombine.low %v509_v4, %v517_v6  ;;  %v524_v28 = vld [vmem:[#allocation12 + $0x600] sm:$0xff]  ;;  %v312_v59 = vrot.slane %v285_v56, %v8776_v12  ;;  %v446_v56 = vld [vmem:[#allocation12 + $0x390] sm:$0xff] }
 0x246   :  { %v6759_v14 = vcombine.high %v524_v28, %v532_v11  ;;  %v6758_v18 = vcombine.low %v524_v28, %v532_v11  ;;  %v359_v28 = vld [vmem:[#allocation12 + $0xd8] sm:$0xff] }
 0x247   :  { %v294_v62 = vmul.f32 %v8787_v60, %v8787_v60  ;;  %v295_v63 = vmul.f32 %v8790_v61, %v8790_v61  ;;  %2016 = vmatpush1.bf16.msra.mxu0 %v6744_v27  ;;  %v350_v27 = vld [vmem:[#allocation12 + $0x90] sm:$0xff]  ;;  %v6589_v15 = vcombine.high %v351_v8, %v359_v28  ;;  %v6588_v19 = vcombine.low %v351_v8, %v359_v28 }
 0x248   :  { %1976 = vmatprep.subr.bf16.mxu1 %v6759_v14  ;;  %2017 = vmatprep.subr.bf16.mxu0 %v6761_v17  ;;  %v366_v14 = vld [vmem:[#allocation12 + $0x110] sm:$0xff]  ;;  %v375_v17 = vld [vmem:[#allocation12 + $0x158] sm:$0xff] }
 0x249   :  { %v296_v0 = vadd.f32 %v295_v63, %v294_v62  ;;  %1977 = vmatpush1.bf16.msra.mxu1 %v6758_v18  ;;  %v321_v63 = vrot.slane %v286_v57, %v8773_v10  ;;  %v6586_v18 = vcombine.low %v350_v27, %v358_v7  ;;  %v478_v28 = vld [vmem:[#allocation12 + $0x490] sm:$0xff] }
 0x24a   :  { %1978 = vmatprep.subr.bf16.mxu1 %v6775_v22  ;;  %v382_v22 = vld [vmem:[#allocation12 + $0x190] sm:$0xff] }
 0x24b   :  { %297 = vadd.xlane.f32.xlu0 %v296_v0  ;;  %2018 = vmatpush1.bf16.msra.mxu0 %v6760_v16  ;;  %v325_v0 = vrot.slane %v286_v57, %v8776_v12  ;;  %v367_v16 = vld [vmem:[#allocation12 + $0x118] sm:$0xff]  ;;  %v6619_v30 = vcombine.high %v382_v22, %v390_v23  ;;  %v454_v57 = vld [vmem:[#allocation12 + $0x3d0] sm:$0xff] }
 0x24c   :  { %2019 = vmatprep.subr.bf16.mxu0 %v6777_v25  ;;  %v6605_v21 = vcombine.high %v367_v16, %v375_v17  ;;  %v391_v25 = vld [vmem:[#allocation12 + $0x1d8] sm:$0xff]  ;;  %v6604_v29 = vcombine.low %v367_v16, %v375_v17 }
 0x24d   :  { %1979 = vmatpush1.bf16.msra.mxu1 %v6774_v26 }
 0x24e   :  { %1980 = vmatprep.subr.bf16.mxu1 %v6791_v32  ;;  %v398_v32 = vld [vmem:[#allocation12 + $0x210] sm:$0xff] }
 0x24f   :  { %2020 = vmatpush1.bf16.msra.mxu0 %v6776_v24  ;;  %v383_v24 = vld [vmem:[#allocation12 + $0x198] sm:$0xff]  ;;  %v6635_v38 = vcombine.high %v398_v32, %v406_v33 }
 0x250   :  { %2021 = vmatprep.subr.bf16.mxu0 %v6793_v35  ;;  %v6621_v31 = vcombine.high %v383_v24, %v391_v25  ;;  %v407_v35 = vld [vmem:[#allocation12 + $0x258] sm:$0xff]  ;;  %v6620_v37 = vcombine.low %v383_v24, %v391_v25 }
 0x251   :  { %1981 = vmatpush1.bf16.msra.mxu1 %v6790_v36  ;;  %v6618_v36 = vcombine.low %v382_v22, %v390_v23  ;;  %v503_v22 = vld [vmem:[#allocation12 + $0x558] sm:$0xff] }
 0x252   :  { %1982 = vmatprep.subr.bf16.mxu1 %v6807_v40  ;;  %v414_v40 = vld [vmem:[#allocation12 + $0x290] sm:$0xff] }
 0x253   :  { %2022 = vmatpush1.bf16.msra.mxu0 %v6792_v34  ;;  %v399_v34 = vld [vmem:[#allocation12 + $0x218] sm:$0xff]  ;;  %v6651_v46 = vcombine.high %v414_v40, %v422_v41 }
 0x254   :  { %2023 = vmatprep.subr.bf16.mxu0 %v6809_v43  ;;  %v6637_v39 = vcombine.high %v399_v34, %v407_v35  ;;  %v423_v43 = vld [vmem:[#allocation12 + $0x2d8] sm:$0xff]  ;;  %v6636_v45 = vcombine.low %v399_v34, %v407_v35 }
 0x255   :  { %1983 = vmatpush1.bf16.msra.mxu1 %v6806_v44  ;;  %v6634_v44 = vcombine.low %v398_v32, %v406_v33  ;;  %v519_v32 = vld [vmem:[#allocation12 + $0x5d8] sm:$0xff] }
 0x256   :  { %2034 = vmatprep.subr.bf16.mxu1 %v6571_v48  ;;  %v430_v48 = vld [vmem:[#allocation12 + $0x310] sm:$0xff] }
 0x257   :  { %2024 = vmatpush1.bf16.msra.mxu0 %v6808_v42  ;;  %v415_v42 = vld [vmem:[#allocation12 + $0x298] sm:$0xff] }
 0x258   :  { %2075 = vmatprep.subr.bf16.mxu0 %v6573_v52  ;;  %v6653_v47 = vcombine.high %v415_v42, %v423_v43  ;;  %v6650_v52 = vcombine.low %v414_v40, %v422_v41  ;;  %v535_v40 = vld [vmem:[#allocation12 + $0x658] sm:$0xff] }
 0x2d8   :  { %v298_v53 = vpop.xlane.xlu0 %297 }
 0x2d9   :  { %v299_v54 = vmul.f32 0.00390625, %v298_v53  ;;  %v6652_v53 = vcombine.low %v415_v42, %v423_v43 }
 0x2db   :  { %v300_v55 = vadd.f32 1e-05, %v299_v54  ;;  %v6667_v54 = vcombine.high %v430_v48, %v438_v49 }
 0x2dd   :  { %8238 = vrsqrt.f32 %v300_v55 }
 0x2e7   :  { %v8239_v62 = vpop.eup %8238 }
 0x2e8   :  { %v302_v1 = vmul.f32 %v8239_v62, %v8787_v60  ;;  %v303_v2 = vmul.f32 %v8239_v62, %v8790_v61  ;;  %v6587_v60 = vcombine.high %v350_v27, %v358_v7  ;;  %v374_v61 = vld [vmem:[#allocation12 + $0x150] sm:$0xff]  ;;  %v6666_v62 = vcombine.low %v430_v48, %v438_v49  ;;  %v551_v48 = vld [vmem:[#allocation12 + $0x6d8] sm:$0xff] }
 0x2e9   :  { %v6603_v20 = vcombine.high %v366_v14, %v374_v61  ;;  %v6602_v26 = vcombine.low %v366_v14, %v374_v61  ;;  %v486_v14 = vld [vmem:[#allocation12 + $0x4d0] sm:$0xff] }
 0x2ea   :  { %v315_v3 = vmul.f32 %v308_v58, %v302_v1  ;;  %v316_v4 = vmul.f32 %v312_v59, %v303_v2  ;;  %v447_v58 = vld [vmem:[#allocation12 + $0x398] sm:$0xff]  ;;  %v462_v2 = vld [vmem:[#allocation12 + $0x410] sm:$0xff]  ;;  %v6715_v17 = vcombine.high %v478_v28, %v486_v14  ;;  %v6714_v23 = vcombine.low %v478_v28, %v486_v14  ;;  %v345_v28 = vld [vmem:[#allocation12 + $0x68] sm:$0xff] }
 0x2eb   :  { %v455_v59 = vld [vmem:[#allocation12 + $0x3d8] sm:$0xff] }
 0x2ec   :  { %v328_v5 = vadd.f32 %v321_v63, %v315_v3  ;;  %v329_v6 = vadd.f32 %v325_v0, %v316_v4  ;;  %v6683_v0 = vcombine.high %v446_v56, %v454_v57  ;;  %v6685_v1 = vcombine.high %v447_v58, %v455_v59  ;;  %v470_v3 = vld [vmem:[#allocation12 + $0x450] sm:$0xff]  ;;  %v463_v4 = vld [vmem:[#allocation12 + $0x418] sm:$0xff] }
 0x2ed   :  { %v6684_v27 = vcombine.low %v447_v58, %v455_v59  ;;  %v6699_v7 = vcombine.high %v462_v2, %v470_v3  ;;  %v6698_v61 = vcombine.low %v462_v2, %v470_v3  ;;  %v583_v2 = vld [vmem:[#allocation12 + $0x7d8] sm:$0xff] }
 0x2ee   :  { %v8802_v11 = vpack.c.bf16 %v328_v5, %v328_v5  ;;  %v8804_v13 = vpack.c.bf16 %v329_v6, %v329_v6  ;;  %v471_v5 = vld [vmem:[#allocation12 + $0x458] sm:$0xff]  ;;  %v6682_v6 = vcombine.low %v446_v56, %v454_v57 }
 0x2ef   :  { %v6701_v8 = vcombine.high %v463_v4, %v471_v5  ;;  %v6700_v16 = vcombine.low %v463_v4, %v471_v5  ;;  %v567_v56 = vld [vmem:[#allocation12 + $0x758] sm:$0xff] }
 0x2f0   :  { %1984 = vmatprep.mubr.bf16.mxu1 %v8804_v13  ;;  %2025 = vmatprep.mubr.bf16.mxu0 %v8804_v13 }
 0x2f1   :  { %1985 = vmatmul.mubr.bf16.vlgmr.msra.gmra.mrb[0].mxu1 %v8802_v11  ;;  %2026 = vmatmul.mubr.bf16.vlgmr.msra.gmra.mrb[4].mxu0 %v8802_v11 }
 0x2f2   :  { %2035 = vmatpush1.bf16.msra.mxu1 %v6570_v50  ;;  %2076 = vmatpush1.bf16.msra.mxu0 %v6572_v51  ;;  %v431_v50 = vld [vmem:[#allocation12 + $0x318] sm:$0xff] }
 0x2f3   :  { %2066 = vmatprep.mubr.bf16.mxu1 %v8804_v13  ;;  %2107 = vmatprep.mubr.bf16.mxu0 %v8804_v13  ;;  %v439_v51 = vld [vmem:[#allocation12 + $0x358] sm:$0xff] }
 0x2f4   :  { %2036 = vmatprep.subr.bf16.mxu1 %v6587_v60  ;;  %2077 = vmatprep.subr.bf16.mxu0 %v6589_v15  ;;  %v6669_v55 = vcombine.high %v431_v50, %v439_v51  ;;  %v6668_v63 = vcombine.low %v431_v50, %v439_v51  ;;  %v479_v60 = vld [vmem:[#allocation12 + $0x498] sm:$0xff] }
 0x2f5   :  { %v487_v15 = vld [vmem:[#allocation12 + $0x4d8] sm:$0xff] }
 0x2f6   :  { %2037 = vmatpush1.bf16.msra.mxu1 %v6586_v18  ;;  %2078 = vmatpush1.bf16.msra.mxu0 %v6588_v19  ;;  %v6717_v18 = vcombine.high %v479_v60, %v487_v15  ;;  %v494_v19 = vld [vmem:[#allocation12 + $0x510] sm:$0xff]  ;;  %v6716_v24 = vcombine.low %v479_v60, %v487_v15 }
 0x2f7   :  { %2038 = vmatprep.subr.bf16.mxu1 %v6603_v20  ;;  %2079 = vmatprep.subr.bf16.mxu0 %v6605_v21  ;;  %v502_v20 = vld [vmem:[#allocation12 + $0x550] sm:$0xff]  ;;  %v495_v21 = vld [vmem:[#allocation12 + $0x518] sm:$0xff] }
 0x2f8   :  { %v6731_v25 = vcombine.high %v494_v19, %v502_v20  ;;  %v6730_v33 = vcombine.low %v494_v19, %v502_v20  ;;  %v6732_v34 = vcombine.low %v495_v21, %v503_v22  ;;  %v361_v19 = vld [vmem:[#allocation12 + $0xe8] sm:$0xff] }
 0x2fa   :  { %2039 = vmatpush1.bf16.msra.mxu1 %v6602_v26  ;;  %2080 = vmatpush1.bf16.msra.mxu0 %v6604_v29  ;;  %v6733_v26 = vcombine.high %v495_v21, %v503_v22  ;;  %v510_v29 = vld [vmem:[#allocation12 + $0x590] sm:$0xff] }
 0x2fb   :  { %2040 = vmatprep.subr.bf16.mxu1 %v6619_v30  ;;  %2081 = vmatprep.subr.bf16.mxu0 %v6621_v31  ;;  %v518_v30 = vld [vmem:[#allocation12 + $0x5d0] sm:$0xff]  ;;  %v511_v31 = vld [vmem:[#allocation12 + $0x598] sm:$0xff] }
 0x2fc   :  { %v6747_v35 = vcombine.high %v510_v29, %v518_v30  ;;  %v6746_v41 = vcombine.low %v510_v29, %v518_v30  ;;  %v6748_v42 = vcombine.low %v511_v31, %v519_v32  ;;  %v377_v29 = vld [vmem:[#allocation12 + $0x168] sm:$0xff] }
 0x2fe   :  { %2041 = vmatpush1.bf16.msra.mxu1 %v6618_v36  ;;  %2082 = vmatpush1.bf16.msra.mxu0 %v6620_v37  ;;  %v6749_v36 = vcombine.high %v511_v31, %v519_v32  ;;  %v526_v37 = vld [vmem:[#allocation12 + $0x610] sm:$0xff] }
 0x2ff   :  { %2042 = vmatprep.subr.bf16.mxu1 %v6635_v38  ;;  %2083 = vmatprep.subr.bf16.mxu0 %v6637_v39  ;;  %v534_v38 = vld [vmem:[#allocation12 + $0x650] sm:$0xff]  ;;  %v527_v39 = vld [vmem:[#allocation12 + $0x618] sm:$0xff] }
 0x300   :  { %v6763_v43 = vcombine.high %v526_v37, %v534_v38  ;;  %v6762_v49 = vcombine.low %v526_v37, %v534_v38  ;;  %v6764_v50 = vcombine.low %v527_v39, %v535_v40  ;;  %v393_v37 = vld [vmem:[#allocation12 + $0x1e8] sm:$0xff] }
 0x302   :  { %2043 = vmatpush1.bf16.msra.mxu1 %v6634_v44  ;;  %2084 = vmatpush1.bf16.msra.mxu0 %v6636_v45  ;;  %v6765_v44 = vcombine.high %v527_v39, %v535_v40  ;;  %v542_v45 = vld [vmem:[#allocation12 + $0x690] sm:$0xff] }
 0x303   :  { %2044 = vmatprep.subr.bf16.mxu1 %v6651_v46  ;;  %2085 = vmatprep.subr.bf16.mxu0 %v6653_v47  ;;  %v550_v46 = vld [vmem:[#allocation12 + $0x6d0] sm:$0xff]  ;;  %v543_v47 = vld [vmem:[#allocation12 + $0x698] sm:$0xff] }
 0x304   :  { %v6779_v51 = vcombine.high %v542_v45, %v550_v46  ;;  %v6778_v57 = vcombine.low %v542_v45, %v550_v46  ;;  %v6780_v58 = vcombine.low %v543_v47, %v551_v48  ;;  %v409_v45 = vld [vmem:[#allocation12 + $0x268] sm:$0xff] }
 0x306   :  { %2045 = vmatpush1.bf16.msra.mxu1 %v6650_v52  ;;  %2086 = vmatpush1.bf16.msra.mxu0 %v6652_v53  ;;  %v6781_v52 = vcombine.high %v543_v47, %v551_v48  ;;  %v558_v53 = vld [vmem:[#allocation12 + $0x710] sm:$0xff] }
 0x307   :  { %2046 = vmatprep.subr.bf16.mxu1 %v6667_v54  ;;  %2087 = vmatprep.subr.bf16.mxu0 %v6669_v55  ;;  %v566_v54 = vld [vmem:[#allocation12 + $0x750] sm:$0xff]  ;;  %v559_v55 = vld [vmem:[#allocation12 + $0x718] sm:$0xff] }
 0x308   :  { %v6795_v59 = vcombine.high %v558_v53, %v566_v54  ;;  %v6794_v3 = vcombine.low %v558_v53, %v566_v54  ;;  %v6796_v4 = vcombine.low %v559_v55, %v567_v56  ;;  %v425_v53 = vld [vmem:[#allocation12 + $0x2e8] sm:$0xff] }
 0x30a   :  { %2047 = vmatpush1.bf16.msra.mxu1 %v6666_v62  ;;  %2088 = vmatpush1.bf16.msra.mxu0 %v6668_v63  ;;  %v6797_v62 = vcombine.high %v559_v55, %v567_v56  ;;  %v574_v63 = vld [vmem:[#allocation12 + $0x790] sm:$0xff] }
 0x30b   :  { %2048 = vmatprep.subr.bf16.mxu1 %v6683_v0  ;;  %2089 = vmatprep.subr.bf16.mxu0 %v6685_v1  ;;  %v582_v0 = vld [vmem:[#allocation12 + $0x7d0] sm:$0xff]  ;;  %v575_v1 = vld [vmem:[#allocation12 + $0x798] sm:$0xff] }
 0x30c   :  { %v6811_v5 = vcombine.high %v574_v63, %v582_v0  ;;  %v6810_v14 = vcombine.low %v574_v63, %v582_v0  ;;  %v6812_v60 = vcombine.low %v575_v1, %v583_v2  ;;  %v441_v63 = vld [vmem:[#allocation12 + $0x368] sm:$0xff] }
 0x30e   :  { %2049 = vmatpush1.bf16.msra.mxu1 %v6682_v6  ;;  %2090 = vmatpush1.bf16.msra.mxu0 %v6684_v27  ;;  %v6813_v6 = vcombine.high %v575_v1, %v583_v2  ;;  %v336_v27 = vld [vmem:[#allocation12 + $0x20] sm:$0xff] }
 0x30f   :  { %2050 = vmatprep.subr.bf16.mxu1 %v6699_v7  ;;  %2091 = vmatprep.subr.bf16.mxu0 %v6701_v8  ;;  %v344_v7 = vld [vmem:[#allocation12 + $0x60] sm:$0xff]  ;;  %v337_v8 = vld [vmem:[#allocation12 + $0x28] sm:$0xff] }
 0x310   :  { %v6575_v15 = vcombine.high %v336_v27, %v344_v7  ;;  %v6574_v20 = vcombine.low %v336_v27, %v344_v7  ;;  %v6576_v21 = vcombine.low %v337_v8, %v345_v28  ;;  %v457_v27 = vld [vmem:[#allocation12 + $0x3e8] sm:$0xff] }
 0x312   :  { %2051 = vmatpush1.bf16.msra.mxu1 %v6698_v61  ;;  %2092 = vmatpush1.bf16.msra.mxu0 %v6700_v16  ;;  %v6577_v61 = vcombine.high %v337_v8, %v345_v28  ;;  %v352_v16 = vld [vmem:[#allocation12 + $0xa0] sm:$0xff] }
 0x313   :  { %2052 = vmatprep.subr.bf16.mxu1 %v6715_v17  ;;  %2093 = vmatprep.subr.bf16.mxu0 %v6717_v18  ;;  %v360_v17 = vld [vmem:[#allocation12 + $0xe0] sm:$0xff]  ;;  %v353_v18 = vld [vmem:[#allocation12 + $0xa8] sm:$0xff] }
 0x314   :  { %v6591_v22 = vcombine.high %v352_v16, %v360_v17  ;;  %v6590_v30 = vcombine.low %v352_v16, %v360_v17  ;;  %v6592_v31 = vcombine.low %v353_v18, %v361_v19  ;;  %v473_v16 = vld [vmem:[#allocation12 + $0x468] sm:$0xff] }
 0x316   :  { %2053 = vmatpush1.bf16.msra.mxu1 %v6714_v23  ;;  %2094 = vmatpush1.bf16.msra.mxu0 %v6716_v24  ;;  %v6593_v23 = vcombine.high %v353_v18, %v361_v19  ;;  %v368_v24 = vld [vmem:[#allocation12 + $0x120] sm:$0xff] }
 0x317   :  { %2054 = vmatprep.subr.bf16.mxu1 %v6731_v25  ;;  %2095 = vmatprep.subr.bf16.mxu0 %v6733_v26  ;;  %v376_v25 = vld [vmem:[#allocation12 + $0x160] sm:$0xff]  ;;  %v369_v26 = vld [vmem:[#allocation12 + $0x128] sm:$0xff] }
 0x318   :  { %v6607_v32 = vcombine.high %v368_v24, %v376_v25  ;;  %v6606_v38 = vcombine.low %v368_v24, %v376_v25  ;;  %v6608_v39 = vcombine.low %v369_v26, %v377_v29  ;;  %v489_v24 = vld [vmem:[#allocation12 + $0x4e8] sm:$0xff] }
 0x31a   :  { %2055 = vmatpush1.bf16.msra.mxu1 %v6730_v33  ;;  %2096 = vmatpush1.bf16.msra.mxu0 %v6732_v34  ;;  %v6609_v33 = vcombine.high %v369_v26, %v377_v29  ;;  %v384_v34 = vld [vmem:[#allocation12 + $0x1a0] sm:$0xff] }
 0x31b   :  { %2056 = vmatprep.subr.bf16.mxu1 %v6747_v35  ;;  %2097 = vmatprep.subr.bf16.mxu0 %v6749_v36  ;;  %v392_v35 = vld [vmem:[#allocation12 + $0x1e0] sm:$0xff]  ;;  %v385_v36 = vld [vmem:[#allocation12 + $0x1a8] sm:$0xff] }
 0x31c   :  { %v6623_v40 = vcombine.high %v384_v34, %v392_v35  ;;  %v6622_v46 = vcombine.low %v384_v34, %v392_v35  ;;  %v6624_v47 = vcombine.low %v385_v36, %v393_v37  ;;  %v505_v34 = vld [vmem:[#allocation12 + $0x568] sm:$0xff] }
 0x31e   :  { %2057 = vmatpush1.bf16.msra.mxu1 %v6746_v41  ;;  %2098 = vmatpush1.bf16.msra.mxu0 %v6748_v42  ;;  %v6625_v41 = vcombine.high %v385_v36, %v393_v37  ;;  %v400_v42 = vld [vmem:[#allocation12 + $0x220] sm:$0xff] }
 0x31f   :  { %2058 = vmatprep.subr.bf16.mxu1 %v6763_v43  ;;  %2099 = vmatprep.subr.bf16.mxu0 %v6765_v44  ;;  %v408_v43 = vld [vmem:[#allocation12 + $0x260] sm:$0xff]  ;;  %v401_v44 = vld [vmem:[#allocation12 + $0x228] sm:$0xff] }
 0x320   :  { %v6639_v48 = vcombine.high %v400_v42, %v408_v43  ;;  %v6638_v54 = vcombine.low %v400_v42, %v408_v43  ;;  %v6640_v55 = vcombine.low %v401_v44, %v409_v45  ;;  %v521_v42 = vld [vmem:[#allocation12 + $0x5e8] sm:$0xff] }
 0x322   :  { %2059 = vmatpush1.bf16.msra.mxu1 %v6762_v49  ;;  %2100 = vmatpush1.bf16.msra.mxu0 %v6764_v50  ;;  %v6641_v49 = vcombine.high %v401_v44, %v409_v45  ;;  %v416_v50 = vld [vmem:[#allocation12 + $0x2a0] sm:$0xff] }
 0x323   :  { %2060 = vmatprep.subr.bf16.mxu1 %v6779_v51  ;;  %2101 = vmatprep.subr.bf16.mxu0 %v6781_v52  ;;  %v424_v51 = vld [vmem:[#allocation12 + $0x2e0] sm:$0xff]  ;;  %v417_v52 = vld [vmem:[#allocation12 + $0x2a8] sm:$0xff] }
 0x324   :  { %v6655_v56 = vcombine.high %v416_v50, %v424_v51  ;;  %v6654_v0 = vcombine.low %v416_v50, %v424_v51  ;;  %v6656_v1 = vcombine.low %v417_v52, %v425_v53  ;;  %v537_v50 = vld [vmem:[#allocation12 + $0x668] sm:$0xff] }
 0x326   :  { %2061 = vmatpush1.bf16.msra.mxu1 %v6778_v57  ;;  %2102 = vmatpush1.bf16.msra.mxu0 %v6780_v58  ;;  %v6657_v57 = vcombine.high %v417_v52, %v425_v53  ;;  %v432_v58 = vld [vmem:[#allocation12 + $0x320] sm:$0xff] }
 0x327   :  { %2062 = vmatprep.subr.bf16.mxu1 %v6795_v59  ;;  %2103 = vmatprep.subr.bf16.mxu0 %v6797_v62  ;;  %v440_v59 = vld [vmem:[#allocation12 + $0x360] sm:$0xff]  ;;  %v433_v62 = vld [vmem:[#allocation12 + $0x328] sm:$0xff] }
 0x328   :  { %v6671_v2 = vcombine.high %v432_v58, %v440_v59  ;;  %v6670_v7 = vcombine.low %v432_v58, %v440_v59  ;;  %v6672_v8 = vcombine.low %v433_v62, %v441_v63  ;;  %v553_v58 = vld [vmem:[#allocation12 + $0x6e8] sm:$0xff] }
 0x32a   :  { %2063 = vmatpush1.bf16.msra.mxu1 %v6794_v3  ;;  %2104 = vmatpush1.bf16.msra.mxu0 %v6796_v4  ;;  %v6673_v3 = vcombine.high %v433_v62, %v441_v63  ;;  %v448_v4 = vld [vmem:[#allocation12 + $0x3a0] sm:$0xff] }
 0x32b   :  { %2064 = vmatprep.subr.bf16.mxu1 %v6811_v5  ;;  %2105 = vmatprep.subr.bf16.mxu0 %v6813_v6  ;;  %v456_v5 = vld [vmem:[#allocation12 + $0x3e0] sm:$0xff]  ;;  %v449_v6 = vld [vmem:[#allocation12 + $0x3a8] sm:$0xff] }
 0x32c   :  { %v6687_v28 = vcombine.high %v448_v4, %v456_v5  ;;  %v6686_v17 = vcombine.low %v448_v4, %v456_v5  ;;  %v6688_v18 = vcombine.low %v449_v6, %v457_v27  ;;  %v569_v4 = vld [vmem:[#allocation12 + $0x768] sm:$0xff] }
 0x32e   :  { %2065 = vmatpush1.bf16.msra.mxu1 %v6810_v14  ;;  %2106 = vmatpush1.bf16.msra.mxu0 %v6812_v60  ;;  %v6689_v14 = vcombine.high %v449_v6, %v457_v27  ;;  %v464_v60 = vld [vmem:[#allocation12 + $0x420] sm:$0xff] }
 0x32f   :  { %2116 = vmatprep.subr.bf16.mxu1 %v6575_v15  ;;  %2157 = vmatprep.subr.bf16.mxu0 %v6577_v61  ;;  %v472_v15 = vld [vmem:[#allocation12 + $0x460] sm:$0xff]  ;;  %v465_v61 = vld [vmem:[#allocation12 + $0x428] sm:$0xff] }
 0x330   :  { %v6703_v19 = vcombine.high %v464_v60, %v472_v15  ;;  %v6702_v25 = vcombine.low %v464_v60, %v472_v15  ;;  %v6704_v26 = vcombine.low %v465_v61, %v473_v16  ;;  %v585_v60 = vld [vmem:[#allocation12 + $0x7e8] sm:$0xff] }
 0x331   :  { %2067 = vmatmul.mubr.bf16.vlgmr.msra.gmra.mrb[4].mxu1 %v8802_v11  ;;  %2108 = vmatmul.mubr.bf16.vlgmr.msra.gmra.mrb[8].mxu0 %v8802_v11 }
 0x332   :  { %2117 = vmatpush1.bf16.msra.mxu1 %v6574_v20  ;;  %2148 = vmatprep.mubr.bf16.mxu1 %v8804_v13  ;;  %v6705_v20 = vcombine.high %v465_v61, %v473_v16 }
 0x333   :  { %2158 = vmatpush1.bf16.msra.mxu0 %v6576_v21  ;;  %2189 = vmatprep.mubr.bf16.mxu0 %v8804_v13  ;;  %v480_v21 = vld [vmem:[#allocation12 + $0x4a0] sm:$0xff] }
 0x334   :  { %2118 = vmatprep.subr.bf16.mxu1 %v6591_v22  ;;  %2159 = vmatprep.subr.bf16.mxu0 %v6593_v23  ;;  %v488_v22 = vld [vmem:[#allocation12 + $0x4e0] sm:$0xff]  ;;  %v481_v23 = vld [vmem:[#allocation12 + $0x4a8] sm:$0xff] }
 0x335   :  { %v6719_v29 = vcombine.high %v480_v21, %v488_v22  ;;  %v6718_v35 = vcombine.low %v480_v21, %v488_v22  ;;  %v6720_v36 = vcombine.low %v481_v23, %v489_v24  ;;  %v347_v21 = vld [vmem:[#allocation12 + $0x78] sm:$0xff] }
 0x336   :  { %2119 = vmatpush1.bf16.msra.mxu1 %v6590_v30  ;;  %v6721_v30 = vcombine.high %v481_v23, %v489_v24 }
 0x337   :  { %2160 = vmatpush1.bf16.msra.mxu0 %v6592_v31  ;;  %2120 = vmatprep.subr.bf16.mxu1 %v6607_v32  ;;  %v496_v31 = vld [vmem:[#allocation12 + $0x520] sm:$0xff] }
 0x338   :  { %2161 = vmatprep.subr.bf16.mxu0 %v6609_v33  ;;  %v504_v32 = vld [vmem:[#allocation12 + $0x560] sm:$0xff]  ;;  %v497_v33 = vld [vmem:[#allocation12 + $0x528] sm:$0xff] }
 0x339   :  { %v6735_v37 = vcombine.high %v496_v31, %v504_v32  ;;  %v6734_v43 = vcombine.low %v496_v31, %v504_v32  ;;  %v6736_v44 = vcombine.low %v497_v33, %v505_v34  ;;  %v355_v31 = vld [vmem:[#allocation12 + $0xb8] sm:$0xff] }
 0x33a   :  { %2121 = vmatpush1.bf16.msra.mxu1 %v6606_v38  ;;  %v6737_v38 = vcombine.high %v497_v33, %v505_v34  ;;  %v363_v32 = vld [vmem:[#allocation12 + $0xf8] sm:$0xff] }
 0x33b   :  { %2162 = vmatpush1.bf16.msra.mxu0 %v6608_v39  ;;  %2122 = vmatprep.subr.bf16.mxu1 %v6623_v40  ;;  %v512_v39 = vld [vmem:[#allocation12 + $0x5a0] sm:$0xff] }
 0x33c   :  { %2163 = vmatprep.subr.bf16.mxu0 %v6625_v41  ;;  %v520_v40 = vld [vmem:[#allocation12 + $0x5e0] sm:$0xff]  ;;  %v513_v41 = vld [vmem:[#allocation12 + $0x5a8] sm:$0xff] }
 0x33d   :  { %v6751_v45 = vcombine.high %v512_v39, %v520_v40  ;;  %v6750_v51 = vcombine.low %v512_v39, %v520_v40  ;;  %v6752_v52 = vcombine.low %v513_v41, %v521_v42  ;;  %v379_v39 = vld [vmem:[#allocation12 + $0x178] sm:$0xff] }
 0x33e   :  { %2123 = vmatpush1.bf16.msra.mxu1 %v6622_v46  ;;  %v6753_v46 = vcombine.high %v513_v41, %v521_v42  ;;  %v6596_v41 = vcombine.low %v355_v31, %v363_v32 }
 0x33f   :  { %2164 = vmatpush1.bf16.msra.mxu0 %v6624_v47  ;;  %2124 = vmatprep.subr.bf16.mxu1 %v6639_v48  ;;  %v528_v47 = vld [vmem:[#allocation12 + $0x620] sm:$0xff] }
 0x340   :  { %2165 = vmatprep.subr.bf16.mxu0 %v6641_v49  ;;  %v536_v48 = vld [vmem:[#allocation12 + $0x660] sm:$0xff]  ;;  %v529_v49 = vld [vmem:[#allocation12 + $0x628] sm:$0xff] }
 0x341   :  { %v6767_v53 = vcombine.high %v528_v47, %v536_v48  ;;  %v6766_v59 = vcombine.low %v528_v47, %v536_v48  ;;  %v6768_v62 = vcombine.low %v529_v49, %v537_v50  ;;  %v395_v47 = vld [vmem:[#allocation12 + $0x1f8] sm:$0xff] }
 0x342   :  { %2125 = vmatpush1.bf16.msra.mxu1 %v6638_v54  ;;  %v6769_v54 = vcombine.high %v529_v49, %v537_v50 }
 0x343   :  { %2166 = vmatpush1.bf16.msra.mxu0 %v6640_v55  ;;  %2126 = vmatprep.subr.bf16.mxu1 %v6655_v56  ;;  %v544_v55 = vld [vmem:[#allocation12 + $0x6a0] sm:$0xff] }
 0x344   :  { %2167 = vmatprep.subr.bf16.mxu0 %v6657_v57  ;;  %v552_v56 = vld [vmem:[#allocation12 + $0x6e0] sm:$0xff]  ;;  %v545_v57 = vld [vmem:[#allocation12 + $0x6a8] sm:$0xff] }
 0x345   :  { %v6783_v63 = vcombine.high %v544_v55, %v552_v56  ;;  %v6782_v5 = vcombine.low %v544_v55, %v552_v56  ;;  %v6784_v6 = vcombine.low %v545_v57, %v553_v58  ;;  %v411_v55 = vld [vmem:[#allocation12 + $0x278] sm:$0xff] }
 0x346   :  { %2127 = vmatpush1.bf16.msra.mxu1 %v6654_v0  ;;  %v6785_v0 = vcombine.high %v545_v57, %v553_v58 }
 0x347   :  { %2168 = vmatpush1.bf16.msra.mxu0 %v6656_v1  ;;  %2128 = vmatprep.subr.bf16.mxu1 %v6671_v2  ;;  %v560_v1 = vld [vmem:[#allocation12 + $0x720] sm:$0xff] }
 0x348   :  { %2169 = vmatprep.subr.bf16.mxu0 %v6673_v3  ;;  %v568_v2 = vld [vmem:[#allocation12 + $0x760] sm:$0xff]  ;;  %v561_v3 = vld [vmem:[#allocation12 + $0x728] sm:$0xff] }
 0x349   :  { %v6799_v27 = vcombine.high %v560_v1, %v568_v2  ;;  %v6798_v15 = vcombine.low %v560_v1, %v568_v2  ;;  %v6800_v61 = vcombine.low %v561_v3, %v569_v4 }
 0x34a   :  { %2129 = vmatpush1.bf16.msra.mxu1 %v6670_v7  ;;  %v6801_v7 = vcombine.high %v561_v3, %v569_v4 }
 0x34b   :  { %2170 = vmatpush1.bf16.msra.mxu0 %v6672_v8  ;;  %2130 = vmatprep.subr.bf16.mxu1 %v6687_v28  ;;  %v576_v8 = vld [vmem:[#allocation12 + $0x7a0] sm:$0xff] }
 0x34c   :  { %2171 = vmatprep.subr.bf16.mxu0 %v6689_v14  ;;  %v584_v28 = vld [vmem:[#allocation12 + $0x7e0] sm:$0xff]  ;;  %v577_v14 = vld [vmem:[#allocation12 + $0x7a8] sm:$0xff] }
 0x34d   :  { %v6815_v16 = vcombine.high %v576_v8, %v584_v28  ;;  %v6814_v22 = vcombine.low %v576_v8, %v584_v28  ;;  %v6816_v23 = vcombine.low %v577_v14, %v585_v60 }
 0x34e   :  { %2131 = vmatpush1.bf16.msra.mxu1 %v6686_v17  ;;  %v6817_v17 = vcombine.high %v577_v14, %v585_v60 }
 0x34f   :  { %2172 = vmatpush1.bf16.msra.mxu0 %v6688_v18  ;;  %2132 = vmatprep.subr.bf16.mxu1 %v6703_v19  ;;  %v338_v18 = vld [vmem:[#allocation12 + $0x30] sm:$0xff] }
 0x350   :  { %2173 = vmatprep.subr.bf16.mxu0 %v6705_v20  ;;  %v346_v19 = vld [vmem:[#allocation12 + $0x70] sm:$0xff]  ;;  %v339_v20 = vld [vmem:[#allocation12 + $0x38] sm:$0xff] }
 0x351   :  { %v6579_v24 = vcombine.high %v338_v18, %v346_v19  ;;  %v6580_v33 = vcombine.low %v339_v20, %v347_v21 }
 0x352   :  { %2133 = vmatpush1.bf16.msra.mxu1 %v6702_v25  ;;  %v6581_v25 = vcombine.high %v339_v20, %v347_v21 }
 0x353   :  { %2174 = vmatpush1.bf16.msra.mxu0 %v6704_v26  ;;  %2134 = vmatprep.subr.bf16.mxu1 %v6719_v29  ;;  %v354_v26 = vld [vmem:[#allocation12 + $0xb0] sm:$0xff] }
 0x354   :  { %2175 = vmatprep.subr.bf16.mxu0 %v6721_v30  ;;  %v362_v29 = vld [vmem:[#allocation12 + $0xf0] sm:$0xff]  ;;  %v6578_v30 = vcombine.low %v338_v18, %v346_v19 }
 0x355   :  { %v6595_v34 = vcombine.high %v354_v26, %v362_v29  ;;  %v6594_v40 = vcombine.low %v354_v26, %v362_v29 }
 0x356   :  { %2135 = vmatpush1.bf16.msra.mxu1 %v6718_v35  ;;  %v370_v35 = vld [vmem:[#allocation12 + $0x130] sm:$0xff] }
 0x357   :  { %2176 = vmatpush1.bf16.msra.mxu0 %v6720_v36  ;;  %2136 = vmatprep.subr.bf16.mxu1 %v6735_v37  ;;  %v378_v36 = vld [vmem:[#allocation12 + $0x170] sm:$0xff]  ;;  %v6597_v37 = vcombine.high %v355_v31, %v363_v32 }
 0x358   :  { %2177 = vmatprep.subr.bf16.mxu0 %v6737_v38  ;;  %v371_v38 = vld [vmem:[#allocation12 + $0x138] sm:$0xff]  ;;  %v6611_v42 = vcombine.high %v370_v35, %v378_v36  ;;  %v6610_v48 = vcombine.low %v370_v35, %v378_v36  ;;  %v482_v32 = vld [vmem:[#allocation12 + $0x4b0] sm:$0xff] }
 0x359   :  { %v6612_v49 = vcombine.low %v371_v38, %v379_v39  ;;  %v491_v35 = vld [vmem:[#allocation12 + $0x4f8] sm:$0xff] }
 0x35a   :  { %2137 = vmatpush1.bf16.msra.mxu1 %v6734_v43  ;;  %v6613_v43 = vcombine.high %v371_v38, %v379_v39 }
 0x35b   :  { %2178 = vmatpush1.bf16.msra.mxu0 %v6736_v44  ;;  %2138 = vmatprep.subr.bf16.mxu1 %v6751_v45  ;;  %v386_v44 = vld [vmem:[#allocation12 + $0x1b0] sm:$0xff] }
 0x35c   :  { %2179 = vmatprep.subr.bf16.mxu0 %v6753_v46  ;;  %v394_v45 = vld [vmem:[#allocation12 + $0x1f0] sm:$0xff]  ;;  %v387_v46 = vld [vmem:[#allocation12 + $0x1b8] sm:$0xff] }
 0x35d   :  { %v6627_v50 = vcombine.high %v386_v44, %v394_v45  ;;  %v6628_v56 = vcombine.low %v387_v46, %v395_v47 }
 0x35e   :  { %2139 = vmatpush1.bf16.msra.mxu1 %v6750_v51  ;;  %v6629_v51 = vcombine.high %v387_v46, %v395_v47 }
 0x35f   :  { %2180 = vmatpush1.bf16.msra.mxu0 %v6752_v52  ;;  %2140 = vmatprep.subr.bf16.mxu1 %v6767_v53  ;;  %v402_v52 = vld [vmem:[#allocation12 + $0x230] sm:$0xff] }
 0x360   :  { %2181 = vmatprep.subr.bf16.mxu0 %v6769_v54  ;;  %v410_v53 = vld [vmem:[#allocation12 + $0x270] sm:$0xff]  ;;  %v403_v54 = vld [vmem:[#allocation12 + $0x238] sm:$0xff] }
 0x361   :  { %v6643_v57 = vcombine.high %v402_v52, %v410_v53  ;;  %v6645_v58 = vcombine.high %v403_v54, %v411_v55  ;;  %v6642_v1 = vcombine.low %v402_v52, %v410_v53  ;;  %v6644_v2 = vcombine.low %v403_v54, %v411_v55 }
 0x362   :  { %2141 = vmatpush1.bf16.msra.mxu1 %v6766_v59  ;;  %v418_v59 = vld [vmem:[#allocation12 + $0x2b0] sm:$0xff] }
 0x363   :  { %2182 = vmatpush1.bf16.msra.mxu0 %v6768_v62  ;;  %2142 = vmatprep.subr.bf16.mxu1 %v6783_v63  ;;  %v426_v62 = vld [vmem:[#allocation12 + $0x2f0] sm:$0xff]  ;;  %v419_v63 = vld [vmem:[#allocation12 + $0x2b8] sm:$0xff] }
 0x364   :  { %2183 = vmatprep.subr.bf16.mxu0 %v6785_v0  ;;  %v427_v0 = vld [vmem:[#allocation12 + $0x2f8] sm:$0xff]  ;;  %v6659_v3 = vcombine.high %v418_v59, %v426_v62  ;;  %v6658_v8 = vcombine.low %v418_v59, %v426_v62 }
 0x365   :  { %v6661_v4 = vcombine.high %v419_v63, %v427_v0  ;;  %v6660_v28 = vcombine.low %v419_v63, %v427_v0 }
 0x366   :  { %2143 = vmatpush1.bf16.msra.mxu1 %v6782_v5  ;;  %v434_v5 = vld [vmem:[#allocation12 + $0x330] sm:$0xff] }
 0x367   :  { %2184 = vmatpush1.bf16.msra.mxu0 %v6784_v6  ;;  %2144 = vmatprep.subr.bf16.mxu1 %v6799_v27  ;;  %v442_v6 = vld [vmem:[#allocation12 + $0x370] sm:$0xff]  ;;  %v435_v27 = vld [vmem:[#allocation12 + $0x338] sm:$0xff] }
 0x368   :  { %2185 = vmatprep.subr.bf16.mxu0 %v6801_v7  ;;  %v443_v7 = vld [vmem:[#allocation12 + $0x378] sm:$0xff]  ;;  %v6675_v14 = vcombine.high %v434_v5, %v442_v6  ;;  %v6674_v18 = vcombine.low %v434_v5, %v442_v6 }
 0x369   :  { %v6677_v60 = vcombine.high %v435_v27, %v443_v7  ;;  %v6676_v19 = vcombine.low %v435_v27, %v443_v7 }
 0x36a   :  { %2145 = vmatpush1.bf16.msra.mxu1 %v6798_v15  ;;  %v450_v15 = vld [vmem:[#allocation12 + $0x3b0] sm:$0xff] }
 0x36b   :  { %2186 = vmatpush1.bf16.msra.mxu0 %v6800_v61  ;;  %2146 = vmatprep.subr.bf16.mxu1 %v6815_v16  ;;  %v458_v61 = vld [vmem:[#allocation12 + $0x3f0] sm:$0xff]  ;;  %v451_v16 = vld [vmem:[#allocation12 + $0x3b8] sm:$0xff] }
 0x36c   :  { %2187 = vmatprep.subr.bf16.mxu0 %v6817_v17  ;;  %v459_v17 = vld [vmem:[#allocation12 + $0x3f8] sm:$0xff]  ;;  %v6691_v20 = vcombine.high %v450_v15, %v458_v61  ;;  %v6690_v26 = vcombine.low %v450_v15, %v458_v61 }
 0x36d   :  { %v6693_v21 = vcombine.high %v451_v16, %v459_v17  ;;  %v6692_v29 = vcombine.low %v451_v16, %v459_v17 }
 0x36e   :  { %2147 = vmatpush1.bf16.msra.mxu1 %v6814_v22  ;;  %v466_v22 = vld [vmem:[#allocation12 + $0x430] sm:$0xff] }
 0x36f   :  { %2188 = vmatpush1.bf16.msra.mxu0 %v6816_v23  ;;  %2198 = vmatprep.subr.bf16.mxu1 %v6579_v24  ;;  %v474_v23 = vld [vmem:[#allocation12 + $0x470] sm:$0xff]  ;;  %v467_v24 = vld [vmem:[#allocation12 + $0x438] sm:$0xff] }
 0x370   :  { %2239 = vmatprep.subr.bf16.mxu0 %v6581_v25  ;;  %v475_v25 = vld [vmem:[#allocation12 + $0x478] sm:$0xff]  ;;  %v6706_v36 = vcombine.low %v466_v22, %v474_v23 }
 0x371   :  { %2149 = vmatmul.mubr.bf16.vlgmr.msra.gmra.mrb[8].mxu1 %v8802_v11  ;;  %v6709_v31 = vcombine.high %v467_v24, %v475_v25 }
 0x372   :  { %2190 = vmatmul.mubr.bf16.vlgmr.msra.gmra.mrb[12].mxu0 %v8802_v11  ;;  %2199 = vmatpush1.bf16.msra.mxu1 %v6578_v30  ;;  %v6707_v30 = vcombine.high %v466_v22, %v474_v23 }
 0x373   :  { %2230 = vmatprep.mubr.bf16.mxu1 %v8804_v13  ;;  %2240 = vmatpush1.bf16.msra.mxu0 %v6580_v33  ;;  %v490_v33 = vld [vmem:[#allocation12 + $0x4f0] sm:$0xff] }
 0x374   :  { %2271 = vmatprep.mubr.bf16.mxu0 %v8804_v13  ;;  %2200 = vmatprep.subr.bf16.mxu1 %v6595_v34  ;;  %v6626_v13 = vcombine.low %v386_v44, %v394_v45  ;;  %v483_v34 = vld [vmem:[#allocation12 + $0x4b8] sm:$0xff]  ;;  %v6723_v38 = vcombine.high %v482_v32, %v490_v33  ;;  %v6722_v44 = vcombine.low %v482_v32, %v490_v33 }
 0x375   :  { %2241 = vmatprep.subr.bf16.mxu0 %v6597_v37  ;;  %v6708_v37 = vcombine.low %v467_v24, %v475_v25  ;;  %v6725_v39 = vcombine.high %v483_v34, %v491_v35  ;;  %v6724_v45 = vcombine.low %v483_v34, %v491_v35 }
 0x376   :  { %2201 = vmatpush1.bf16.msra.mxu1 %v6594_v40  ;;  %v498_v40 = vld [vmem:[#allocation12 + $0x530] sm:$0xff] }
 0x377   :  { %2242 = vmatpush1.bf16.msra.mxu0 %v6596_v41  ;;  %2202 = vmatprep.subr.bf16.mxu1 %v6611_v42  ;;  %v506_v41 = vld [vmem:[#allocation12 + $0x570] sm:$0xff]  ;;  %v499_v42 = vld [vmem:[#allocation12 + $0x538] sm:$0xff] }
 0x378   :  { %2243 = vmatprep.subr.bf16.mxu0 %v6613_v43  ;;  %v507_v43 = vld [vmem:[#allocation12 + $0x578] sm:$0xff]  ;;  %v6739_v46 = vcombine.high %v498_v40, %v506_v41  ;;  %v6738_v52 = vcombine.low %v498_v40, %v506_v41 }
 0x379   :  { %v6741_v47 = vcombine.high %v499_v42, %v507_v43  ;;  %v6740_v53 = vcombine.low %v499_v42, %v507_v43 }
 0x37a   :  { %2203 = vmatpush1.bf16.msra.mxu1 %v6610_v48  ;;  %v514_v48 = vld [vmem:[#allocation12 + $0x5b0] sm:$0xff] }
 0x37b   :  { %2244 = vmatpush1.bf16.msra.mxu0 %v6612_v49  ;;  %2204 = vmatprep.subr.bf16.mxu1 %v6627_v50  ;;  %v522_v49 = vld [vmem:[#allocation12 + $0x5f0] sm:$0xff]  ;;  %v515_v50 = vld [vmem:[#allocation12 + $0x5b8] sm:$0xff] }
 0x37c   :  { %2245 = vmatprep.subr.bf16.mxu0 %v6629_v51  ;;  %v523_v51 = vld [vmem:[#allocation12 + $0x5f8] sm:$0xff]  ;;  %v6755_v54 = vcombine.high %v514_v48, %v522_v49  ;;  %v6754_v59 = vcombine.low %v514_v48, %v522_v49 }
 0x37d   :  { %v6757_v55 = vcombine.high %v515_v50, %v523_v51  ;;  %v6756_v62 = vcombine.low %v515_v50, %v523_v51 }
 0x37e   :  { %2205 = vmatpush1.bf16.msra.mxu1 %v6626_v13  ;;  %v530_v13 = vld [vmem:[#allocation12 + $0x630] sm:$0xff] }
 0x37f   :  { %2246 = vmatpush1.bf16.msra.mxu0 %v6628_v56  ;;  %2206 = vmatprep.subr.bf16.mxu1 %v6643_v57  ;;  %v538_v56 = vld [vmem:[#allocation12 + $0x670] sm:$0xff]  ;;  %v531_v57 = vld [vmem:[#allocation12 + $0x638] sm:$0xff] }
 0x380   :  { %2247 = vmatprep.subr.bf16.mxu0 %v6645_v58  ;;  %v539_v58 = vld [vmem:[#allocation12 + $0x678] sm:$0xff]  ;;  %v6771_v63 = vcombine.high %v530_v13, %v538_v56  ;;  %v6770_v5 = vcombine.low %v530_v13, %v538_v56  ;;  %v8829_v13 = vsub.s32 2, %v8770_v9 }
 0x381   :  { %v6773_v0 = vcombine.high %v531_v57, %v539_v58  ;;  %v6772_v6 = vcombine.low %v531_v57, %v539_v58  ;;  %v8832_v58 = vsub.s32 3, %v8770_v9 }
 0x382   :  { %2207 = vmatpush1.bf16.msra.mxu1 %v6642_v1  ;;  %v546_v1 = vld [vmem:[#allocation12 + $0x6b0] sm:$0xff] }
 0x383   :  { %2248 = vmatpush1.bf16.msra.mxu0 %v6644_v2  ;;  %2208 = vmatprep.subr.bf16.mxu1 %v6659_v3  ;;  %v554_v2 = vld [vmem:[#allocation12 + $0x6f0] sm:$0xff]  ;;  %v547_v3 = vld [vmem:[#allocation12 + $0x6b8] sm:$0xff] }
 0x384   :  { %2249 = vmatprep.subr.bf16.mxu0 %v6661_v4  ;;  %v555_v4 = vld [vmem:[#allocation12 + $0x6f8] sm:$0xff]  ;;  %v6787_v27 = vcombine.high %v546_v1, %v554_v2  ;;  %v6786_v15 = vcombine.low %v546_v1, %v554_v2 }
 0x385   :  { %v6789_v7 = vcombine.high %v547_v3, %v555_v4  ;;  %v6788_v61 = vcombine.low %v547_v3, %v555_v4  ;;  %v8841_v4 = vsub.s32 5, %v8770_v9 }
 0x386   :  { %2209 = vmatpush1.bf16.msra.mxu1 %v6658_v8  ;;  %v562_v8 = vld [vmem:[#allocation12 + $0x730] sm:$0xff] }
 0x387   :  { %2250 = vmatpush1.bf16.msra.mxu0 %v6660_v28  ;;  %2210 = vmatprep.subr.bf16.mxu1 %v6675_v14  ;;  %v570_v28 = vld [vmem:[#allocation12 + $0x770] sm:$0xff]  ;;  %v563_v14 = vld [vmem:[#allocation12 + $0x738] sm:$0xff] }
 0x388   :  { %2251 = vmatprep.subr.bf16.mxu0 %v6677_v60  ;;  %v571_v60 = vld [vmem:[#allocation12 + $0x778] sm:$0xff]  ;;  %v6803_v16 = vcombine.high %v562_v8, %v570_v28  ;;  %v6802_v22 = vcombine.low %v562_v8, %v570_v28  ;;  %v8845_v8 = vsub.s32 6, %v8770_v9 }
 0x389   :  { %v6805_v17 = vcombine.high %v563_v14, %v571_v60  ;;  %v6804_v23 = vcombine.low %v563_v14, %v571_v60 }
 0x38a   :  { %2211 = vmatpush1.bf16.msra.mxu1 %v6674_v18  ;;  %v578_v18 = vld [vmem:[#allocation12 + $0x7b0] sm:$0xff] }
 0x38b   :  { %2252 = vmatpush1.bf16.msra.mxu0 %v6676_v19  ;;  %2212 = vmatprep.subr.bf16.mxu1 %v6691_v20  ;;  %v586_v19 = vld [vmem:[#allocation12 + $0x7f0] sm:$0xff]  ;;  %v579_v20 = vld [vmem:[#allocation12 + $0x7b8] sm:$0xff] }
 0x38c   :  { %2253 = vmatprep.subr.bf16.mxu0 %v6693_v21  ;;  %v587_v21 = vld [vmem:[#allocation12 + $0x7f8] sm:$0xff]  ;;  %v6819_v24 = vcombine.high %v578_v18, %v586_v19 }
 0x38d   :  { %v6821_v25 = vcombine.high %v579_v20, %v587_v21 }
 0x38e   :  { %2213 = vmatpush1.bf16.msra.mxu1 %v6690_v26  ;;  %v6818_v26 = vcombine.low %v578_v18, %v586_v19 }
 0x38f   :  { %2254 = vmatpush1.bf16.msra.mxu0 %v6692_v29  ;;  %2214 = vmatprep.subr.bf16.mxu1 %v6707_v30  ;;  %v6820_v29 = vcombine.low %v579_v20, %v587_v21 }
 0x390   :  { %2255 = vmatprep.subr.bf16.mxu0 %v6709_v31 }
 0x392   :  { %2215 = vmatpush1.bf16.msra.mxu1 %v6706_v36 }
 0x393   :  { %2256 = vmatpush1.bf16.msra.mxu0 %v6708_v37  ;;  %2216 = vmatprep.subr.bf16.mxu1 %v6723_v38 }
 0x394   :  { %2257 = vmatprep.subr.bf16.mxu0 %v6725_v39 }
 0x396   :  { %2217 = vmatpush1.bf16.msra.mxu1 %v6722_v44 }
 0x397   :  { %2258 = vmatpush1.bf16.msra.mxu0 %v6724_v45  ;;  %2218 = vmatprep.subr.bf16.mxu1 %v6739_v46 }
 0x398   :  { %2259 = vmatprep.subr.bf16.mxu0 %v6741_v47 }
 0x39a   :  { %2219 = vmatpush1.bf16.msra.mxu1 %v6738_v52 }
 0x39b   :  { %2260 = vmatpush1.bf16.msra.mxu0 %v6740_v53  ;;  %2220 = vmatprep.subr.bf16.mxu1 %v6755_v54  ;;  %v588_v53 = vld [vmem:[#allocation14] sm:$0xff] }
 0x39c   :  { %2261 = vmatprep.subr.bf16.mxu0 %v6757_v55  ;;  %v595_v54 = vrot.slane %v588_v53, %v8773_v10  ;;  %v599_v55 = vrot.slane %v588_v53, %v8776_v12  ;;  %v607_v1 = vrot.slane %v588_v53, %v8832_v58 }
 0x39e   :  { %2221 = vmatpush1.bf16.msra.mxu1 %v6754_v59  ;;  %v603_v59 = vrot.slane %v588_v53, %v8829_v13 }
 0x39f   :  { %2262 = vmatpush1.bf16.msra.mxu0 %v6756_v62  ;;  %2222 = vmatprep.subr.bf16.mxu1 %v6771_v63  ;;  %v8836_v62 = vsub.s32 4, %v8770_v9 }
 0x3a0   :  { %2263 = vmatprep.subr.bf16.mxu0 %v6773_v0 }
 0x3a1   :  { %v611_v3 = vrot.slane %v588_v53, %v8836_v62 }
 0x3a2   :  { %2223 = vmatpush1.bf16.msra.mxu1 %v6770_v5 }
 0x3a3   :  { %2264 = vmatpush1.bf16.msra.mxu0 %v6772_v6  ;;  %2224 = vmatprep.subr.bf16.mxu1 %v6787_v27 }
 0x3a4   :  { %2265 = vmatprep.subr.bf16.mxu0 %v6789_v7  ;;  %v615_v7 = vrot.slane %v588_v53, %v8841_v4 }
 0x3a6   :  { %2225 = vmatpush1.bf16.msra.mxu1 %v6786_v15  ;;  %v8848_v15 = vsub.s32 7, %v8770_v9 }
 0x3a7   :  { %2266 = vmatpush1.bf16.msra.mxu0 %v6788_v61  ;;  %2226 = vmatprep.subr.bf16.mxu1 %v6803_v16  ;;  %v619_v61 = vrot.slane %v588_v53, %v8845_v8 }
 0x3a8   :  { %2267 = vmatprep.subr.bf16.mxu0 %v6805_v17  ;;  %v8851_v17 = vld [vmem:[#allocation14 + $0x8] sm:$0xff]  ;;  %v623_v20 = vrot.slane %v588_v53, %v8848_v15 }
 0x3aa   :  { %2227 = vmatpush1.bf16.msra.mxu1 %v6802_v22  ;;  %v627_v22 = vrot.slane %v8851_v17, %v8773_v10 }
 0x3ab   :  { %2268 = vmatpush1.bf16.msra.mxu0 %v6804_v23  ;;  %2228 = vmatprep.subr.bf16.mxu1 %v6819_v24 }
 0x3ac   :  { %2269 = vmatprep.subr.bf16.mxu0 %v6821_v25 }
 0x3ae   :  { %2229 = vmatpush1.bf16.msra.mxu1 %v6818_v26 }
 0x3af   :  { %2270 = vmatpush1.bf16.msra.mxu0 %v6820_v29 }
 0x3b1   :  { %2231 = vmatmul.mubr.bf16.vlgmr.msra.gmra.mrb[12].mxu1 %v8802_v11 }
 0x3b2   :  { %2272 = vmatmul.mubr.bf16.vlgmr.msra.gmra.mrb[16].mxu0 %v8802_v11 }
 0x3c4   :  { %v1986_v30 = vpop.f32.mrb[0].mxu1  ;;  %v2027_v31 = vpop.f32.mrb[4].mxu0 }
 0x3c5   :  { %v1988_v32 = vpop.f32.mrb[1].mxu1  ;;  %v2029_v33 = vpop.f32.mrb[5].mxu0  ;;  %v1987_v56 = vadd.f32 %v1986_v30, %v595_v54  ;;  %v2028_v2 = vadd.f32 %v2027_v31, %v603_v59  ;;  %v639_v54 = vrot.slane %v8851_v17, %v8832_v58 }
 0x3c6   :  { %v1990_v34 = vpop.f32.mrb[2].mxu1  ;;  %v2031_v35 = vpop.f32.mrb[6].mxu0  ;;  %v1989_v57 = vadd.f32 %v1988_v32, %v599_v55  ;;  %v2030_v5 = vadd.f32 %v2029_v33, %v607_v1  ;;  %v631_v32 = vrot.slane %v8851_v17, %v8776_v12 }
 0x3c7   :  { %v1991_v36 = vpop.f32.mrb[3].mxu1  ;;  %v2032_v37 = vpop.f32.mrb[7].mxu0  ;;  %v2296_v63 = vmul.f32 0.70710677, %v1987_v56  ;;  %v2298_v6 = vmul.f32 0.70710677, %v2028_v2 }
 0x3c8   :  { %v2297_v0 = vmul.f32 0.70710677, %v1989_v57  ;;  %v2299_v28 = vmul.f32 0.70710677, %v2030_v5  ;;  %v2280_v9 = vmul.f32 0.5, %v1987_v56  ;;  %v2281_v25 = vmul.f32 0.5, %v1989_v57 }
 0x3c9   :  { %8240 = verf.f32 %v2296_v63 }
 0x3ca   :  { %8242 = verf.f32 %v2297_v0 }
 0x3cb   :  { %8244 = verf.f32 %v2298_v6 }
 0x3cc   :  { %8246 = verf.f32 %v2299_v28 }
 0x3d3   :  { %v8241_v16 = vpop.eup %8240 }
 0x3d4   :  { %v8243_v18 = vpop.eup %8242  ;;  %v2328_v23 = vadd.f32 1.0, %v8241_v16 }
 0x3d5   :  { %v2329_v24 = vadd.f32 1.0, %v8243_v18  ;;  %v8245_v29 = vpop.eup %8244  ;;  %v643_v18 = vrot.slane %v8851_v17, %v8836_v62 }
 0x3d6   :  { %v8858_v33 = vmul.f32 %v2328_v23, %v2280_v9  ;;  %v8247_v35 = vpop.eup %8246  ;;  %v2330_v36 = vadd.f32 1.0, %v8245_v29 }
 0x3d7   :  { %v8860_v34 = vmul.f32 %v2329_v24, %v2281_v25  ;;  %v655_v24 = vrot.slane %v8851_v17, %v8848_v15 }
 0x404   :  { %v2068_v38 = vpop.f32.mrb[4].mxu1  ;;  %v2109_v39 = vpop.f32.mrb[8].mxu0 }
 0x405   :  { %v2070_v40 = vpop.f32.mrb[5].mxu1  ;;  %v2111_v41 = vpop.f32.mrb[9].mxu0  ;;  %v2069_v27 = vadd.f32 %v2068_v38, %v611_v3  ;;  %v2110_v21 = vadd.f32 %v2109_v39, %v619_v61 }
 0x406   :  { %v2072_v42 = vpop.f32.mrb[6].mxu1  ;;  %v2113_v43 = vpop.f32.mrb[10].mxu0  ;;  %v2071_v60 = vadd.f32 %v2070_v40, %v615_v7  ;;  %v2112_v26 = vadd.f32 %v2111_v41, %v623_v20  ;;  %v2364_v41 = vadd.f32 %v8860_v34, %v8858_v33  ;;  %v647_v20 = vrot.slane %v8851_v17, %v8841_v4 }
 0x407   :  { %v2073_v44 = vpop.f32.mrb[7].mxu1  ;;  %v2114_v45 = vpop.f32.mrb[11].mxu0  ;;  %v2300_v14 = vmul.f32 0.70710677, %v2069_v27  ;;  %v2302_v30 = vmul.f32 0.70710677, %v2110_v21  ;;  %v635_v43 = vrot.slane %v8851_v17, %v8829_v13 }
 0x408   :  { %v2301_v19 = vmul.f32 0.70710677, %v2071_v60  ;;  %v2303_v37 = vmul.f32 0.70710677, %v2112_v26  ;;  %v2282_v42 = vmul.f32 0.5, %v2028_v2  ;;  %v2331_v45 = vadd.f32 1.0, %v8247_v35 }
 0x409   :  { %8248 = verf.f32 %v2300_v14  ;;  %v2284_v53 = vmul.f32 0.5, %v2069_v27  ;;  %v2285_v63 = vmul.f32 0.5, %v2071_v60  ;;  %v2286_v28 = vmul.f32 0.5, %v2110_v21 }
 0x40a   :  { %8250 = verf.f32 %v2301_v19  ;;  %v8866_v44 = vmul.f32 %v2330_v36, %v2282_v42  ;;  %v651_v19 = vrot.slane %v8851_v17, %v8845_v8 }
 0x40b   :  { %8252 = verf.f32 %v2302_v30 }
 0x40c   :  { %8254 = verf.f32 %v2303_v37 }
 0x413   :  { %v8249_v38 = vpop.eup %8248 }
 0x444   :  { %v2150_v46 = vpop.f32.mrb[8].mxu1 }
 0x445   :  { %v8822_v47 = vpop.f32.mrb[12].mxu0  ;;  %v2152_v11 = vpop.f32.mrb[9].mxu1  ;;  %v2151_v31 = vadd.f32 %v2150_v46, %v627_v22  ;;  %v2332_v46 = vadd.f32 1.0, %v8249_v38  ;;  %v2287_v22 = vmul.f32 0.5, %v2112_v26 }
 0x446   :  { %v8824_v48 = vpop.f32.mrb[13].mxu0  ;;  %v2154_v49 = vpop.f32.mrb[10].mxu1  ;;  %v2153_v40 = vadd.f32 %v2152_v11, %v631_v32  ;;  %v2192_v11 = vadd.f32 %v8822_v47, %v635_v43 }
 0x447   :  { %v2195_v50 = vpop.f32.mrb[14].mxu0  ;;  %v2155_v51 = vpop.f32.mrb[11].mxu1  ;;  %v2304_v39 = vmul.f32 0.70710677, %v2151_v31  ;;  %v8874_v56 = vmul.f32 %v2332_v46, %v2284_v53  ;;  %v2194_v2 = vadd.f32 %v8824_v48, %v639_v54  ;;  %v2288_v23 = vmul.f32 0.5, %v2151_v31 }
 0x448   :  { %v2196_v52 = vpop.f32.mrb[15].mxu0  ;;  %v8251_v49 = vpop.eup %8250  ;;  %v2305_v50 = vmul.f32 0.70710677, %v2153_v40  ;;  %v2283_v51 = vmul.f32 0.5, %v2030_v5  ;;  %v2306_v1 = vmul.f32 0.70710677, %v2192_v11 }
 0x449   :  { %8256 = verf.f32 %v2304_v39  ;;  %v2365_v52 = vadd.f32 %v2364_v41, %v8866_v44  ;;  %v2333_v57 = vadd.f32 1.0, %v8251_v49  ;;  %v8253_v0 = vpop.eup %8252  ;;  %v2307_v7 = vmul.f32 0.70710677, %v2194_v2 }
 0x44a   :  { %v8872_v55 = vmul.f32 %v2331_v45, %v2283_v51  ;;  %8258 = verf.f32 %v2305_v50  ;;  %v8255_v47 = vpop.eup %8254  ;;  %v2334_v6 = vadd.f32 1.0, %v8253_v0  ;;  %v2289_v41 = vmul.f32 0.5, %v2153_v40 }
 0x44b   :  { %v8879_v5 = vmul.f32 %v2333_v57, %v2285_v63  ;;  %8260 = verf.f32 %v2306_v1  ;;  %v2335_v16 = vadd.f32 1.0, %v8255_v47  ;;  %v2290_v40 = vmul.f32 0.5, %v2192_v11 }
 0x44c   :  { %v2366_v59 = vadd.f32 %v2365_v52, %v8872_v55  ;;  %v8882_v61 = vmul.f32 %v2334_v6, %v2286_v28  ;;  %8262 = verf.f32 %v2307_v7 }
 0x44d   :  { %v8893_v25 = vmul.f32 %v2335_v16, %v2287_v22 }
 0x44e   :  { %v2367_v3 = vadd.f32 %v2366_v59, %v8874_v56 }
 0x450   :  { %v2368_v14 = vadd.f32 %v2367_v3, %v8879_v5  ;;  %v2291_v3 = vmul.f32 0.5, %v2194_v2 }
 0x452   :  { %v2369_v21 = vadd.f32 %v2368_v14, %v8882_v61 }
 0x453   :  { %v8257_v27 = vpop.eup %8256 }
 0x454   :  { %v2336_v60 = vadd.f32 1.0, %v8257_v27  ;;  %v8259_v48 = vpop.eup %8258  ;;  %v2370_v26 = vadd.f32 %v2369_v21, %v8893_v25 }
 0x455   :  { %v2337_v30 = vadd.f32 1.0, %v8259_v48  ;;  %v8261_v46 = vpop.eup %8260 }
 0x456   :  { %v8895_v29 = vmul.f32 %v2336_v60, %v2288_v23  ;;  %v2338_v57 = vadd.f32 1.0, %v8261_v46  ;;  %v8263_v59 = vpop.eup %8262  ;;  %v7478_v46 = vld [vmem:[#allocation18 + $0x40] ss:$16 sps:$4 sm:$0xff]  }
 0x457   :  { %v8899_v52 = vmul.f32 %v2337_v30, %v2289_v41  ;;  %v2339_v1 = vadd.f32 1.0, %v8263_v59  ;;  %v7477_v41 = vld [vmem:[#allocation18 + $0x2c] ss:$16 sps:$4 sm:$0xff]  }
 0x458   :  { %v2371_v51 = vadd.f32 %v2370_v26, %v8895_v29  ;;  %v8902_v0 = vmul.f32 %v2338_v57, %v2290_v40  ;;  %v7474_v26 = vld [vmem:[#allocation18 + $0x24] ss:$16 sps:$4 sm:$0xff]   ;;  %v7495_v59 = vld [vmem:[#allocation18 + $0x8c] ss:$16 sps:$4 sm:$0xff]   ;;  %v7490_v40 = vld [vmem:[#allocation18 + $0x80] ss:$16 sps:$4 sm:$0xff]  }
 0x459   :  { %v8905_v27 = vmul.f32 %v2339_v1, %v2291_v3  ;;  %v7492_v57 = vld [vmem:[#allocation18 + $0x84] ss:$16 sps:$4 sm:$0xff]   ;;  %v7501_v3 = vld [vmem:[#allocation18 + $0xac] ss:$16 sps:$4 sm:$0xff]  }
 0x45a   :  { %v2372_v63 = vadd.f32 %v2371_v51, %v8899_v52  ;;  %v7489_v51 = vld [vmem:[#allocation18 + $0x6c] ss:$16 sps:$4 sm:$0xff]   ;;  %v7498_v1 = vld [vmem:[#allocation18 + $0xa4] ss:$16 sps:$4 sm:$0xff]  }
 0x45c   :  { %v2373_v47 = vadd.f32 %v2372_v63, %v8902_v0  ;;  %v7493_v63 = vld [vmem:[#allocation18 + $0x88] ss:$16 sps:$4 sm:$0xff]  }
 0x45e   :  { %v2374_v60 = vadd.f32 %v2373_v47, %v8905_v27  ;;  %v7496_v47 = vld [vmem:[#allocation18 + $0xa0] ss:$16 sps:$4 sm:$0xff]  }
 0x484   :  { %v2232_v9 = vpop.f32.mrb[12].mxu1 }
 0x485   :  { %v2233_v32 = vadd.f32 %v2232_v9, %v643_v18  ;;  %v2273_v35 = vpop.f32.mrb[16].mxu0  ;;  %v2234_v36 = vpop.f32.mrb[13].mxu1 }
 0x486   :  { %v2274_v37 = vadd.f32 %v2273_v35, %v651_v19  ;;  %v2235_v38 = vadd.f32 %v2234_v36, %v647_v20  ;;  %v2275_v39 = vpop.f32.mrb[17].mxu0  ;;  %v2236_v42 = vpop.f32.mrb[14].mxu1 }
 0x487   :  { %v2308_v31 = vmul.f32 0.70710677, %v2233_v32  ;;  %v2276_v43 = vadd.f32 %v2275_v39, %v655_v24  ;;  %v2277_v45 = vpop.f32.mrb[18].mxu0  ;;  %v2237_v17 = vpop.f32.mrb[15].mxu1  ;;  %v2292_v28 = vmul.f32 0.5, %v2233_v32 }
 0x488   :  { %v2310_v49 = vmul.f32 0.70710677, %v2274_v37  ;;  %v2309_v50 = vmul.f32 0.70710677, %v2235_v38  ;;  %v2278_v54 = vpop.f32.mrb[19].mxu0  ;;  %v2293_v19 = vmul.f32 0.5, %v2235_v38 }
 0x489   :  { %8264 = verf.f32 %v2308_v31  ;;  %v2311_v53 = vmul.f32 0.70710677, %v2276_v43  ;;  %v2294_v22 = vmul.f32 0.5, %v2274_v37  ;;  %v2295_v24 = vmul.f32 0.5, %v2276_v43  ;;  %v7466_v38 = vld [vmem:[#allocation18] ss:$16 sps:$4 sm:$0xff]  }
 0x48a   :  { %8266 = verf.f32 %v2310_v49  ;;  %v7468_v39 = vld [vmem:[#allocation18 + $0x4] ss:$16 sps:$4 sm:$0xff]   ;;  %v7469_v37 = vld [vmem:[#allocation18 + $0x8] ss:$16 sps:$4 sm:$0xff]   ;;  %v7471_v42 = vld [vmem:[#allocation18 + $0xc] ss:$16 sps:$4 sm:$0xff]  }
 0x48b   :  { %8268 = verf.f32 %v2309_v50  ;;  %5883 = vmatprep.subr.bf16.mxu1 %v7468_v39  ;;  %6211 = vmatprep.subr.bf16.mxu0 %v7471_v42  ;;  %v7472_v31 = vld [vmem:[#allocation18 + $0x20] ss:$16 sps:$4 sm:$0xff]   ;;  %v7475_v43 = vld [vmem:[#allocation18 + $0x28] ss:$16 sps:$4 sm:$0xff]   ;;  %v7480_v45 = vld [vmem:[#allocation18 + $0x44] ss:$16 sps:$4 sm:$0xff]  }
 0x48c   :  { %8270 = verf.f32 %v2311_v53  ;;  %5884 = vmatpush1.bf16.msra.mxu1 %v7466_v38  ;;  %6212 = vmatpush1.bf16.msra.mxu0 %v7469_v37  ;;  %v7483_v17 = vld [vmem:[#allocation18 + $0x4c] ss:$16 sps:$4 sm:$0xff]   ;;  %v7481_v49 = vld [vmem:[#allocation18 + $0x48] ss:$16 sps:$4 sm:$0xff]   ;;  %v7486_v50 = vld [vmem:[#allocation18 + $0x64] ss:$16 sps:$4 sm:$0xff]  }
 0x48d   :  { %5885 = vmatprep.subr.bf16.mxu1 %v7474_v26  ;;  %6213 = vmatprep.subr.bf16.mxu0 %v7477_v41  ;;  %v7484_v53 = vld [vmem:[#allocation18 + $0x60] ss:$16 sps:$4 sm:$0xff]   ;;  %v7487_v54 = vld [vmem:[#allocation18 + $0x68] ss:$16 sps:$4 sm:$0xff]   ;;  %v7528_v38 = vld [vmem:[#allocation18 + $0x144] ss:$16 sps:$4 sm:$0xff]  }
 0x48e   :  { %v7531_v39 = vld [vmem:[#allocation18 + $0x14c] ss:$16 sps:$4 sm:$0xff]   ;;  %v7526_v37 = vld [vmem:[#allocation18 + $0x140] ss:$16 sps:$4 sm:$0xff]   ;;  %v7529_v42 = vld [vmem:[#allocation18 + $0x148] ss:$16 sps:$4 sm:$0xff]  }
 0x490   :  { %5886 = vmatpush1.bf16.msra.mxu1 %v7472_v31  ;;  %6214 = vmatpush1.bf16.msra.mxu0 %v7475_v43 }
 0x491   :  { %5887 = vmatprep.subr.bf16.mxu1 %v7480_v45  ;;  %6215 = vmatprep.subr.bf16.mxu0 %v7483_v17 }
 0x493   :  { %v8265_v6 = vpop.eup %8264 }
 0x494   :  { %v8267_v7 = vpop.eup %8266  ;;  %v2340_v14 = vadd.f32 1.0, %v8265_v6  ;;  %5888 = vmatpush1.bf16.msra.mxu1 %v7478_v46  ;;  %6216 = vmatpush1.bf16.msra.mxu0 %v7481_v49  ;;  %v7499_v6 = vld [vmem:[#allocation18 + $0xa8] ss:$16 sps:$4 sm:$0xff]  }
 0x495   :  { %v8269_v16 = vpop.eup %8268  ;;  %v2342_v11 = vadd.f32 1.0, %v8267_v7  ;;  %5889 = vmatprep.subr.bf16.mxu1 %v7486_v50  ;;  %6217 = vmatprep.subr.bf16.mxu0 %v7489_v51  ;;  %v7504_v7 = vld [vmem:[#allocation18 + $0xc4] ss:$16 sps:$4 sm:$0xff]  }
 0x496   :  { %v8271_v18 = vpop.eup %8270  ;;  %v8908_v48 = vmul.f32 %v2340_v14, %v2292_v28  ;;  %v2341_v20 = vadd.f32 1.0, %v8269_v16  ;;  %v7507_v28 = vld [vmem:[#allocation18 + $0xcc] ss:$16 sps:$4 sm:$0xff]   ;;  %v7502_v14 = vld [vmem:[#allocation18 + $0xc0] ss:$16 sps:$4 sm:$0xff]  }
 0x497   :  { %v2343_v2 = vadd.f32 1.0, %v8271_v18  ;;  %v8913_v9 = vmul.f32 %v2342_v11, %v2294_v22  ;;  %v7505_v16 = vld [vmem:[#allocation18 + $0xc8] ss:$16 sps:$4 sm:$0xff]   ;;  %v7513_v18 = vld [vmem:[#allocation18 + $0xec] ss:$16 sps:$4 sm:$0xff]  }
 0x498   :  { %v8910_v21 = vmul.f32 %v2341_v20, %v2293_v19  ;;  %v2375_v23 = vadd.f32 %v2374_v60, %v8908_v48  ;;  %5890 = vmatpush1.bf16.msra.mxu1 %v7484_v53  ;;  %6218 = vmatpush1.bf16.msra.mxu0 %v7487_v54  ;;  %v7510_v60 = vld [vmem:[#allocation18 + $0xe4] ss:$16 sps:$4 sm:$0xff]   ;;  %v7508_v11 = vld [vmem:[#allocation18 + $0xe0] ss:$16 sps:$4 sm:$0xff]   ;;  %v7511_v19 = vld [vmem:[#allocation18 + $0xe8] ss:$16 sps:$4 sm:$0xff]  }
 0x499   :  { %v8916_v32 = vmul.f32 %v2343_v2, %v2295_v24  ;;  %5891 = vmatprep.subr.bf16.mxu1 %v7492_v57  ;;  %6219 = vmatprep.subr.bf16.mxu0 %v7495_v59  ;;  %v7516_v20 = vld [vmem:[#allocation18 + $0x104] ss:$16 sps:$4 sm:$0xff]   ;;  %v7519_v22 = vld [vmem:[#allocation18 + $0x10c] ss:$16 sps:$4 sm:$0xff]   ;;  %v7514_v2 = vld [vmem:[#allocation18 + $0x100] ss:$16 sps:$4 sm:$0xff]  }
 0x49a   :  { %v2376_v30 = vadd.f32 %v2375_v23, %v8910_v21  ;;  %v7517_v23 = vld [vmem:[#allocation18 + $0x108] ss:$16 sps:$4 sm:$0xff]   ;;  %v7522_v24 = vld [vmem:[#allocation18 + $0x124] ss:$16 sps:$4 sm:$0xff]  }
 0x49c   :  { %v2377_v35 = vadd.f32 %v2376_v30, %v8913_v9  ;;  %5892 = vmatpush1.bf16.msra.mxu1 %v7490_v40  ;;  %6220 = vmatpush1.bf16.msra.mxu0 %v7493_v63  ;;  %v7525_v30 = vld [vmem:[#allocation18 + $0x12c] ss:$16 sps:$4 sm:$0xff]  }
 0x49d   :  { %5893 = vmatprep.subr.bf16.mxu1 %v7498_v1  ;;  %6221 = vmatprep.subr.bf16.mxu0 %v7501_v3 }
 0x49e   :  { %v2378_v36 = vadd.f32 %v2377_v35, %v8916_v32  ;;  %v7520_v35 = vld [vmem:[#allocation18 + $0x120] ss:$16 sps:$4 sm:$0xff]  }
 0x4a0   :  { %2379 = vadd.xlane.f32.xlu1 %v2378_v36  ;;  %5894 = vmatpush1.bf16.msra.mxu1 %v7496_v47  ;;  %v7523_v36 = vld [vmem:[#allocation18 + $0x128] ss:$16 sps:$4 sm:$0xff]  }
 0x4a1   :  { %6222 = vmatpush1.bf16.msra.mxu0 %v7499_v6  ;;  %5895 = vmatprep.subr.bf16.mxu1 %v7504_v7 }
 0x4a2   :  { %6223 = vmatprep.subr.bf16.mxu0 %v7507_v28 }
 0x4a4   :  { %5896 = vmatpush1.bf16.msra.mxu1 %v7502_v14 }
 0x4a5   :  { %6224 = vmatpush1.bf16.msra.mxu0 %v7505_v16  ;;  %5897 = vmatprep.subr.bf16.mxu1 %v7510_v60 }
 0x4a6   :  { %6225 = vmatprep.subr.bf16.mxu0 %v7513_v18 }
 0x4a8   :  { %5898 = vmatpush1.bf16.msra.mxu1 %v7508_v11 }
 0x4a9   :  { %6226 = vmatpush1.bf16.msra.mxu0 %v7511_v19  ;;  %5899 = vmatprep.subr.bf16.mxu1 %v7516_v20 }
 0x4aa   :  { %6227 = vmatprep.subr.bf16.mxu0 %v7519_v22 }
 0x4ac   :  { %5900 = vmatpush1.bf16.msra.mxu1 %v7514_v2 }
 0x4ad   :  { %6228 = vmatpush1.bf16.msra.mxu0 %v7517_v23  ;;  %5901 = vmatprep.subr.bf16.mxu1 %v7522_v24 }
 0x4ae   :  { %6229 = vmatprep.subr.bf16.mxu0 %v7525_v30 }
 0x4b0   :  { %5902 = vmatpush1.bf16.msra.mxu1 %v7520_v35  ;;  %v7534_v35 = vld [vmem:[#allocation18 + $0x164] ss:$16 sps:$4 sm:$0xff]  }
 0x4b1   :  { %6230 = vmatpush1.bf16.msra.mxu0 %v7523_v36  ;;  %5903 = vmatprep.subr.bf16.mxu1 %v7528_v38  ;;  %v7537_v36 = vld [vmem:[#allocation18 + $0x16c] ss:$16 sps:$4 sm:$0xff]   ;;  %v7532_v38 = vld [vmem:[#allocation18 + $0x160] ss:$16 sps:$4 sm:$0xff]  }
 0x4b2   :  { %6231 = vmatprep.subr.bf16.mxu0 %v7531_v39  ;;  %v7535_v39 = vld [vmem:[#allocation18 + $0x168] ss:$16 sps:$4 sm:$0xff]  }
 0x4b4   :  { %5904 = vmatpush1.bf16.msra.mxu1 %v7526_v37  ;;  %v7538_v37 = vld [vmem:[#allocation18 + $0x180] ss:$16 sps:$4 sm:$0xff]  }
 0x4b5   :  { %6232 = vmatpush1.bf16.msra.mxu0 %v7529_v42  ;;  %5905 = vmatprep.subr.bf16.mxu1 %v7534_v35  ;;  %v7541_v42 = vld [vmem:[#allocation18 + $0x188] ss:$16 sps:$4 sm:$0xff]  }
 0x4b6   :  { %6233 = vmatprep.subr.bf16.mxu0 %v7537_v36 }
 0x4b8   :  { %5906 = vmatpush1.bf16.msra.mxu1 %v7532_v38 }
 0x4b9   :  { %6234 = vmatpush1.bf16.msra.mxu0 %v7535_v39 }
 0x52d   :  { %v2380_v26 = vpop.xlane.xlu1 %2379 }
 0x52e   :  { %v2382_v41 = vmul.f32 0.00048828125, %v2380_v26  ;;  %v7543_v26 = vld [vmem:[#allocation18 + $0x18c] ss:$16 sps:$4 sm:$0xff]  }
 0x52f   :  { %6235 = vmatprep.subr.bf16.mxu0 %v7543_v26 }
 0x530   :  { %v8921_v31 = vsub.f32 %v8858_v33, %v2382_v41  ;;  %v8924_v43 = vsub.f32 %v8860_v34, %v2382_v41  ;;  %v8927_v45 = vsub.f32 %v8866_v44, %v2382_v41  ;;  %v8934_v49 = vsub.f32 %v8872_v55, %v2382_v41  ;;  %6236 = vmatpush1.bf16.msra.mxu0 %v7541_v42 }
 0x531   :  { %v8937_v50 = vsub.f32 %v8874_v56, %v2382_v41  ;;  %v8942_v51 = vsub.f32 %v8879_v5, %v2382_v41  ;;  %v8947_v54 = vsub.f32 %v8882_v61, %v2382_v41  ;;  %v8952_v56 = vsub.f32 %v8893_v25, %v2382_v41 }
 0x532   :  { %v2399_v17 = vmul.f32 %v8921_v31, %v8921_v31  ;;  %v2400_v46 = vmul.f32 %v8924_v43, %v8924_v43  ;;  %v2401_v33 = vmul.f32 %v8927_v45, %v8927_v45  ;;  %v2402_v44 = vmul.f32 %v8934_v49, %v8934_v49 }
 0x533   :  { %v2403_v55 = vmul.f32 %v8937_v50, %v8937_v50  ;;  %v2404_v59 = vmul.f32 %v8942_v51, %v8942_v51  ;;  %v8957_v5 = vsub.f32 %v8895_v29, %v2382_v41  ;;  %v2405_v63 = vmul.f32 %v8947_v54, %v8947_v54 }
 0x534   :  { %v2415_v34 = vadd.f32 %v2400_v46, %v2399_v17  ;;  %v8962_v61 = vsub.f32 %v8899_v52, %v2382_v41  ;;  %v2406_v3 = vmul.f32 %v8952_v56, %v8952_v56  ;;  %v8967_v25 = vsub.f32 %v8902_v0, %v2382_v41  ;;  %v7549_v17 = vld [vmem:[#allocation18 + $0x1ac] ss:$16 sps:$4 sm:$0xff]   ;;  %v7544_v46 = vld [vmem:[#allocation18 + $0x1a0] ss:$16 sps:$4 sm:$0xff]  }
 0x535   :  { %v2407_v6 = vmul.f32 %v8957_v5, %v8957_v5  ;;  %v8972_v29 = vsub.f32 %v8905_v27, %v2382_v41  ;;  %v8977_v52 = vsub.f32 %v8908_v48, %v2382_v41  ;;  %v8982_v0 = vsub.f32 %v8910_v21, %v2382_v41  ;;  %6237 = vmatprep.subr.bf16.mxu0 %v7549_v17 }
 0x536   :  { %v2416_v53 = vadd.f32 %v2415_v34, %v2401_v33  ;;  %v2408_v28 = vmul.f32 %v8962_v61, %v8962_v61  ;;  %v2409_v16 = vmul.f32 %v8967_v25, %v8967_v25  ;;  %v8987_v27 = vsub.f32 %v8913_v9, %v2382_v41  ;;  %v7547_v33 = vld [vmem:[#allocation18 + $0x1a8] ss:$16 sps:$4 sm:$0xff]   ;;  %v7552_v34 = vld [vmem:[#allocation18 + $0x1c4] ss:$16 sps:$4 sm:$0xff]  }
 0x537   :  { %v2410_v18 = vmul.f32 %v8972_v29, %v8972_v29  ;;  %v2411_v19 = vmul.f32 %v8977_v52, %v8977_v52  ;;  %v8992_v48 = vsub.f32 %v8916_v32, %v2382_v41  ;;  %v2412_v22 = vmul.f32 %v8982_v0, %v8982_v0  ;;  %v7540_v32 = vld [vmem:[#allocation18 + $0x184] ss:$16 sps:$4 sm:$0xff]   ;;  %6238 = vmatpush1.bf16.msra.mxu0 %v7547_v33 }
 0x538   :  { %v2417_v57 = vadd.f32 %v2416_v53, %v2402_v44  ;;  %v2413_v21 = vmul.f32 %v8987_v27, %v8987_v27  ;;  %5907 = vmatprep.subr.bf16.mxu1 %v7540_v32  ;;  %v7546_v41 = vld [vmem:[#allocation18 + $0x1a4] ss:$16 sps:$4 sm:$0xff]   ;;  %v7555_v44 = vld [vmem:[#allocation18 + $0x1cc] ss:$16 sps:$4 sm:$0xff]   ;;  %v7550_v53 = vld [vmem:[#allocation18 + $0x1c0] ss:$16 sps:$4 sm:$0xff]  }
 0x539   :  { %v2414_v24 = vmul.f32 %v8992_v48, %v8992_v48  ;;  %5908 = vmatpush1.bf16.msra.mxu1 %v7538_v37  ;;  %6239 = vmatprep.subr.bf16.mxu0 %v7555_v44 }
 0x53a   :  { %v2418_v40 = vadd.f32 %v2417_v57, %v2403_v55  ;;  %5909 = vmatprep.subr.bf16.mxu1 %v7546_v41  ;;  %v7553_v55 = vld [vmem:[#allocation18 + $0x1c8] ss:$16 sps:$4 sm:$0xff]   ;;  %v7558_v57 = vld [vmem:[#allocation18 + $0x1e4] ss:$16 sps:$4 sm:$0xff]  }
 0x53b   :  { %6240 = vmatpush1.bf16.msra.mxu0 %v7553_v55 }
 0x53c   :  { %v2419_v1 = vadd.f32 %v2418_v40, %v2404_v59  ;;  %v7561_v59 = vld [vmem:[#allocation18 + $0x1ec] ss:$16 sps:$4 sm:$0xff]   ;;  %v7556_v40 = vld [vmem:[#allocation18 + $0x1e0] ss:$16 sps:$4 sm:$0xff]  }
 0x53d   :  { %5910 = vmatpush1.bf16.msra.mxu1 %v7544_v46  ;;  %6241 = vmatprep.subr.bf16.mxu0 %v7561_v59 }
 0x53e   :  { %v2420_v47 = vadd.f32 %v2419_v1, %v2405_v63  ;;  %5911 = vmatprep.subr.bf16.mxu1 %v7552_v34  ;;  %v7559_v63 = vld [vmem:[#allocation18 + $0x1e8] ss:$16 sps:$4 sm:$0xff]   ;;  %v7564_v1 = vld [vmem:[#allocation18 + $0x204] ss:$16 sps:$4 sm:$0xff]  }
 0x53f   :  { %6242 = vmatpush1.bf16.msra.mxu0 %v7559_v63 }
 0x540   :  { %v2421_v7 = vadd.f32 %v2420_v47, %v2406_v3  ;;  %v7567_v3 = vld [vmem:[#allocation18 + $0x20c] ss:$16 sps:$4 sm:$0xff]  }
 0x541   :  { %5912 = vmatpush1.bf16.msra.mxu1 %v7550_v53  ;;  %6252 = vmatprep.subr.bf16.mxu0 %v7567_v3 }
 0x542   :  { %v2422_v14 = vadd.f32 %v2421_v7, %v2407_v6  ;;  %5913 = vmatprep.subr.bf16.mxu1 %v7558_v57 }
 0x544   :  { %v2423_v60 = vadd.f32 %v2422_v14, %v2408_v28  ;;  %v2360_v28 = vld [vmem:[#allocation15] sm:$0xff]  ;;  %v2362_v14 = vld [vmem:[#allocation17] sm:$0xff] }
 0x545   :  { %5914 = vmatpush1.bf16.msra.mxu1 %v7556_v40  ;;  %v2570_v35 = vrot.slane %v2362_v14, %v8836_v62  ;;  %v2582_v38 = vrot.slane %v2362_v14, %v8848_v15  ;;  %v2480_v39 = vrot.slane %v2360_v28, %v8845_v8  ;;  %v2578_v32 = vrot.slane %v2362_v14, %v8845_v8 }
 0x546   :  { %v2424_v11 = vadd.f32 %v2423_v60, %v2409_v16  ;;  %5924 = vmatprep.subr.bf16.mxu1 %v7564_v1  ;;  %v2460_v16 = vrot.slane %v2360_v28, %v8776_v12  ;;  %v2456_v60 = vrot.slane %v2360_v28, %v8773_v10 }
 0x548   :  { %v2425_v20 = vadd.f32 %v2424_v11, %v2410_v18  ;;  %v2468_v18 = vrot.slane %v2360_v28, %v8832_v58  ;;  %v2464_v11 = vrot.slane %v2360_v28, %v8829_v13 }
 0x54a   :  { %v2426_v2 = vadd.f32 %v2425_v20, %v2411_v19  ;;  %v2476_v19 = vrot.slane %v2360_v28, %v8841_v4  ;;  %v9005_v20 = vld [vmem:[#allocation15 + $0x8] sm:$0xff] }
 0x54b   :  { %v2500_v37 = vrot.slane %v9005_v20, %v8832_v58 }
 0x54c   :  { %v2427_v23 = vadd.f32 %v2426_v2, %v2412_v22  ;;  %v2558_v22 = vrot.slane %v2362_v14, %v8776_v12  ;;  %v2554_v2 = vrot.slane %v2362_v14, %v8773_v10 }
 0x54e   :  { %v2428_v9 = vadd.f32 %v2427_v23, %v2413_v21  ;;  %v2472_v21 = vrot.slane %v2360_v28, %v8836_v62  ;;  %v2484_v23 = vrot.slane %v2360_v28, %v8848_v15  ;;  %v7565_v28 = vld [vmem:[#allocation18 + $0x208] ss:$16 sps:$4 sm:$0xff]  }
 0x550   :  { %v2429_v30 = vadd.f32 %v2428_v9, %v2414_v24  ;;  %v2566_v24 = vrot.slane %v2362_v14, %v8832_v58  ;;  %v2562_v9 = vrot.slane %v2362_v14, %v8829_v13 }
 0x552   :  { %2430 = vadd.xlane.f32.xlu1 %v2429_v30  ;;  %v2574_v30 = vrot.slane %v2362_v14, %v8841_v4 }
 0x5df   :  { %v2431_v47 = vpop.xlane.xlu1 %2430 }
 0x5e0   :  { %v2432_v6 = vmul.f32 0.00048828125, %v2431_v47 }
 0x5e2   :  { %v2433_v7 = vadd.f32 1e-05, %v2432_v6 }
 0x5e4   :  { %8272 = vrsqrt.f32 %v2433_v7  ;;  %v7562_v7 = vld [vmem:[#allocation18 + $0x200] ss:$16 sps:$4 sm:$0xff]  }
 0x5ee   :  { %v9015_v36 = vpop.eup %8272 }
 0x5ef   :  { %v2436_v42 = vmul.f32 %v9015_v36, %v8924_v43  ;;  %v2435_v26 = vmul.f32 %v9015_v36, %v8921_v31  ;;  %v2438_v41 = vmul.f32 %v9015_v36, %v8934_v49  ;;  %v2437_v17 = vmul.f32 %v9015_v36, %v8927_v45 }
 0x5f0   :  { %v2440_v46 = vmul.f32 %v9015_v36, %v8942_v51  ;;  %v2439_v33 = vmul.f32 %v9015_v36, %v8937_v50  ;;  %v2442_v34 = vmul.f32 %v9015_v36, %v8952_v56  ;;  %v2441_v43 = vmul.f32 %v9015_v36, %v8947_v54  ;;  %v9040_v50 = vld [vmem:[#allocation17 + $0x8] sm:$0xff] }
 0x5f1   :  { %v2534_v44 = vmul.f32 %v2460_v16, %v2436_v42  ;;  %v2533_v31 = vmul.f32 %v2456_v60, %v2435_v26  ;;  %v2536_v53 = vmul.f32 %v2468_v18, %v2438_v41  ;;  %v2535_v55 = vmul.f32 %v2464_v11, %v2437_v17 }
 0x5f2   :  { %v2538_v49 = vmul.f32 %v2476_v19, %v2440_v46  ;;  %v2537_v57 = vmul.f32 %v2472_v21, %v2439_v33  ;;  %v2540_v59 = vmul.f32 %v2484_v23, %v2442_v34  ;;  %v2539_v45 = vmul.f32 %v2480_v39, %v2441_v43  ;;  %v7570_v21 = vld [vmem:[#allocation18 + $0x224] ss:$16 sps:$4 sm:$0xff]   ;;  %v7573_v23 = vld [vmem:[#allocation18 + $0x22c] ss:$16 sps:$4 sm:$0xff]   ;;  %v7571_v39 = vld [vmem:[#allocation18 + $0x228] ss:$16 sps:$4 sm:$0xff]  }
 0x5f3   :  { %v2632_v40 = vadd.f32 %v2558_v22, %v2534_v44  ;;  %v2631_v63 = vadd.f32 %v2554_v2, %v2533_v31  ;;  %v2634_v51 = vadd.f32 %v2566_v24, %v2536_v53  ;;  %v9038_v1 = vadd.f32 %v2562_v9, %v2535_v55  ;;  %v7574_v33 = vld [vmem:[#allocation18 + $0x240] ss:$16 sps:$4 sm:$0xff]   ;;  %v7577_v34 = vld [vmem:[#allocation18 + $0x248] ss:$16 sps:$4 sm:$0xff]   ;;  %v7582_v31 = vld [vmem:[#allocation18 + $0x264] ss:$16 sps:$4 sm:$0xff]  }
 0x5f4   :  { %v9042_v3 = vadd.f32 %v2574_v30, %v2538_v49  ;;  %v9044_v56 = vadd.f32 %v2570_v35, %v2537_v57  ;;  %v9046_v54 = vadd.f32 %v2582_v38, %v2540_v59  ;;  %v9048_v47 = vadd.f32 %v2578_v32, %v2539_v45  ;;  %v7568_v38 = vld [vmem:[#allocation18 + $0x220] ss:$16 sps:$4 sm:$0xff]   ;;  %v7585_v53 = vld [vmem:[#allocation18 + $0x26c] ss:$16 sps:$4 sm:$0xff]   ;;  %v7583_v59 = vld [vmem:[#allocation18 + $0x268] ss:$16 sps:$4 sm:$0xff]  }
 0x5f5   :  { %v7367_v6 = vpack.c.bf16 %v2632_v40, %v2632_v40  ;;  %v7366_v14 = vpack.c.bf16 %v2631_v63, %v2631_v63  ;;  %v2496_v16 = vrot.slane %v9005_v20, %v8829_v13  ;;  %v2508_v60 = vrot.slane %v9005_v20, %v8841_v4  ;;  %v7580_v57 = vld [vmem:[#allocation18 + $0x260] ss:$16 sps:$4 sm:$0xff]   ;;  %v7588_v40 = vld [vmem:[#allocation18 + $0x284] ss:$16 sps:$4 sm:$0xff]   ;;  %v7591_v63 = vld [vmem:[#allocation18 + $0x28c] ss:$16 sps:$4 sm:$0xff]  }
 0x5f6   :  { %v2598_v18 = vrot.slane %v9040_v50, %v8832_v58  ;;  %v2594_v11 = vrot.slane %v9040_v50, %v8829_v13  ;;  %v2606_v19 = vrot.slane %v9040_v50, %v8841_v4  ;;  %v2504_v22 = vrot.slane %v9005_v20, %v8836_v62 }
 0x5f7   :  { %5915 = vmatprep.mubr.bf16.mxu1 %v7367_v6  ;;  %6243 = vmatprep.mubr.bf16.mxu0 %v7367_v6  ;;  %v7369_v2 = vpack.c.bf16 %v2634_v51, %v2634_v51  ;;  %v2446_v24 = vmul.f32 %v9015_v36, %v8972_v29  ;;  %v2602_v9 = vrot.slane %v9040_v50, %v8836_v62  ;;  %v7576_v29 = vld [vmem:[#allocation18 + $0x244] ss:$16 sps:$4 sm:$0xff]   ;;  %v7579_v62 = vld [vmem:[#allocation18 + $0x24c] ss:$16 sps:$4 sm:$0xff]   ;;  %v7586_v6 = vld [vmem:[#allocation18 + $0x280] ss:$16 sps:$4 sm:$0xff]  }
 0x5f8   :  { %5916 = vmatmul.mubr.bf16.vlgmr.msra.gmra.mrb[16].mxu1 %v7366_v14  ;;  %6244 = vmatmul.mubr.bf16.vlgmr.msra.gmra.mrb[20].mxu0 %v7366_v14  ;;  %v2445_v30 = vmul.f32 %v9015_v36, %v8967_v25  ;;  %v2448_v4 = vmul.f32 %v9015_v36, %v8982_v0  ;;  %v2447_v35 = vmul.f32 %v9015_v36, %v8977_v52  ;;  %v7595_v14 = vld [vmem:[#allocation18 + $0x2a8] ss:$16 sps:$4 sm:$0xff]  }
 0x5f9   :  { %5925 = vmatpush1.bf16.msra.mxu1 %v7562_v7  ;;  %6253 = vmatpush1.bf16.msra.mxu0 %v7565_v28  ;;  %v2544_v32 = vmul.f32 %v2500_v37, %v2446_v24  ;;  %v2516_v0 = vrot.slane %v9005_v20, %v8848_v15  ;;  %v2450_v37 = vmul.f32 %v9015_v36, %v8992_v48  ;;  %v7597_v7 = vld [vmem:[#allocation18 + $0x2ac] ss:$16 sps:$4 sm:$0xff]   ;;  %v7592_v28 = vld [vmem:[#allocation18 + $0x2a0] ss:$16 sps:$4 sm:$0xff]  }
 0x5fa   :  { %5956 = vmatprep.mubr.bf16.mxu1 %v7369_v2  ;;  %6284 = vmatprep.mubr.bf16.mxu0 %v7369_v2  ;;  %v2543_v42 = vmul.f32 %v2496_v16, %v2445_v30  ;;  %v2546_v26 = vmul.f32 %v2508_v60, %v2448_v4  ;;  %v2545_v41 = vmul.f32 %v2504_v22, %v2447_v35  ;;  %v7600_v16 = vld [vmem:[#allocation18 + $0x2c4] ss:$16 sps:$4 sm:$0xff]   ;;  %v7603_v60 = vld [vmem:[#allocation18 + $0x2cc] ss:$16 sps:$4 sm:$0xff]   ;;  %v7604_v2 = vld [vmem:[#allocation18 + $0x2e0] ss:$16 sps:$4 sm:$0xff]  }
 0x5fb   :  { %5926 = vmatprep.subr.bf16.mxu1 %v7570_v21  ;;  %6254 = vmatprep.subr.bf16.mxu0 %v7573_v23  ;;  %v9072_v25 = vadd.f32 %v2598_v18, %v2544_v32  ;;  %v2614_v43 = vrot.slane %v9040_v50, %v8848_v15  ;;  %v2512_v44 = vrot.slane %v9005_v20, %v8845_v8  ;;  %v7598_v18 = vld [vmem:[#allocation18 + $0x2c0] ss:$16 sps:$4 sm:$0xff]   ;;  %v7609_v22 = vld [vmem:[#allocation18 + $0x2ec] ss:$16 sps:$4 sm:$0xff]   ;;  %v7607_v21 = vld [vmem:[#allocation18 + $0x2e8] ss:$16 sps:$4 sm:$0xff]  }
 0x5fc   :  { %v9076_v52 = vadd.f32 %v2594_v11, %v2543_v42  ;;  %v9078_v17 = vadd.f32 %v2606_v19, %v2546_v26  ;;  %v9080_v46 = vadd.f32 %v2602_v9, %v2545_v41  ;;  %v2548_v55 = vmul.f32 %v2516_v0, %v2450_v37  ;;  %v7601_v11 = vld [vmem:[#allocation18 + $0x2c8] ss:$16 sps:$4 sm:$0xff]   ;;  %v7606_v19 = vld [vmem:[#allocation18 + $0x2e4] ss:$16 sps:$4 sm:$0xff]   ;;  %v7615_v24 = vld [vmem:[#allocation18 + $0x30c] ss:$16 sps:$4 sm:$0xff]  }
 0x5fd   :  { %5927 = vmatpush1.bf16.msra.mxu1 %v7568_v38  ;;  %6255 = vmatpush1.bf16.msra.mxu0 %v7571_v39  ;;  %v2449_v49 = vmul.f32 %v9015_v36, %v8987_v27  ;;  %v2610_v48 = vrot.slane %v9040_v50, %v8845_v8  ;;  %v7589_v27 = vld [vmem:[#allocation18 + $0x288] ss:$16 sps:$4 sm:$0xff]   ;;  %v7594_v8 = vld [vmem:[#allocation18 + $0x2a4] ss:$16 sps:$4 sm:$0xff]   ;;  %v7610_v9 = vld [vmem:[#allocation18 + $0x300] ss:$16 sps:$4 sm:$0xff]  }
 0x5fe   :  { %5928 = vmatprep.subr.bf16.mxu1 %v7576_v29  ;;  %6256 = vmatprep.subr.bf16.mxu0 %v7579_v62  ;;  %v9092_v45 = vadd.f32 %v2614_v43, %v2548_v55  ;;  %v7612_v23 = vld [vmem:[#allocation18 + $0x304] ss:$16 sps:$4 sm:$0xff]   ;;  %v7613_v30 = vld [vmem:[#allocation18 + $0x308] ss:$16 sps:$4 sm:$0xff]   ;;  %v7621_v35 = vld [vmem:[#allocation18 + $0x32c] ss:$16 sps:$4 sm:$0xff]  }
 0x5ff   :  { %v2547_v15 = vmul.f32 %v2512_v44, %v2449_v49  ;;  %v7618_v4 = vld [vmem:[#allocation18 + $0x324] ss:$16 sps:$4 sm:$0xff]   ;;  %v7616_v38 = vld [vmem:[#allocation18 + $0x320] ss:$16 sps:$4 sm:$0xff]   ;;  %v7619_v39 = vld [vmem:[#allocation18 + $0x328] ss:$16 sps:$4 sm:$0xff]  }
 0x600   :  { %v7624_v32 = vld [vmem:[#allocation18 + $0x344] ss:$16 sps:$4 sm:$0xff]   ;;  %v7627_v29 = vld [vmem:[#allocation18 + $0x34c] ss:$16 sps:$4 sm:$0xff]   ;;  %v7622_v62 = vld [vmem:[#allocation18 + $0x340] ss:$16 sps:$4 sm:$0xff]  }
 0x601   :  { %5929 = vmatpush1.bf16.msra.mxu1 %v7574_v33  ;;  %6257 = vmatpush1.bf16.msra.mxu0 %v7577_v34  ;;  %v9094_v51 = vadd.f32 %v2610_v48, %v2547_v15  ;;  %v7625_v42 = vld [vmem:[#allocation18 + $0x348] ss:$16 sps:$4 sm:$0xff]   ;;  %v7630_v26 = vld [vmem:[#allocation18 + $0x364] ss:$16 sps:$4 sm:$0xff]   ;;  %v7633_v41 = vld [vmem:[#allocation18 + $0x36c] ss:$16 sps:$4 sm:$0xff]  }
 0x602   :  { %5930 = vmatprep.subr.bf16.mxu1 %v7582_v31  ;;  %6258 = vmatprep.subr.bf16.mxu0 %v7585_v53  ;;  %v7628_v0 = vld [vmem:[#allocation18 + $0x360] ss:$16 sps:$4 sm:$0xff]   ;;  %v7631_v37 = vld [vmem:[#allocation18 + $0x368] ss:$16 sps:$4 sm:$0xff]   ;;  %v7636_v33 = vld [vmem:[#allocation18 + $0x384] ss:$16 sps:$4 sm:$0xff]  }
 0x603   :  { %v7639_v34 = vld [vmem:[#allocation18 + $0x38c] ss:$16 sps:$4 sm:$0xff]   ;;  %v7634_v43 = vld [vmem:[#allocation18 + $0x380] ss:$16 sps:$4 sm:$0xff]   ;;  %v7637_v44 = vld [vmem:[#allocation18 + $0x388] ss:$16 sps:$4 sm:$0xff]  }
 0x604   :  { %v7642_v31 = vld [vmem:[#allocation18 + $0x3a4] ss:$16 sps:$4 sm:$0xff]   ;;  %v7645_v53 = vld [vmem:[#allocation18 + $0x3ac] ss:$16 sps:$4 sm:$0xff]   ;;  %v7640_v55 = vld [vmem:[#allocation18 + $0x3a0] ss:$16 sps:$4 sm:$0xff]  }
 0x605   :  { %5931 = vmatpush1.bf16.msra.mxu1 %v7580_v57  ;;  %6259 = vmatpush1.bf16.msra.mxu0 %v7583_v59  ;;  %v7643_v49 = vld [vmem:[#allocation18 + $0x3a8] ss:$16 sps:$4 sm:$0xff]   ;;  %v7648_v48 = vld [vmem:[#allocation18 + $0x3c4] ss:$16 sps:$4 sm:$0xff]   ;;  %v7651_v57 = vld [vmem:[#allocation18 + $0x3cc] ss:$16 sps:$4 sm:$0xff]  }
 0x606   :  { %5932 = vmatprep.subr.bf16.mxu1 %v7588_v40  ;;  %6260 = vmatprep.subr.bf16.mxu0 %v7591_v63  ;;  %v7646_v59 = vld [vmem:[#allocation18 + $0x3c0] ss:$16 sps:$4 sm:$0xff]   ;;  %v7649_v15 = vld [vmem:[#allocation18 + $0x3c8] ss:$16 sps:$4 sm:$0xff]   ;;  %v7654_v40 = vld [vmem:[#allocation18 + $0x3e4] ss:$16 sps:$4 sm:$0xff]  }
 0x607   :  { %v7657_v63 = vld [vmem:[#allocation18 + $0x3ec] ss:$16 sps:$4 sm:$0xff]  }
 0x609   :  { %5933 = vmatpush1.bf16.msra.mxu1 %v7586_v6  ;;  %6261 = vmatpush1.bf16.msra.mxu0 %v7589_v27  ;;  %v7652_v6 = vld [vmem:[#allocation18 + $0x3e0] ss:$16 sps:$4 sm:$0xff]   ;;  %v7655_v27 = vld [vmem:[#allocation18 + $0x3e8] ss:$16 sps:$4 sm:$0xff]  }
 0x60a   :  { %5934 = vmatprep.subr.bf16.mxu1 %v7594_v8  ;;  %6262 = vmatprep.subr.bf16.mxu0 %v7597_v7  ;;  %v7660_v8 = vld [vmem:[#allocation18 + $0x404] ss:$16 sps:$4 sm:$0xff]   ;;  %v7663_v7 = vld [vmem:[#allocation18 + $0x40c] ss:$16 sps:$4 sm:$0xff]  }
 0x60d   :  { %5935 = vmatpush1.bf16.msra.mxu1 %v7592_v28  ;;  %6263 = vmatpush1.bf16.msra.mxu0 %v7595_v14  ;;  %v7658_v28 = vld [vmem:[#allocation18 + $0x400] ss:$16 sps:$4 sm:$0xff]   ;;  %v7368_v14 = vpack.c.bf16 %v9038_v1, %v9038_v1  ;;  %v7675_v1 = vld [vmem:[#allocation18 + $0x44c] ss:$16 sps:$4 sm:$0xff]  }
 0x60e   :  { %5936 = vmatprep.subr.bf16.mxu1 %v7600_v16  ;;  %6264 = vmatprep.subr.bf16.mxu0 %v7603_v60  ;;  %v7661_v16 = vld [vmem:[#allocation18 + $0x408] ss:$16 sps:$4 sm:$0xff]   ;;  %v7371_v60 = vpack.c.bf16 %v9042_v3, %v9042_v3  ;;  %v7678_v3 = vld [vmem:[#allocation18 + $0x464] ss:$16 sps:$4 sm:$0xff]  }
 0x611   :  { %5937 = vmatpush1.bf16.msra.mxu1 %v7598_v18  ;;  %6265 = vmatpush1.bf16.msra.mxu0 %v7601_v11  ;;  %v7666_v18 = vld [vmem:[#allocation18 + $0x424] ss:$16 sps:$4 sm:$0xff]   ;;  %v7669_v11 = vld [vmem:[#allocation18 + $0x42c] ss:$16 sps:$4 sm:$0xff]  }
 0x612   :  { %5938 = vmatprep.subr.bf16.mxu1 %v7606_v19  ;;  %6266 = vmatprep.subr.bf16.mxu0 %v7609_v22  ;;  %v7664_v19 = vld [vmem:[#allocation18 + $0x420] ss:$16 sps:$4 sm:$0xff]   ;;  %v7667_v22 = vld [vmem:[#allocation18 + $0x428] ss:$16 sps:$4 sm:$0xff]  }
 0x615   :  { %5939 = vmatpush1.bf16.msra.mxu1 %v7604_v2  ;;  %6267 = vmatpush1.bf16.msra.mxu0 %v7607_v21  ;;  %v7672_v2 = vld [vmem:[#allocation18 + $0x444] ss:$16 sps:$4 sm:$0xff]   ;;  %v7670_v21 = vld [vmem:[#allocation18 + $0x440] ss:$16 sps:$4 sm:$0xff]  }
 0x616   :  { %5940 = vmatprep.subr.bf16.mxu1 %v7612_v23  ;;  %6268 = vmatprep.subr.bf16.mxu0 %v7615_v24  ;;  %v7673_v23 = vld [vmem:[#allocation18 + $0x448] ss:$16 sps:$4 sm:$0xff]   ;;  %v7681_v24 = vld [vmem:[#allocation18 + $0x46c] ss:$16 sps:$4 sm:$0xff]  }
 0x619   :  { %5941 = vmatpush1.bf16.msra.mxu1 %v7610_v9  ;;  %6269 = vmatpush1.bf16.msra.mxu0 %v7613_v30  ;;  %v7676_v9 = vld [vmem:[#allocation18 + $0x460] ss:$16 sps:$4 sm:$0xff]   ;;  %v7679_v30 = vld [vmem:[#allocation18 + $0x468] ss:$16 sps:$4 sm:$0xff]  }
 0x61a   :  { %5942 = vmatprep.subr.bf16.mxu1 %v7618_v4  ;;  %6270 = vmatprep.subr.bf16.mxu0 %v7621_v35  ;;  %v7684_v4 = vld [vmem:[#allocation18 + $0x484] ss:$16 sps:$4 sm:$0xff]   ;;  %v7687_v35 = vld [vmem:[#allocation18 + $0x48c] ss:$16 sps:$4 sm:$0xff]  }
 0x61d   :  { %5943 = vmatpush1.bf16.msra.mxu1 %v7616_v38  ;;  %6271 = vmatpush1.bf16.msra.mxu0 %v7619_v39  ;;  %v7682_v38 = vld [vmem:[#allocation18 + $0x480] ss:$16 sps:$4 sm:$0xff]   ;;  %v7685_v39 = vld [vmem:[#allocation18 + $0x488] ss:$16 sps:$4 sm:$0xff]  }
 0x61e   :  { %5944 = vmatprep.subr.bf16.mxu1 %v7624_v32  ;;  %6272 = vmatprep.subr.bf16.mxu0 %v7627_v29  ;;  %v7690_v32 = vld [vmem:[#allocation18 + $0x4a4] ss:$16 sps:$4 sm:$0xff]   ;;  %v7693_v29 = vld [vmem:[#allocation18 + $0x4ac] ss:$16 sps:$4 sm:$0xff]  }
 0x621   :  { %5945 = vmatpush1.bf16.msra.mxu1 %v7622_v62  ;;  %6273 = vmatpush1.bf16.msra.mxu0 %v7625_v42  ;;  %v7688_v62 = vld [vmem:[#allocation18 + $0x4a0] ss:$16 sps:$4 sm:$0xff]   ;;  %v7691_v42 = vld [vmem:[#allocation18 + $0x4a8] ss:$16 sps:$4 sm:$0xff]  }
 0x622   :  { %5946 = vmatprep.subr.bf16.mxu1 %v7630_v26  ;;  %6274 = vmatprep.subr.bf16.mxu0 %v7633_v41  ;;  %v7696_v26 = vld [vmem:[#allocation18 + $0x4c4] ss:$16 sps:$4 sm:$0xff]   ;;  %v7699_v41 = vld [vmem:[#allocation18 + $0x4cc] ss:$16 sps:$4 sm:$0xff]  }
 0x625   :  { %5947 = vmatpush1.bf16.msra.mxu1 %v7628_v0  ;;  %6275 = vmatpush1.bf16.msra.mxu0 %v7631_v37  ;;  %v7694_v0 = vld [vmem:[#allocation18 + $0x4c0] ss:$16 sps:$4 sm:$0xff]   ;;  %v7697_v37 = vld [vmem:[#allocation18 + $0x4c8] ss:$16 sps:$4 sm:$0xff]  }
 0x626   :  { %5948 = vmatprep.subr.bf16.mxu1 %v7636_v33  ;;  %6276 = vmatprep.subr.bf16.mxu0 %v7639_v34  ;;  %v7702_v33 = vld [vmem:[#allocation18 + $0x4e4] ss:$16 sps:$4 sm:$0xff]   ;;  %v7705_v34 = vld [vmem:[#allocation18 + $0x4ec] ss:$16 sps:$4 sm:$0xff]  }
 0x629   :  { %5949 = vmatpush1.bf16.msra.mxu1 %v7634_v43  ;;  %6277 = vmatpush1.bf16.msra.mxu0 %v7637_v44  ;;  %v7700_v43 = vld [vmem:[#allocation18 + $0x4e0] ss:$16 sps:$4 sm:$0xff]   ;;  %v7703_v44 = vld [vmem:[#allocation18 + $0x4e8] ss:$16 sps:$4 sm:$0xff]  }
 0x62a   :  { %5950 = vmatprep.subr.bf16.mxu1 %v7642_v31  ;;  %6278 = vmatprep.subr.bf16.mxu0 %v7645_v53  ;;  %v7708_v31 = vld [vmem:[#allocation18 + $0x504] ss:$16 sps:$4 sm:$0xff]   ;;  %v7711_v53 = vld [vmem:[#allocation18 + $0x50c] ss:$16 sps:$4 sm:$0xff]  }
 0x62d   :  { %5951 = vmatpush1.bf16.msra.mxu1 %v7640_v55  ;;  %6279 = vmatpush1.bf16.msra.mxu0 %v7643_v49  ;;  %v7706_v55 = vld [vmem:[#allocation18 + $0x500] ss:$16 sps:$4 sm:$0xff]   ;;  %v7709_v49 = vld [vmem:[#allocation18 + $0x508] ss:$16 sps:$4 sm:$0xff]  }
 0x62e   :  { %5952 = vmatprep.subr.bf16.mxu1 %v7648_v48  ;;  %6280 = vmatprep.subr.bf16.mxu0 %v7651_v57  ;;  %v7714_v48 = vld [vmem:[#allocation18 + $0x524] ss:$16 sps:$4 sm:$0xff]   ;;  %v7717_v57 = vld [vmem:[#allocation18 + $0x52c] ss:$16 sps:$4 sm:$0xff]  }
 0x631   :  { %5953 = vmatpush1.bf16.msra.mxu1 %v7646_v59  ;;  %6281 = vmatpush1.bf16.msra.mxu0 %v7649_v15  ;;  %v7712_v59 = vld [vmem:[#allocation18 + $0x520] ss:$16 sps:$4 sm:$0xff]   ;;  %v7715_v15 = vld [vmem:[#allocation18 + $0x528] ss:$16 sps:$4 sm:$0xff]  }
 0x632   :  { %5954 = vmatprep.subr.bf16.mxu1 %v7654_v40  ;;  %6282 = vmatprep.subr.bf16.mxu0 %v7657_v63  ;;  %v7720_v40 = vld [vmem:[#allocation18 + $0x544] ss:$16 sps:$4 sm:$0xff]   ;;  %v7723_v63 = vld [vmem:[#allocation18 + $0x54c] ss:$16 sps:$4 sm:$0xff]  }
 0x635   :  { %5955 = vmatpush1.bf16.msra.mxu1 %v7652_v6  ;;  %6283 = vmatpush1.bf16.msra.mxu0 %v7655_v27  ;;  %v7718_v6 = vld [vmem:[#allocation18 + $0x540] ss:$16 sps:$4 sm:$0xff]   ;;  %v7721_v27 = vld [vmem:[#allocation18 + $0x548] ss:$16 sps:$4 sm:$0xff]  }
 0x636   :  { %5965 = vmatprep.subr.bf16.mxu1 %v7660_v8  ;;  %6293 = vmatprep.subr.bf16.mxu0 %v7663_v7  ;;  %v7726_v8 = vld [vmem:[#allocation18 + $0x564] ss:$16 sps:$4 sm:$0xff]   ;;  %v7729_v7 = vld [vmem:[#allocation18 + $0x56c] ss:$16 sps:$4 sm:$0xff]  }
 0x638   :  { %5957 = vmatmul.mubr.bf16.vlgmr.msra.gmra.mrb[16].mxu1 %v7368_v14  ;;  %6285 = vmatmul.mubr.bf16.vlgmr.msra.gmra.mrb[20].mxu0 %v7368_v14  ;;  %v7727_v14 = vld [vmem:[#allocation18 + $0x568] ss:$16 sps:$4 sm:$0xff]  }
 0x639   :  { %5966 = vmatpush1.bf16.msra.mxu1 %v7658_v28  ;;  %5997 = vmatprep.mubr.bf16.mxu1 %v7371_v60  ;;  %v7724_v28 = vld [vmem:[#allocation18 + $0x560] ss:$16 sps:$4 sm:$0xff]  }
 0x63a   :  { %6294 = vmatpush1.bf16.msra.mxu0 %v7661_v16  ;;  %6325 = vmatprep.mubr.bf16.mxu0 %v7371_v60  ;;  %v7732_v16 = vld [vmem:[#allocation18 + $0x584] ss:$16 sps:$4 sm:$0xff]   ;;  %v7735_v60 = vld [vmem:[#allocation18 + $0x58c] ss:$16 sps:$4 sm:$0xff]  }
 0x63b   :  { %5967 = vmatprep.subr.bf16.mxu1 %v7666_v18  ;;  %6295 = vmatprep.subr.bf16.mxu0 %v7669_v11  ;;  %v7730_v18 = vld [vmem:[#allocation18 + $0x580] ss:$16 sps:$4 sm:$0xff]   ;;  %v7733_v11 = vld [vmem:[#allocation18 + $0x588] ss:$16 sps:$4 sm:$0xff]  }
 0x63d   :  { %5968 = vmatpush1.bf16.msra.mxu1 %v7664_v19  ;;  %v7738_v19 = vld [vmem:[#allocation18 + $0x5a4] ss:$16 sps:$4 sm:$0xff]  }
 0x63e   :  { %6296 = vmatpush1.bf16.msra.mxu0 %v7667_v22  ;;  %5969 = vmatprep.subr.bf16.mxu1 %v7672_v2  ;;  %v7741_v22 = vld [vmem:[#allocation18 + $0x5ac] ss:$16 sps:$4 sm:$0xff]   ;;  %v7736_v2 = vld [vmem:[#allocation18 + $0x5a0] ss:$16 sps:$4 sm:$0xff]  }
 0x63f   :  { %6297 = vmatprep.subr.bf16.mxu0 %v7675_v1  ;;  %v7739_v1 = vld [vmem:[#allocation18 + $0x5a8] ss:$16 sps:$4 sm:$0xff]  }
 0x641   :  { %5970 = vmatpush1.bf16.msra.mxu1 %v7670_v21  ;;  %v7744_v21 = vld [vmem:[#allocation18 + $0x5c4] ss:$16 sps:$4 sm:$0xff]  }
 0x642   :  { %6298 = vmatpush1.bf16.msra.mxu0 %v7673_v23  ;;  %5971 = vmatprep.subr.bf16.mxu1 %v7678_v3  ;;  %v7747_v23 = vld [vmem:[#allocation18 + $0x5cc] ss:$16 sps:$4 sm:$0xff]   ;;  %v7742_v3 = vld [vmem:[#allocation18 + $0x5c0] ss:$16 sps:$4 sm:$0xff]  }
 0x643   :  { %6299 = vmatprep.subr.bf16.mxu0 %v7681_v24  ;;  %v7745_v24 = vld [vmem:[#allocation18 + $0x5c8] ss:$16 sps:$4 sm:$0xff]  }
 0x645   :  { %5972 = vmatpush1.bf16.msra.mxu1 %v7676_v9  ;;  %v7750_v9 = vld [vmem:[#allocation18 + $0x5e4] ss:$16 sps:$4 sm:$0xff]  }
 0x646   :  { %6300 = vmatpush1.bf16.msra.mxu0 %v7679_v30  ;;  %5973 = vmatprep.subr.bf16.mxu1 %v7684_v4  ;;  %v7753_v30 = vld [vmem:[#allocation18 + $0x5ec] ss:$16 sps:$4 sm:$0xff]   ;;  %v7748_v4 = vld [vmem:[#allocation18 + $0x5e0] ss:$16 sps:$4 sm:$0xff]  }
 0x647   :  { %6301 = vmatprep.subr.bf16.mxu0 %v7687_v35  ;;  %v7751_v35 = vld [vmem:[#allocation18 + $0x5e8] ss:$16 sps:$4 sm:$0xff]  }
 0x649   :  { %5974 = vmatpush1.bf16.msra.mxu1 %v7682_v38  ;;  %v7756_v38 = vld [vmem:[#allocation18 + $0x604] ss:$16 sps:$4 sm:$0xff]  }
 0x64a   :  { %6302 = vmatpush1.bf16.msra.mxu0 %v7685_v39  ;;  %5975 = vmatprep.subr.bf16.mxu1 %v7690_v32  ;;  %v7759_v39 = vld [vmem:[#allocation18 + $0x60c] ss:$16 sps:$4 sm:$0xff]   ;;  %v7754_v32 = vld [vmem:[#allocation18 + $0x600] ss:$16 sps:$4 sm:$0xff]  }
 0x64b   :  { %6303 = vmatprep.subr.bf16.mxu0 %v7693_v29  ;;  %v7370_v29 = vpack.c.bf16 %v9044_v56, %v9044_v56  ;;  %v7766_v56 = vld [vmem:[#allocation18 + $0x640] ss:$16 sps:$4 sm:$0xff]  }
 0x64d   :  { %5976 = vmatpush1.bf16.msra.mxu1 %v7688_v62  ;;  %v7757_v62 = vld [vmem:[#allocation18 + $0x608] ss:$16 sps:$4 sm:$0xff]  }
 0x64e   :  { %6304 = vmatpush1.bf16.msra.mxu0 %v7691_v42  ;;  %5977 = vmatprep.subr.bf16.mxu1 %v7696_v26  ;;  %v7762_v42 = vld [vmem:[#allocation18 + $0x624] ss:$16 sps:$4 sm:$0xff]   ;;  %v7373_v26 = vpack.c.bf16 %v9046_v54, %v9046_v54  ;;  %v7777_v54 = vld [vmem:[#allocation18 + $0x66c] ss:$16 sps:$4 sm:$0xff]  }
 0x64f   :  { %6305 = vmatprep.subr.bf16.mxu0 %v7699_v41  ;;  %v7765_v41 = vld [vmem:[#allocation18 + $0x62c] ss:$16 sps:$4 sm:$0xff]  }
 0x651   :  { %5978 = vmatpush1.bf16.msra.mxu1 %v7694_v0  ;;  %v7760_v0 = vld [vmem:[#allocation18 + $0x620] ss:$16 sps:$4 sm:$0xff]  }
 0x652   :  { %6306 = vmatpush1.bf16.msra.mxu0 %v7697_v37  ;;  %5979 = vmatprep.subr.bf16.mxu1 %v7702_v33  ;;  %v7763_v37 = vld [vmem:[#allocation18 + $0x628] ss:$16 sps:$4 sm:$0xff]   ;;  %v7768_v33 = vld [vmem:[#allocation18 + $0x644] ss:$16 sps:$4 sm:$0xff]  }
 0x653   :  { %6307 = vmatprep.subr.bf16.mxu0 %v7705_v34  ;;  %v7771_v34 = vld [vmem:[#allocation18 + $0x64c] ss:$16 sps:$4 sm:$0xff]  }
 0x655   :  { %5980 = vmatpush1.bf16.msra.mxu1 %v7700_v43  ;;  %v7769_v43 = vld [vmem:[#allocation18 + $0x648] ss:$16 sps:$4 sm:$0xff]  }
 0x656   :  { %6308 = vmatpush1.bf16.msra.mxu0 %v7703_v44  ;;  %5981 = vmatprep.subr.bf16.mxu1 %v7708_v31  ;;  %v7774_v44 = vld [vmem:[#allocation18 + $0x664] ss:$16 sps:$4 sm:$0xff]   ;;  %v7772_v31 = vld [vmem:[#allocation18 + $0x660] ss:$16 sps:$4 sm:$0xff]  }
 0x657   :  { %6309 = vmatprep.subr.bf16.mxu0 %v7711_v53  ;;  %v7775_v53 = vld [vmem:[#allocation18 + $0x668] ss:$16 sps:$4 sm:$0xff]  }
 0x659   :  { %5982 = vmatpush1.bf16.msra.mxu1 %v7706_v55  ;;  %v7780_v55 = vld [vmem:[#allocation18 + $0x684] ss:$16 sps:$4 sm:$0xff]  }
 0x65a   :  { %6310 = vmatpush1.bf16.msra.mxu0 %v7709_v49  ;;  %5983 = vmatprep.subr.bf16.mxu1 %v7714_v48  ;;  %v7783_v49 = vld [vmem:[#allocation18 + $0x68c] ss:$16 sps:$4 sm:$0xff]   ;;  %v7778_v48 = vld [vmem:[#allocation18 + $0x680] ss:$16 sps:$4 sm:$0xff]  }
 0x65b   :  { %6311 = vmatprep.subr.bf16.mxu0 %v7717_v57  ;;  %v7781_v57 = vld [vmem:[#allocation18 + $0x688] ss:$16 sps:$4 sm:$0xff]  }
 0x65d   :  { %5984 = vmatpush1.bf16.msra.mxu1 %v7712_v59  ;;  %v7786_v59 = vld [vmem:[#allocation18 + $0x6a4] ss:$16 sps:$4 sm:$0xff]  }
 0x65e   :  { %6312 = vmatpush1.bf16.msra.mxu0 %v7715_v15  ;;  %5985 = vmatprep.subr.bf16.mxu1 %v7720_v40  ;;  %v7789_v15 = vld [vmem:[#allocation18 + $0x6ac] ss:$16 sps:$4 sm:$0xff]   ;;  %v7784_v40 = vld [vmem:[#allocation18 + $0x6a0] ss:$16 sps:$4 sm:$0xff]  }
 0x65f   :  { %6313 = vmatprep.subr.bf16.mxu0 %v7723_v63  ;;  %v7787_v63 = vld [vmem:[#allocation18 + $0x6a8] ss:$16 sps:$4 sm:$0xff]  }
 0x661   :  { %5986 = vmatpush1.bf16.msra.mxu1 %v7718_v6  ;;  %v7792_v6 = vld [vmem:[#allocation18 + $0x6c4] ss:$16 sps:$4 sm:$0xff]  }
 0x662   :  { %6314 = vmatpush1.bf16.msra.mxu0 %v7721_v27  ;;  %5987 = vmatprep.subr.bf16.mxu1 %v7726_v8  ;;  %v7795_v27 = vld [vmem:[#allocation18 + $0x6cc] ss:$16 sps:$4 sm:$0xff]   ;;  %v7790_v8 = vld [vmem:[#allocation18 + $0x6c0] ss:$16 sps:$4 sm:$0xff]  }
 0x663   :  { %6315 = vmatprep.subr.bf16.mxu0 %v7729_v7  ;;  %v7793_v7 = vld [vmem:[#allocation18 + $0x6c8] ss:$16 sps:$4 sm:$0xff]  }
 0x665   :  { %5988 = vmatpush1.bf16.msra.mxu1 %v7724_v28  ;;  %v7798_v28 = vld [vmem:[#allocation18 + $0x6e4] ss:$16 sps:$4 sm:$0xff]  }
 0x666   :  { %6316 = vmatpush1.bf16.msra.mxu0 %v7727_v14  ;;  %5989 = vmatprep.subr.bf16.mxu1 %v7732_v16  ;;  %v7801_v14 = vld [vmem:[#allocation18 + $0x6ec] ss:$16 sps:$4 sm:$0xff]   ;;  %v7796_v16 = vld [vmem:[#allocation18 + $0x6e0] ss:$16 sps:$4 sm:$0xff]  }
 0x667   :  { %6317 = vmatprep.subr.bf16.mxu0 %v7735_v60  ;;  %v7799_v60 = vld [vmem:[#allocation18 + $0x6e8] ss:$16 sps:$4 sm:$0xff]  }
 0x669   :  { %5990 = vmatpush1.bf16.msra.mxu1 %v7730_v18  ;;  %v7804_v18 = vld [vmem:[#allocation18 + $0x704] ss:$16 sps:$4 sm:$0xff]  }
 0x66a   :  { %6318 = vmatpush1.bf16.msra.mxu0 %v7733_v11  ;;  %5991 = vmatprep.subr.bf16.mxu1 %v7738_v19  ;;  %v7807_v11 = vld [vmem:[#allocation18 + $0x70c] ss:$16 sps:$4 sm:$0xff]   ;;  %v7802_v19 = vld [vmem:[#allocation18 + $0x700] ss:$16 sps:$4 sm:$0xff]  }
 0x66b   :  { %6319 = vmatprep.subr.bf16.mxu0 %v7741_v22  ;;  %v7805_v22 = vld [vmem:[#allocation18 + $0x708] ss:$16 sps:$4 sm:$0xff]  }
 0x66d   :  { %5992 = vmatpush1.bf16.msra.mxu1 %v7736_v2  ;;  %v7810_v2 = vld [vmem:[#allocation18 + $0x724] ss:$16 sps:$4 sm:$0xff]  }
 0x66e   :  { %6320 = vmatpush1.bf16.msra.mxu0 %v7739_v1  ;;  %5993 = vmatprep.subr.bf16.mxu1 %v7744_v21  ;;  %v7813_v1 = vld [vmem:[#allocation18 + $0x72c] ss:$16 sps:$4 sm:$0xff]   ;;  %v7808_v21 = vld [vmem:[#allocation18 + $0x720] ss:$16 sps:$4 sm:$0xff]  }
 0x66f   :  { %6321 = vmatprep.subr.bf16.mxu0 %v7747_v23  ;;  %v7811_v23 = vld [vmem:[#allocation18 + $0x728] ss:$16 sps:$4 sm:$0xff]  }
 0x671   :  { %5994 = vmatpush1.bf16.msra.mxu1 %v7742_v3  ;;  %v7816_v3 = vld [vmem:[#allocation18 + $0x744] ss:$16 sps:$4 sm:$0xff]  }
 0x672   :  { %6322 = vmatpush1.bf16.msra.mxu0 %v7745_v24  ;;  %5995 = vmatprep.subr.bf16.mxu1 %v7750_v9  ;;  %v7819_v24 = vld [vmem:[#allocation18 + $0x74c] ss:$16 sps:$4 sm:$0xff]   ;;  %v7814_v9 = vld [vmem:[#allocation18 + $0x740] ss:$16 sps:$4 sm:$0xff]  }
 0x673   :  { %6323 = vmatprep.subr.bf16.mxu0 %v7753_v30  ;;  %v7817_v30 = vld [vmem:[#allocation18 + $0x748] ss:$16 sps:$4 sm:$0xff]  }
 0x675   :  { %5996 = vmatpush1.bf16.msra.mxu1 %v7748_v4  ;;  %v7822_v4 = vld [vmem:[#allocation18 + $0x764] ss:$16 sps:$4 sm:$0xff]  }
 0x676   :  { %6324 = vmatpush1.bf16.msra.mxu0 %v7751_v35  ;;  %6006 = vmatprep.subr.bf16.mxu1 %v7756_v38  ;;  %v7825_v35 = vld [vmem:[#allocation18 + $0x76c] ss:$16 sps:$4 sm:$0xff]   ;;  %v7820_v38 = vld [vmem:[#allocation18 + $0x760] ss:$16 sps:$4 sm:$0xff]  }
 0x677   :  { %6334 = vmatprep.subr.bf16.mxu0 %v7759_v39  ;;  %v7823_v39 = vld [vmem:[#allocation18 + $0x768] ss:$16 sps:$4 sm:$0xff]  }
 0x678   :  { %5998 = vmatmul.mubr.bf16.vlgmr.msra.gmra.mrb[16].mxu1 %v7370_v29 }
 0x679   :  { %6326 = vmatmul.mubr.bf16.vlgmr.msra.gmra.mrb[20].mxu0 %v7370_v29  ;;  %6007 = vmatpush1.bf16.msra.mxu1 %v7754_v32  ;;  %v7828_v32 = vld [vmem:[#allocation18 + $0x784] ss:$16 sps:$4 sm:$0xff]   ;;  %v7831_v29 = vld [vmem:[#allocation18 + $0x78c] ss:$16 sps:$4 sm:$0xff]  }
 0x67a   :  { %6038 = vmatprep.mubr.bf16.mxu1 %v7373_v26  ;;  %6335 = vmatpush1.bf16.msra.mxu0 %v7757_v62  ;;  %v7826_v62 = vld [vmem:[#allocation18 + $0x780] ss:$16 sps:$4 sm:$0xff]  }
 0x67b   :  { %6366 = vmatprep.mubr.bf16.mxu0 %v7373_v26  ;;  %6008 = vmatprep.subr.bf16.mxu1 %v7762_v42  ;;  %v7829_v42 = vld [vmem:[#allocation18 + $0x788] ss:$16 sps:$4 sm:$0xff]   ;;  %v7834_v26 = vld [vmem:[#allocation18 + $0x7a4] ss:$16 sps:$4 sm:$0xff]  }
 0x67c   :  { %6336 = vmatprep.subr.bf16.mxu0 %v7765_v41  ;;  %v7837_v41 = vld [vmem:[#allocation18 + $0x7ac] ss:$16 sps:$4 sm:$0xff]  }
 0x67d   :  { %6009 = vmatpush1.bf16.msra.mxu1 %v7760_v0  ;;  %v7832_v0 = vld [vmem:[#allocation18 + $0x7a0] ss:$16 sps:$4 sm:$0xff]  }
 0x67e   :  { %6337 = vmatpush1.bf16.msra.mxu0 %v7763_v37  ;;  %6010 = vmatprep.subr.bf16.mxu1 %v7768_v33  ;;  %v7835_v37 = vld [vmem:[#allocation18 + $0x7a8] ss:$16 sps:$4 sm:$0xff]   ;;  %v7840_v33 = vld [vmem:[#allocation18 + $0x7c4] ss:$16 sps:$4 sm:$0xff]  }
 0x67f   :  { %6338 = vmatprep.subr.bf16.mxu0 %v7771_v34  ;;  %v7843_v34 = vld [vmem:[#allocation18 + $0x7cc] ss:$16 sps:$4 sm:$0xff]  }
 0x681   :  { %6011 = vmatpush1.bf16.msra.mxu1 %v7766_v56  ;;  %v2444_v56 = vmul.f32 %v9015_v36, %v8962_v61  ;;  %v7847_v61 = vld [vmem:[#allocation18 + $0x7e8] ss:$16 sps:$4 sm:$0xff]  }
 0x682   :  { %6339 = vmatpush1.bf16.msra.mxu0 %v7769_v43  ;;  %6012 = vmatprep.subr.bf16.mxu1 %v7774_v44  ;;  %v2492_v43 = vrot.slane %v9005_v20, %v8776_v12  ;;  %v7838_v44 = vld [vmem:[#allocation18 + $0x7c0] ss:$16 sps:$4 sm:$0xff]   ;;  %v7855_v20 = vld [vmem:[#allocation18 + $0x80c] ss:$16 sps:$4 sm:$0xff]  }
 0x683   :  { %6340 = vmatprep.subr.bf16.mxu0 %v7777_v54  ;;  %v7841_v54 = vld [vmem:[#allocation18 + $0x7c8] ss:$16 sps:$4 sm:$0xff]  }
 0x685   :  { %6013 = vmatpush1.bf16.msra.mxu1 %v7772_v31  ;;  %v7846_v31 = vld [vmem:[#allocation18 + $0x7e4] ss:$16 sps:$4 sm:$0xff]  }
 0x686   :  { %6341 = vmatpush1.bf16.msra.mxu0 %v7775_v53  ;;  %6014 = vmatprep.subr.bf16.mxu1 %v7780_v55  ;;  %v7849_v53 = vld [vmem:[#allocation18 + $0x7ec] ss:$16 sps:$4 sm:$0xff]   ;;  %v2542_v55 = vmul.f32 %v2492_v43, %v2444_v56  ;;  %v7907_v56 = vld [vmem:[#allocation18 + $0x928] ss:$16 sps:$4 sm:$0xff]   ;;  %v7912_v43 = vld [vmem:[#allocation18 + $0x944] ss:$16 sps:$4 sm:$0xff]  }
 0x687   :  { %6342 = vmatprep.subr.bf16.mxu0 %v7783_v49  ;;  %v2590_v49 = vrot.slane %v9040_v50, %v8776_v12 }
 0x689   :  { %6015 = vmatpush1.bf16.msra.mxu1 %v7778_v48  ;;  %v7844_v48 = vld [vmem:[#allocation18 + $0x7e0] ss:$16 sps:$4 sm:$0xff]  }
 0x68a   :  { %6343 = vmatpush1.bf16.msra.mxu0 %v7781_v57  ;;  %6016 = vmatprep.subr.bf16.mxu1 %v7786_v59  ;;  %v7852_v57 = vld [vmem:[#allocation18 + $0x804] ss:$16 sps:$4 sm:$0xff]   ;;  %v2640_v59 = vadd.f32 %v2590_v49, %v2542_v55  ;;  %v7921_v55 = vld [vmem:[#allocation18 + $0x96c] ss:$16 sps:$4 sm:$0xff]   ;;  %v7916_v49 = vld [vmem:[#allocation18 + $0x960] ss:$16 sps:$4 sm:$0xff]  }
 0x68b   :  { %6344 = vmatprep.subr.bf16.mxu0 %v7789_v15  ;;  %v7850_v15 = vld [vmem:[#allocation18 + $0x800] ss:$16 sps:$4 sm:$0xff]  }
 0x68c   :  { %v7375_v50 = vpack.c.bf16 %v2640_v59, %v2640_v59  ;;  %v7925_v59 = vld [vmem:[#allocation18 + $0x988] ss:$16 sps:$4 sm:$0xff]  }
 0x68d   :  { %6017 = vmatpush1.bf16.msra.mxu1 %v7784_v40  ;;  %v7372_v40 = vpack.c.bf16 %v9048_v47, %v9048_v47  ;;  %v7862_v47 = vld [vmem:[#allocation18 + $0x840] ss:$16 sps:$4 sm:$0xff]  }
 0x68e   :  { %6345 = vmatpush1.bf16.msra.mxu0 %v7787_v63  ;;  %6018 = vmatprep.subr.bf16.mxu1 %v7792_v6  ;;  %v7853_v63 = vld [vmem:[#allocation18 + $0x808] ss:$16 sps:$4 sm:$0xff]   ;;  %v7858_v6 = vld [vmem:[#allocation18 + $0x824] ss:$16 sps:$4 sm:$0xff]  }
 0x68f   :  { %6346 = vmatprep.subr.bf16.mxu0 %v7795_v27  ;;  %v7861_v27 = vld [vmem:[#allocation18 + $0x82c] ss:$16 sps:$4 sm:$0xff]  }
 0x691   :  { %6019 = vmatpush1.bf16.msra.mxu1 %v7790_v8  ;;  %v7856_v8 = vld [vmem:[#allocation18 + $0x820] ss:$16 sps:$4 sm:$0xff]  }
 0x692   :  { %6347 = vmatpush1.bf16.msra.mxu0 %v7793_v7  ;;  %6020 = vmatprep.subr.bf16.mxu1 %v7798_v28  ;;  %v7859_v7 = vld [vmem:[#allocation18 + $0x828] ss:$16 sps:$4 sm:$0xff]   ;;  %v7864_v28 = vld [vmem:[#allocation18 + $0x844] ss:$16 sps:$4 sm:$0xff]  }
 0x693   :  { %6348 = vmatprep.subr.bf16.mxu0 %v7801_v14  ;;  %v7867_v14 = vld [vmem:[#allocation18 + $0x84c] ss:$16 sps:$4 sm:$0xff]  }
 0x695   :  { %6021 = vmatpush1.bf16.msra.mxu1 %v7796_v16  ;;  %v7865_v16 = vld [vmem:[#allocation18 + $0x848] ss:$16 sps:$4 sm:$0xff]  }
 0x696   :  { %6349 = vmatpush1.bf16.msra.mxu0 %v7799_v60  ;;  %6022 = vmatprep.subr.bf16.mxu1 %v7804_v18  ;;  %v7870_v60 = vld [vmem:[#allocation18 + $0x864] ss:$16 sps:$4 sm:$0xff]   ;;  %v7873_v18 = vld [vmem:[#allocation18 + $0x86c] ss:$16 sps:$4 sm:$0xff]  }
 0x697   :  { %6350 = vmatprep.subr.bf16.mxu0 %v7807_v11  ;;  %v7868_v11 = vld [vmem:[#allocation18 + $0x860] ss:$16 sps:$4 sm:$0xff]  }
 0x699   :  { %6023 = vmatpush1.bf16.msra.mxu1 %v7802_v19  ;;  %v7871_v19 = vld [vmem:[#allocation18 + $0x868] ss:$16 sps:$4 sm:$0xff]  }
 0x69a   :  { %6351 = vmatpush1.bf16.msra.mxu0 %v7805_v22  ;;  %6024 = vmatprep.subr.bf16.mxu1 %v7810_v2  ;;  %v7876_v22 = vld [vmem:[#allocation18 + $0x884] ss:$16 sps:$4 sm:$0xff]   ;;  %v7879_v2 = vld [vmem:[#allocation18 + $0x88c] ss:$16 sps:$4 sm:$0xff]  }
 0x69b   :  { %6352 = vmatprep.subr.bf16.mxu0 %v7813_v1  ;;  %v7874_v1 = vld [vmem:[#allocation18 + $0x880] ss:$16 sps:$4 sm:$0xff]  }
 0x69d   :  { %6025 = vmatpush1.bf16.msra.mxu1 %v7808_v21  ;;  %v7877_v21 = vld [vmem:[#allocation18 + $0x888] ss:$16 sps:$4 sm:$0xff]  }
 0x69e   :  { %6353 = vmatpush1.bf16.msra.mxu0 %v7811_v23  ;;  %6026 = vmatprep.subr.bf16.mxu1 %v7816_v3  ;;  %v7882_v23 = vld [vmem:[#allocation18 + $0x8a4] ss:$16 sps:$4 sm:$0xff]   ;;  %v7885_v3 = vld [vmem:[#allocation18 + $0x8ac] ss:$16 sps:$4 sm:$0xff]  }
 0x69f   :  { %6354 = vmatprep.subr.bf16.mxu0 %v7819_v24  ;;  %v7880_v24 = vld [vmem:[#allocation18 + $0x8a0] ss:$16 sps:$4 sm:$0xff]  }
 0x6a1   :  { %6027 = vmatpush1.bf16.msra.mxu1 %v7814_v9  ;;  %v7883_v9 = vld [vmem:[#allocation18 + $0x8a8] ss:$16 sps:$4 sm:$0xff]  }
 0x6a2   :  { %6355 = vmatpush1.bf16.msra.mxu0 %v7817_v30  ;;  %6028 = vmatprep.subr.bf16.mxu1 %v7822_v4  ;;  %v7888_v30 = vld [vmem:[#allocation18 + $0x8c4] ss:$16 sps:$4 sm:$0xff]   ;;  %v7891_v4 = vld [vmem:[#allocation18 + $0x8cc] ss:$16 sps:$4 sm:$0xff]  }
 0x6a3   :  { %6356 = vmatprep.subr.bf16.mxu0 %v7825_v35  ;;  %v7886_v35 = vld [vmem:[#allocation18 + $0x8c0] ss:$16 sps:$4 sm:$0xff]  }
 0x6a5   :  { %6029 = vmatpush1.bf16.msra.mxu1 %v7820_v38  ;;  %v7889_v38 = vld [vmem:[#allocation18 + $0x8c8] ss:$16 sps:$4 sm:$0xff]  }
 0x6a6   :  { %6357 = vmatpush1.bf16.msra.mxu0 %v7823_v39  ;;  %6030 = vmatprep.subr.bf16.mxu1 %v7828_v32  ;;  %v7894_v39 = vld [vmem:[#allocation18 + $0x8e4] ss:$16 sps:$4 sm:$0xff]   ;;  %v7897_v32 = vld [vmem:[#allocation18 + $0x8ec] ss:$16 sps:$4 sm:$0xff]  }
 0x6a7   :  { %6358 = vmatprep.subr.bf16.mxu0 %v7831_v29  ;;  %v7892_v29 = vld [vmem:[#allocation18 + $0x8e0] ss:$16 sps:$4 sm:$0xff]  }
 0x6a9   :  { %6031 = vmatpush1.bf16.msra.mxu1 %v7826_v62  ;;  %v7895_v62 = vld [vmem:[#allocation18 + $0x8e8] ss:$16 sps:$4 sm:$0xff]  }
 0x6aa   :  { %6359 = vmatpush1.bf16.msra.mxu0 %v7829_v42  ;;  %6032 = vmatprep.subr.bf16.mxu1 %v7834_v26  ;;  %v7900_v42 = vld [vmem:[#allocation18 + $0x904] ss:$16 sps:$4 sm:$0xff]   ;;  %v7903_v26 = vld [vmem:[#allocation18 + $0x90c] ss:$16 sps:$4 sm:$0xff]  }
 0x6ab   :  { %6360 = vmatprep.subr.bf16.mxu0 %v7837_v41  ;;  %v7898_v41 = vld [vmem:[#allocation18 + $0x900] ss:$16 sps:$4 sm:$0xff]  }
 0x6ad   :  { %6033 = vmatpush1.bf16.msra.mxu1 %v7832_v0  ;;  %v7901_v0 = vld [vmem:[#allocation18 + $0x908] ss:$16 sps:$4 sm:$0xff]  }
 0x6ae   :  { %6361 = vmatpush1.bf16.msra.mxu0 %v7835_v37  ;;  %6034 = vmatprep.subr.bf16.mxu1 %v7840_v33  ;;  %v7906_v37 = vld [vmem:[#allocation18 + $0x924] ss:$16 sps:$4 sm:$0xff]   ;;  %v7909_v33 = vld [vmem:[#allocation18 + $0x92c] ss:$16 sps:$4 sm:$0xff]  }
 0x6af   :  { %6362 = vmatprep.subr.bf16.mxu0 %v7843_v34  ;;  %v7904_v34 = vld [vmem:[#allocation18 + $0x920] ss:$16 sps:$4 sm:$0xff]  }
 0x6b1   :  { %6035 = vmatpush1.bf16.msra.mxu1 %v7838_v44  ;;  %v7915_v44 = vld [vmem:[#allocation18 + $0x94c] ss:$16 sps:$4 sm:$0xff]  }
 0x6b2   :  { %6363 = vmatpush1.bf16.msra.mxu0 %v7841_v54  ;;  %6036 = vmatprep.subr.bf16.mxu1 %v7846_v31  ;;  %v7910_v54 = vld [vmem:[#allocation18 + $0x940] ss:$16 sps:$4 sm:$0xff]   ;;  %v7913_v31 = vld [vmem:[#allocation18 + $0x948] ss:$16 sps:$4 sm:$0xff]  }
 0x6b3   :  { %6364 = vmatprep.subr.bf16.mxu0 %v7849_v53  ;;  %v7918_v53 = vld [vmem:[#allocation18 + $0x964] ss:$16 sps:$4 sm:$0xff]  }
 0x6b5   :  { %6037 = vmatpush1.bf16.msra.mxu1 %v7844_v48  ;;  %v7919_v48 = vld [vmem:[#allocation18 + $0x968] ss:$16 sps:$4 sm:$0xff]  }
 0x6b6   :  { %6365 = vmatpush1.bf16.msra.mxu0 %v7847_v61  ;;  %6047 = vmatprep.subr.bf16.mxu1 %v7852_v57  ;;  %v7924_v61 = vld [vmem:[#allocation18 + $0x984] ss:$16 sps:$4 sm:$0xff]   ;;  %v7927_v57 = vld [vmem:[#allocation18 + $0x98c] ss:$16 sps:$4 sm:$0xff]  }
 0x6b7   :  { %6375 = vmatprep.subr.bf16.mxu0 %v7855_v20  ;;  %v7922_v20 = vld [vmem:[#allocation18 + $0x980] ss:$16 sps:$4 sm:$0xff]  }
 0x6b8   :  { %6039 = vmatmul.mubr.bf16.vlgmr.msra.gmra.mrb[16].mxu1 %v7372_v40 }
 0x6b9   :  { %6367 = vmatmul.mubr.bf16.vlgmr.msra.gmra.mrb[20].mxu0 %v7372_v40  ;;  %6048 = vmatpush1.bf16.msra.mxu1 %v7850_v15  ;;  %v7930_v15 = vld [vmem:[#allocation18 + $0x9a4] ss:$16 sps:$4 sm:$0xff]   ;;  %v7933_v40 = vld [vmem:[#allocation18 + $0x9ac] ss:$16 sps:$4 sm:$0xff]  }
 0x6ba   :  { %6079 = vmatprep.mubr.bf16.mxu1 %v7375_v50  ;;  %6376 = vmatpush1.bf16.msra.mxu0 %v7853_v63  ;;  %v7928_v63 = vld [vmem:[#allocation18 + $0x9a0] ss:$16 sps:$4 sm:$0xff]  }
 0x6bb   :  { %6407 = vmatprep.mubr.bf16.mxu0 %v7375_v50  ;;  %6049 = vmatprep.subr.bf16.mxu1 %v7858_v6  ;;  %v7931_v6 = vld [vmem:[#allocation18 + $0x9a8] ss:$16 sps:$4 sm:$0xff]   ;;  %v7936_v50 = vld [vmem:[#allocation18 + $0x9c4] ss:$16 sps:$4 sm:$0xff]  }
 0x6bc   :  { %6377 = vmatprep.subr.bf16.mxu0 %v7861_v27  ;;  %v2443_v27 = vmul.f32 %v9015_v36, %v8957_v5  ;;  %v7943_v5 = vld [vmem:[#allocation18 + $0x9e8] ss:$16 sps:$4 sm:$0xff]  }
 0x6bd   :  { %6050 = vmatpush1.bf16.msra.mxu1 %v7856_v8  ;;  %v8274_v8 = vld [vmem:[#allocation15 + $0x8] sm:$0xff] }
 0x6be   :  { %6378 = vmatpush1.bf16.msra.mxu0 %v7859_v7  ;;  %6051 = vmatprep.subr.bf16.mxu1 %v7864_v28  ;;  %v2488_v7 = vrot.slane %v8274_v8, %v8773_v10  ;;  %v7939_v28 = vld [vmem:[#allocation18 + $0x9cc] ss:$16 sps:$4 sm:$0xff]   ;;  %v8008_v8 = vld [vmem:[#allocation18 + $0xb44] ss:$16 sps:$4 sm:$0xff]  }
 0x6bf   :  { %6379 = vmatprep.subr.bf16.mxu0 %v7867_v14  ;;  %v7934_v14 = vld [vmem:[#allocation18 + $0x9c0] ss:$16 sps:$4 sm:$0xff]  }
 0x6c1   :  { %6052 = vmatpush1.bf16.msra.mxu1 %v7862_v47  ;;  %v7937_v47 = vld [vmem:[#allocation18 + $0x9c8] ss:$16 sps:$4 sm:$0xff]  }
 0x6c2   :  { %6380 = vmatpush1.bf16.msra.mxu0 %v7865_v16  ;;  %6053 = vmatprep.subr.bf16.mxu1 %v7870_v60  ;;  %v7942_v16 = vld [vmem:[#allocation18 + $0x9e4] ss:$16 sps:$4 sm:$0xff]   ;;  %v2541_v60 = vmul.f32 %v2488_v7, %v2443_v27  ;;  %v8003_v27 = vld [vmem:[#allocation18 + $0xb28] ss:$16 sps:$4 sm:$0xff]   ;;  %v8011_v7 = vld [vmem:[#allocation18 + $0xb4c] ss:$16 sps:$4 sm:$0xff]  }
 0x6c3   :  { %6381 = vmatprep.subr.bf16.mxu0 %v7873_v18  ;;  %v8275_v18 = vld [vmem:[#allocation17 + $0x8] sm:$0xff] }
 0x6c5   :  { %6054 = vmatpush1.bf16.msra.mxu1 %v7868_v11  ;;  %v2586_v11 = vrot.slane %v8275_v18, %v8773_v10  ;;  %v8015_v18 = vld [vmem:[#allocation18 + $0xb68] ss:$16 sps:$4 sm:$0xff]  }
 0x6c6   :  { %6382 = vmatpush1.bf16.msra.mxu0 %v7871_v19  ;;  %6055 = vmatprep.subr.bf16.mxu1 %v7876_v22  ;;  %v7945_v19 = vld [vmem:[#allocation18 + $0x9ec] ss:$16 sps:$4 sm:$0xff]   ;;  %v7940_v22 = vld [vmem:[#allocation18 + $0x9e0] ss:$16 sps:$4 sm:$0xff]  }
 0x6c7   :  { %6383 = vmatprep.subr.bf16.mxu0 %v7879_v2  ;;  %v2639_v36 = vadd.f32 %v2586_v11, %v2541_v60  ;;  %v7948_v2 = vld [vmem:[#allocation18 + $0xa04] ss:$16 sps:$4 sm:$0xff]   ;;  %v8012_v60 = vld [vmem:[#allocation18 + $0xb60] ss:$16 sps:$4 sm:$0xff]  }
 0x6c8   :  { %v8020_v11 = vld [vmem:[#allocation18 + $0xb84] ss:$16 sps:$4 sm:$0xff]  }
 0x6c9   :  { %6056 = vmatpush1.bf16.msra.mxu1 %v7874_v1  ;;  %v7951_v1 = vld [vmem:[#allocation18 + $0xa0c] ss:$16 sps:$4 sm:$0xff]  }
 0x6ca   :  { %6384 = vmatpush1.bf16.msra.mxu0 %v7877_v21  ;;  %6057 = vmatprep.subr.bf16.mxu1 %v7882_v23  ;;  %v7946_v21 = vld [vmem:[#allocation18 + $0xa00] ss:$16 sps:$4 sm:$0xff]   ;;  %v7374_v23 = vpack.c.bf16 %v2639_v36, %v2639_v36  ;;  %v8026_v36 = vld [vmem:[#allocation18 + $0xba4] ss:$16 sps:$4 sm:$0xff]  }
 0x6cb   :  { %6385 = vmatprep.subr.bf16.mxu0 %v7885_v3  ;;  %v7949_v3 = vld [vmem:[#allocation18 + $0xa08] ss:$16 sps:$4 sm:$0xff]  }
 0x6cd   :  { %6058 = vmatpush1.bf16.msra.mxu1 %v7880_v24  ;;  %v7954_v24 = vld [vmem:[#allocation18 + $0xa24] ss:$16 sps:$4 sm:$0xff]  }
 0x6ce   :  { %6386 = vmatpush1.bf16.msra.mxu0 %v7883_v9  ;;  %6059 = vmatprep.subr.bf16.mxu1 %v7888_v30  ;;  %v7377_v9 = vpack.c.bf16 %v9072_v25, %v9072_v25  ;;  %v7957_v30 = vld [vmem:[#allocation18 + $0xa2c] ss:$16 sps:$4 sm:$0xff]  }
 0x6cf   :  { %6387 = vmatprep.subr.bf16.mxu0 %v7891_v4  ;;  %v7952_v4 = vld [vmem:[#allocation18 + $0xa20] ss:$16 sps:$4 sm:$0xff]   ;;  %v7969_v25 = vld [vmem:[#allocation18 + $0xa6c] ss:$16 sps:$4 sm:$0xff]  }
 0x6d1   :  { %6060 = vmatpush1.bf16.msra.mxu1 %v7886_v35  ;;  %v7955_v35 = vld [vmem:[#allocation18 + $0xa28] ss:$16 sps:$4 sm:$0xff]  }
 0x6d2   :  { %6388 = vmatpush1.bf16.msra.mxu0 %v7889_v38  ;;  %6061 = vmatprep.subr.bf16.mxu1 %v7894_v39  ;;  %v7960_v38 = vld [vmem:[#allocation18 + $0xa44] ss:$16 sps:$4 sm:$0xff]   ;;  %v7963_v39 = vld [vmem:[#allocation18 + $0xa4c] ss:$16 sps:$4 sm:$0xff]  }
 0x6d3   :  { %6389 = vmatprep.subr.bf16.mxu0 %v7897_v32  ;;  %v7958_v32 = vld [vmem:[#allocation18 + $0xa40] ss:$16 sps:$4 sm:$0xff]  }
 0x6d5   :  { %6062 = vmatpush1.bf16.msra.mxu1 %v7892_v29  ;;  %v7961_v29 = vld [vmem:[#allocation18 + $0xa48] ss:$16 sps:$4 sm:$0xff]  }
 0x6d6   :  { %6390 = vmatpush1.bf16.msra.mxu0 %v7895_v62  ;;  %6063 = vmatprep.subr.bf16.mxu1 %v7900_v42  ;;  %v7966_v62 = vld [vmem:[#allocation18 + $0xa64] ss:$16 sps:$4 sm:$0xff]   ;;  %v7964_v42 = vld [vmem:[#allocation18 + $0xa60] ss:$16 sps:$4 sm:$0xff]  }
 0x6d7   :  { %6391 = vmatprep.subr.bf16.mxu0 %v7903_v26  ;;  %v7967_v26 = vld [vmem:[#allocation18 + $0xa68] ss:$16 sps:$4 sm:$0xff]  }
 0x6d9   :  { %6064 = vmatpush1.bf16.msra.mxu1 %v7898_v41  ;;  %v7972_v41 = vld [vmem:[#allocation18 + $0xa84] ss:$16 sps:$4 sm:$0xff]  }
 0x6da   :  { %6392 = vmatpush1.bf16.msra.mxu0 %v7901_v0  ;;  %6065 = vmatprep.subr.bf16.mxu1 %v7906_v37  ;;  %v7975_v0 = vld [vmem:[#allocation18 + $0xa8c] ss:$16 sps:$4 sm:$0xff]   ;;  %v7970_v37 = vld [vmem:[#allocation18 + $0xa80] ss:$16 sps:$4 sm:$0xff]  }
 0x6db   :  { %6393 = vmatprep.subr.bf16.mxu0 %v7909_v33  ;;  %v7973_v33 = vld [vmem:[#allocation18 + $0xa88] ss:$16 sps:$4 sm:$0xff]  }
 0x6dd   :  { %6066 = vmatpush1.bf16.msra.mxu1 %v7904_v34  ;;  %v7978_v34 = vld [vmem:[#allocation18 + $0xaa4] ss:$16 sps:$4 sm:$0xff]  }
 0x6de   :  { %6394 = vmatpush1.bf16.msra.mxu0 %v7907_v56  ;;  %6067 = vmatprep.subr.bf16.mxu1 %v7912_v43  ;;  %v7981_v56 = vld [vmem:[#allocation18 + $0xaac] ss:$16 sps:$4 sm:$0xff]   ;;  %v7976_v43 = vld [vmem:[#allocation18 + $0xaa0] ss:$16 sps:$4 sm:$0xff]  }
 0x6df   :  { %6395 = vmatprep.subr.bf16.mxu0 %v7915_v44  ;;  %v7979_v44 = vld [vmem:[#allocation18 + $0xaa8] ss:$16 sps:$4 sm:$0xff]  }
 0x6e1   :  { %6068 = vmatpush1.bf16.msra.mxu1 %v7910_v54  ;;  %v7984_v54 = vld [vmem:[#allocation18 + $0xac4] ss:$16 sps:$4 sm:$0xff]  }
 0x6e2   :  { %6396 = vmatpush1.bf16.msra.mxu0 %v7913_v31  ;;  %6069 = vmatprep.subr.bf16.mxu1 %v7918_v53  ;;  %v7987_v31 = vld [vmem:[#allocation18 + $0xacc] ss:$16 sps:$4 sm:$0xff]   ;;  %v7982_v53 = vld [vmem:[#allocation18 + $0xac0] ss:$16 sps:$4 sm:$0xff]  }
 0x6e3   :  { %6397 = vmatprep.subr.bf16.mxu0 %v7921_v55  ;;  %v7985_v55 = vld [vmem:[#allocation18 + $0xac8] ss:$16 sps:$4 sm:$0xff]  }
 0x6e5   :  { %6070 = vmatpush1.bf16.msra.mxu1 %v7916_v49  ;;  %v7990_v49 = vld [vmem:[#allocation18 + $0xae4] ss:$16 sps:$4 sm:$0xff]  }
 0x6e6   :  { %6398 = vmatpush1.bf16.msra.mxu0 %v7919_v48  ;;  %6071 = vmatprep.subr.bf16.mxu1 %v7924_v61  ;;  %v7993_v48 = vld [vmem:[#allocation18 + $0xaec] ss:$16 sps:$4 sm:$0xff]   ;;  %v7988_v61 = vld [vmem:[#allocation18 + $0xae0] ss:$16 sps:$4 sm:$0xff]  }
 0x6e7   :  { %6399 = vmatprep.subr.bf16.mxu0 %v7927_v57  ;;  %v7991_v57 = vld [vmem:[#allocation18 + $0xae8] ss:$16 sps:$4 sm:$0xff]  }
 0x6e9   :  { %6072 = vmatpush1.bf16.msra.mxu1 %v7922_v20  ;;  %v7996_v20 = vld [vmem:[#allocation18 + $0xb04] ss:$16 sps:$4 sm:$0xff]  }
 0x6ea   :  { %6400 = vmatpush1.bf16.msra.mxu0 %v7925_v59  ;;  %6073 = vmatprep.subr.bf16.mxu1 %v7930_v15  ;;  %v7999_v59 = vld [vmem:[#allocation18 + $0xb0c] ss:$16 sps:$4 sm:$0xff]   ;;  %v7994_v15 = vld [vmem:[#allocation18 + $0xb00] ss:$16 sps:$4 sm:$0xff]  }
 0x6eb   :  { %6401 = vmatprep.subr.bf16.mxu0 %v7933_v40  ;;  %v7997_v40 = vld [vmem:[#allocation18 + $0xb08] ss:$16 sps:$4 sm:$0xff]  }
 0x6ed   :  { %6074 = vmatpush1.bf16.msra.mxu1 %v7928_v63  ;;  %v8002_v63 = vld [vmem:[#allocation18 + $0xb24] ss:$16 sps:$4 sm:$0xff]  }
 0x6ee   :  { %6402 = vmatpush1.bf16.msra.mxu0 %v7931_v6  ;;  %6075 = vmatprep.subr.bf16.mxu1 %v7936_v50  ;;  %v8005_v6 = vld [vmem:[#allocation18 + $0xb2c] ss:$16 sps:$4 sm:$0xff]   ;;  %v8000_v50 = vld [vmem:[#allocation18 + $0xb20] ss:$16 sps:$4 sm:$0xff]  }
 0x6ef   :  { %6403 = vmatprep.subr.bf16.mxu0 %v7939_v28  ;;  %v8006_v28 = vld [vmem:[#allocation18 + $0xb40] ss:$16 sps:$4 sm:$0xff]  }
 0x6f1   :  { %6076 = vmatpush1.bf16.msra.mxu1 %v7934_v14  ;;  %v8009_v14 = vld [vmem:[#allocation18 + $0xb48] ss:$16 sps:$4 sm:$0xff]  }
 0x6f2   :  { %6404 = vmatpush1.bf16.msra.mxu0 %v7937_v47  ;;  %6077 = vmatprep.subr.bf16.mxu1 %v7942_v16  ;;  %v8014_v47 = vld [vmem:[#allocation18 + $0xb64] ss:$16 sps:$4 sm:$0xff]   ;;  %v8017_v16 = vld [vmem:[#allocation18 + $0xb6c] ss:$16 sps:$4 sm:$0xff]  }
 0x6f3   :  { %6405 = vmatprep.subr.bf16.mxu0 %v7945_v19  ;;  %v8023_v19 = vld [vmem:[#allocation18 + $0xb8c] ss:$16 sps:$4 sm:$0xff]  }
 0x6f5   :  { %6078 = vmatpush1.bf16.msra.mxu1 %v7940_v22  ;;  %v8018_v22 = vld [vmem:[#allocation18 + $0xb80] ss:$16 sps:$4 sm:$0xff]  }
 0x6f6   :  { %6406 = vmatpush1.bf16.msra.mxu0 %v7943_v5  ;;  %6088 = vmatprep.subr.bf16.mxu1 %v7948_v2  ;;  %v8021_v5 = vld [vmem:[#allocation18 + $0xb88] ss:$16 sps:$4 sm:$0xff]   ;;  %v8029_v2 = vld [vmem:[#allocation18 + $0xbac] ss:$16 sps:$4 sm:$0xff]  }
 0x6f7   :  { %6416 = vmatprep.subr.bf16.mxu0 %v7951_v1  ;;  %v8024_v1 = vld [vmem:[#allocation18 + $0xba0] ss:$16 sps:$4 sm:$0xff]  }
 0x6f8   :  { %6080 = vmatmul.mubr.bf16.vlgmr.msra.gmra.mrb[16].mxu1 %v7374_v23 }
 0x6f9   :  { %6408 = vmatmul.mubr.bf16.vlgmr.msra.gmra.mrb[20].mxu0 %v7374_v23  ;;  %6089 = vmatpush1.bf16.msra.mxu1 %v7946_v21  ;;  %v8027_v21 = vld [vmem:[#allocation18 + $0xba8] ss:$16 sps:$4 sm:$0xff]   ;;  %v8032_v23 = vld [vmem:[#allocation18 + $0xbc4] ss:$16 sps:$4 sm:$0xff]  }
 0x6fa   :  { %6120 = vmatprep.mubr.bf16.mxu1 %v7377_v9  ;;  %6417 = vmatpush1.bf16.msra.mxu0 %v7949_v3  ;;  %v8035_v3 = vld [vmem:[#allocation18 + $0xbcc] ss:$16 sps:$4 sm:$0xff]  }
 0x6fb   :  { %6448 = vmatprep.mubr.bf16.mxu0 %v7377_v9  ;;  %6090 = vmatprep.subr.bf16.mxu1 %v7954_v24  ;;  %v8030_v24 = vld [vmem:[#allocation18 + $0xbc0] ss:$16 sps:$4 sm:$0xff]   ;;  %v8033_v9 = vld [vmem:[#allocation18 + $0xbc8] ss:$16 sps:$4 sm:$0xff]  }
 0x6fc   :  { %6418 = vmatprep.subr.bf16.mxu0 %v7957_v30  ;;  %v8038_v30 = vld [vmem:[#allocation18 + $0xbe4] ss:$16 sps:$4 sm:$0xff]  }
 0x6fd   :  { %6091 = vmatpush1.bf16.msra.mxu1 %v7952_v4  ;;  %v8041_v4 = vld [vmem:[#allocation18 + $0xbec] ss:$16 sps:$4 sm:$0xff]  }
 0x6fe   :  { %6419 = vmatpush1.bf16.msra.mxu0 %v7955_v35  ;;  %6092 = vmatprep.subr.bf16.mxu1 %v7960_v38  ;;  %v8036_v35 = vld [vmem:[#allocation18 + $0xbe0] ss:$16 sps:$4 sm:$0xff]   ;;  %v8039_v38 = vld [vmem:[#allocation18 + $0xbe8] ss:$16 sps:$4 sm:$0xff]  }
 0x6ff   :  { %6420 = vmatprep.subr.bf16.mxu0 %v7963_v39  ;;  %v8044_v39 = vld [vmem:[#allocation18 + $0xc04] ss:$16 sps:$4 sm:$0xff]  }
 0x701   :  { %6093 = vmatpush1.bf16.msra.mxu1 %v7958_v32  ;;  %v8047_v32 = vld [vmem:[#allocation18 + $0xc0c] ss:$16 sps:$4 sm:$0xff]  }
 0x702   :  { %6421 = vmatpush1.bf16.msra.mxu0 %v7961_v29  ;;  %6094 = vmatprep.subr.bf16.mxu1 %v7966_v62  ;;  %v8042_v29 = vld [vmem:[#allocation18 + $0xc00] ss:$16 sps:$4 sm:$0xff]   ;;  %v7376_v62 = vpack.c.bf16 %v9076_v52, %v9076_v52 }
 0x703   :  { %6422 = vmatprep.subr.bf16.mxu0 %v7969_v25  ;;  %v8045_v25 = vld [vmem:[#allocation18 + $0xc08] ss:$16 sps:$4 sm:$0xff]   ;;  %v8054_v52 = vld [vmem:[#allocation18 + $0xc40] ss:$16 sps:$4 sm:$0xff]  }
 0x705   :  { %6095 = vmatpush1.bf16.msra.mxu1 %v7964_v42  ;;  %v8050_v42 = vld [vmem:[#allocation18 + $0xc24] ss:$16 sps:$4 sm:$0xff]  }
 0x706   :  { %6423 = vmatpush1.bf16.msra.mxu0 %v7967_v26  ;;  %6096 = vmatprep.subr.bf16.mxu1 %v7972_v41  ;;  %v7379_v26 = vpack.c.bf16 %v9078_v17, %v9078_v17  ;;  %v8053_v41 = vld [vmem:[#allocation18 + $0xc2c] ss:$16 sps:$4 sm:$0xff]  }
 0x707   :  { %6424 = vmatprep.subr.bf16.mxu0 %v7975_v0  ;;  %v8048_v0 = vld [vmem:[#allocation18 + $0xc20] ss:$16 sps:$4 sm:$0xff]   ;;  %v8065_v17 = vld [vmem:[#allocation18 + $0xc6c] ss:$16 sps:$4 sm:$0xff]  }
 0x709   :  { %6097 = vmatpush1.bf16.msra.mxu1 %v7970_v37  ;;  %v8051_v37 = vld [vmem:[#allocation18 + $0xc28] ss:$16 sps:$4 sm:$0xff]  }
 0x70a   :  { %6425 = vmatpush1.bf16.msra.mxu0 %v7973_v33  ;;  %6098 = vmatprep.subr.bf16.mxu1 %v7978_v34  ;;  %v8056_v33 = vld [vmem:[#allocation18 + $0xc44] ss:$16 sps:$4 sm:$0xff]   ;;  %v8059_v34 = vld [vmem:[#allocation18 + $0xc4c] ss:$16 sps:$4 sm:$0xff]  }
 0x70b   :  { %6426 = vmatprep.subr.bf16.mxu0 %v7981_v56  ;;  %v8057_v56 = vld [vmem:[#allocation18 + $0xc48] ss:$16 sps:$4 sm:$0xff]  }
 0x70d   :  { %6099 = vmatpush1.bf16.msra.mxu1 %v7976_v43  ;;  %v8062_v43 = vld [vmem:[#allocation18 + $0xc64] ss:$16 sps:$4 sm:$0xff]  }
 0x70e   :  { %6427 = vmatpush1.bf16.msra.mxu0 %v7979_v44  ;;  %6100 = vmatprep.subr.bf16.mxu1 %v7984_v54  ;;  %v8060_v44 = vld [vmem:[#allocation18 + $0xc60] ss:$16 sps:$4 sm:$0xff]   ;;  %v8063_v54 = vld [vmem:[#allocation18 + $0xc68] ss:$16 sps:$4 sm:$0xff]  }
 0x70f   :  { %6428 = vmatprep.subr.bf16.mxu0 %v7987_v31  ;;  %v8068_v31 = vld [vmem:[#allocation18 + $0xc84] ss:$16 sps:$4 sm:$0xff]  }
 0x711   :  { %6101 = vmatpush1.bf16.msra.mxu1 %v7982_v53  ;;  %v8071_v53 = vld [vmem:[#allocation18 + $0xc8c] ss:$16 sps:$4 sm:$0xff]  }
 0x712   :  { %6429 = vmatpush1.bf16.msra.mxu0 %v7985_v55  ;;  %6102 = vmatprep.subr.bf16.mxu1 %v7990_v49  ;;  %v8066_v55 = vld [vmem:[#allocation18 + $0xc80] ss:$16 sps:$4 sm:$0xff]   ;;  %v8069_v49 = vld [vmem:[#allocation18 + $0xc88] ss:$16 sps:$4 sm:$0xff]  }
 0x713   :  { %6430 = vmatprep.subr.bf16.mxu0 %v7993_v48  ;;  %v8074_v48 = vld [vmem:[#allocation18 + $0xca4] ss:$16 sps:$4 sm:$0xff]  }
 0x715   :  { %6103 = vmatpush1.bf16.msra.mxu1 %v7988_v61  ;;  %v8077_v61 = vld [vmem:[#allocation18 + $0xcac] ss:$16 sps:$4 sm:$0xff]  }
 0x716   :  { %6431 = vmatpush1.bf16.msra.mxu0 %v7991_v57  ;;  %6104 = vmatprep.subr.bf16.mxu1 %v7996_v20  ;;  %v8072_v57 = vld [vmem:[#allocation18 + $0xca0] ss:$16 sps:$4 sm:$0xff]   ;;  %v8075_v20 = vld [vmem:[#allocation18 + $0xca8] ss:$16 sps:$4 sm:$0xff]  }
 0x717   :  { %6432 = vmatprep.subr.bf16.mxu0 %v7999_v59  ;;  %v8080_v59 = vld [vmem:[#allocation18 + $0xcc4] ss:$16 sps:$4 sm:$0xff]  }
 0x719   :  { %6105 = vmatpush1.bf16.msra.mxu1 %v7994_v15  ;;  %v8083_v15 = vld [vmem:[#allocation18 + $0xccc] ss:$16 sps:$4 sm:$0xff]  }
 0x71a   :  { %6433 = vmatpush1.bf16.msra.mxu0 %v7997_v40  ;;  %6106 = vmatprep.subr.bf16.mxu1 %v8002_v63  ;;  %v8078_v40 = vld [vmem:[#allocation18 + $0xcc0] ss:$16 sps:$4 sm:$0xff]   ;;  %v8081_v63 = vld [vmem:[#allocation18 + $0xcc8] ss:$16 sps:$4 sm:$0xff]  }
 0x71b   :  { %6434 = vmatprep.subr.bf16.mxu0 %v8005_v6  ;;  %v8086_v6 = vld [vmem:[#allocation18 + $0xce4] ss:$16 sps:$4 sm:$0xff]  }
 0x71d   :  { %6107 = vmatpush1.bf16.msra.mxu1 %v8000_v50  ;;  %v8089_v50 = vld [vmem:[#allocation18 + $0xcec] ss:$16 sps:$4 sm:$0xff]  }
 0x71e   :  { %6435 = vmatpush1.bf16.msra.mxu0 %v8003_v27  ;;  %6108 = vmatprep.subr.bf16.mxu1 %v8008_v8  ;;  %v8084_v27 = vld [vmem:[#allocation18 + $0xce0] ss:$16 sps:$4 sm:$0xff]   ;;  %v8087_v8 = vld [vmem:[#allocation18 + $0xce8] ss:$16 sps:$4 sm:$0xff]  }
 0x71f   :  { %6436 = vmatprep.subr.bf16.mxu0 %v8011_v7  ;;  %v8092_v7 = vld [vmem:[#allocation18 + $0xd04] ss:$16 sps:$4 sm:$0xff]  }
 0x721   :  { %6109 = vmatpush1.bf16.msra.mxu1 %v8006_v28  ;;  %v8095_v28 = vld [vmem:[#allocation18 + $0xd0c] ss:$16 sps:$4 sm:$0xff]  }
 0x722   :  { %6437 = vmatpush1.bf16.msra.mxu0 %v8009_v14  ;;  %6110 = vmatprep.subr.bf16.mxu1 %v8014_v47  ;;  %v8090_v14 = vld [vmem:[#allocation18 + $0xd00] ss:$16 sps:$4 sm:$0xff]   ;;  %v8093_v47 = vld [vmem:[#allocation18 + $0xd08] ss:$16 sps:$4 sm:$0xff]  }
 0x723   :  { %6438 = vmatprep.subr.bf16.mxu0 %v8017_v16  ;;  %v8098_v16 = vld [vmem:[#allocation18 + $0xd24] ss:$16 sps:$4 sm:$0xff]  }
 0x725   :  { %6111 = vmatpush1.bf16.msra.mxu1 %v8012_v60  ;;  %v8101_v60 = vld [vmem:[#allocation18 + $0xd2c] ss:$16 sps:$4 sm:$0xff]  }
 0x726   :  { %6439 = vmatpush1.bf16.msra.mxu0 %v8015_v18  ;;  %6112 = vmatprep.subr.bf16.mxu1 %v8020_v11  ;;  %v8096_v18 = vld [vmem:[#allocation18 + $0xd20] ss:$16 sps:$4 sm:$0xff]   ;;  %v8099_v11 = vld [vmem:[#allocation18 + $0xd28] ss:$16 sps:$4 sm:$0xff]  }
 0x727   :  { %6440 = vmatprep.subr.bf16.mxu0 %v8023_v19  ;;  %v8104_v19 = vld [vmem:[#allocation18 + $0xd44] ss:$16 sps:$4 sm:$0xff]  }
 0x729   :  { %6113 = vmatpush1.bf16.msra.mxu1 %v8018_v22  ;;  %v8107_v22 = vld [vmem:[#allocation18 + $0xd4c] ss:$16 sps:$4 sm:$0xff]  }
 0x72a   :  { %6441 = vmatpush1.bf16.msra.mxu0 %v8021_v5  ;;  %6114 = vmatprep.subr.bf16.mxu1 %v8026_v36  ;;  %v8102_v5 = vld [vmem:[#allocation18 + $0xd40] ss:$16 sps:$4 sm:$0xff]   ;;  %v8105_v36 = vld [vmem:[#allocation18 + $0xd48] ss:$16 sps:$4 sm:$0xff]  }
 0x72b   :  { %6442 = vmatprep.subr.bf16.mxu0 %v8029_v2  ;;  %v8110_v2 = vld [vmem:[#allocation18 + $0xd64] ss:$16 sps:$4 sm:$0xff]  }
 0x72d   :  { %6115 = vmatpush1.bf16.msra.mxu1 %v8024_v1  ;;  %v8113_v1 = vld [vmem:[#allocation18 + $0xd6c] ss:$16 sps:$4 sm:$0xff]  }
 0x72e   :  { %6443 = vmatpush1.bf16.msra.mxu0 %v8027_v21  ;;  %6116 = vmatprep.subr.bf16.mxu1 %v8032_v23  ;;  %v8108_v21 = vld [vmem:[#allocation18 + $0xd60] ss:$16 sps:$4 sm:$0xff]   ;;  %v8111_v23 = vld [vmem:[#allocation18 + $0xd68] ss:$16 sps:$4 sm:$0xff]  }
 0x72f   :  { %6444 = vmatprep.subr.bf16.mxu0 %v8035_v3  ;;  %v8116_v3 = vld [vmem:[#allocation18 + $0xd84] ss:$16 sps:$4 sm:$0xff]  }
 0x731   :  { %6117 = vmatpush1.bf16.msra.mxu1 %v8030_v24  ;;  %v8119_v24 = vld [vmem:[#allocation18 + $0xd8c] ss:$16 sps:$4 sm:$0xff]  }
 0x732   :  { %6445 = vmatpush1.bf16.msra.mxu0 %v8033_v9  ;;  %6118 = vmatprep.subr.bf16.mxu1 %v8038_v30  ;;  %v8114_v9 = vld [vmem:[#allocation18 + $0xd80] ss:$16 sps:$4 sm:$0xff]   ;;  %v8117_v30 = vld [vmem:[#allocation18 + $0xd88] ss:$16 sps:$4 sm:$0xff]  }
 0x733   :  { %6446 = vmatprep.subr.bf16.mxu0 %v8041_v4  ;;  %v8122_v4 = vld [vmem:[#allocation18 + $0xda4] ss:$16 sps:$4 sm:$0xff]  }
 0x735   :  { %6119 = vmatpush1.bf16.msra.mxu1 %v8036_v35  ;;  %v8125_v35 = vld [vmem:[#allocation18 + $0xdac] ss:$16 sps:$4 sm:$0xff]  }
 0x736   :  { %6447 = vmatpush1.bf16.msra.mxu0 %v8039_v38  ;;  %6129 = vmatprep.subr.bf16.mxu1 %v8044_v39  ;;  %v8120_v38 = vld [vmem:[#allocation18 + $0xda0] ss:$16 sps:$4 sm:$0xff]   ;;  %v8123_v39 = vld [vmem:[#allocation18 + $0xda8] ss:$16 sps:$4 sm:$0xff]  }
 0x737   :  { %6457 = vmatprep.subr.bf16.mxu0 %v8047_v32  ;;  %v8128_v32 = vld [vmem:[#allocation18 + $0xdc4] ss:$16 sps:$4 sm:$0xff]  }
 0x738   :  { %6121 = vmatmul.mubr.bf16.vlgmr.msra.gmra.mrb[16].mxu1 %v7376_v62 }
 0x739   :  { %6449 = vmatmul.mubr.bf16.vlgmr.msra.gmra.mrb[20].mxu0 %v7376_v62  ;;  %6130 = vmatpush1.bf16.msra.mxu1 %v8042_v29  ;;  %v8131_v29 = vld [vmem:[#allocation18 + $0xdcc] ss:$16 sps:$4 sm:$0xff]   ;;  %v8126_v62 = vld [vmem:[#allocation18 + $0xdc0] ss:$16 sps:$4 sm:$0xff]  }
 0x73a   :  { %6161 = vmatprep.mubr.bf16.mxu1 %v7379_v26  ;;  %6458 = vmatpush1.bf16.msra.mxu0 %v8045_v25  ;;  %v8129_v25 = vld [vmem:[#allocation18 + $0xdc8] ss:$16 sps:$4 sm:$0xff]  }
 0x73b   :  { %6489 = vmatprep.mubr.bf16.mxu0 %v7379_v26  ;;  %6131 = vmatprep.subr.bf16.mxu1 %v8050_v42  ;;  %v8134_v42 = vld [vmem:[#allocation18 + $0xde4] ss:$16 sps:$4 sm:$0xff]   ;;  %v8137_v26 = vld [vmem:[#allocation18 + $0xdec] ss:$16 sps:$4 sm:$0xff]  }
 0x73c   :  { %6459 = vmatprep.subr.bf16.mxu0 %v8053_v41  ;;  %v8132_v41 = vld [vmem:[#allocation18 + $0xde0] ss:$16 sps:$4 sm:$0xff]  }
 0x73d   :  { %6132 = vmatpush1.bf16.msra.mxu1 %v8048_v0  ;;  %v8135_v0 = vld [vmem:[#allocation18 + $0xde8] ss:$16 sps:$4 sm:$0xff]  }
 0x73e   :  { %6460 = vmatpush1.bf16.msra.mxu0 %v8051_v37  ;;  %6133 = vmatprep.subr.bf16.mxu1 %v8056_v33  ;;  %v8140_v37 = vld [vmem:[#allocation18 + $0xe04] ss:$16 sps:$4 sm:$0xff]   ;;  %v8143_v33 = vld [vmem:[#allocation18 + $0xe0c] ss:$16 sps:$4 sm:$0xff]  }
 0x73f   :  { %6461 = vmatprep.subr.bf16.mxu0 %v8059_v34  ;;  %v8138_v34 = vld [vmem:[#allocation18 + $0xe00] ss:$16 sps:$4 sm:$0xff]  }
 0x741   :  { %6134 = vmatpush1.bf16.msra.mxu1 %v8054_v52  ;;  %v7378_v52 = vpack.c.bf16 %v9080_v46, %v9080_v46  ;;  %v8150_v46 = vld [vmem:[#allocation18 + $0xe40] ss:$16 sps:$4 sm:$0xff]  }
 0x742   :  { %6462 = vmatpush1.bf16.msra.mxu0 %v8057_v56  ;;  %6135 = vmatprep.subr.bf16.mxu1 %v8062_v43  ;;  %v8141_v56 = vld [vmem:[#allocation18 + $0xe08] ss:$16 sps:$4 sm:$0xff]   ;;  %v8146_v43 = vld [vmem:[#allocation18 + $0xe24] ss:$16 sps:$4 sm:$0xff]  }
 0x743   :  { %6463 = vmatprep.subr.bf16.mxu0 %v8065_v17  ;;  %v7381_v17 = vpack.c.bf16 %v9092_v45, %v9092_v45  ;;  %v8161_v45 = vld [vmem:[#allocation18 + $0xe6c] ss:$16 sps:$4 sm:$0xff]  }
 0x745   :  { %6136 = vmatpush1.bf16.msra.mxu1 %v8060_v44  ;;  %v8149_v44 = vld [vmem:[#allocation18 + $0xe2c] ss:$16 sps:$4 sm:$0xff]  }
 0x746   :  { %6464 = vmatpush1.bf16.msra.mxu0 %v8063_v54  ;;  %6137 = vmatprep.subr.bf16.mxu1 %v8068_v31  ;;  %v8144_v54 = vld [vmem:[#allocation18 + $0xe20] ss:$16 sps:$4 sm:$0xff]   ;;  %v8147_v31 = vld [vmem:[#allocation18 + $0xe28] ss:$16 sps:$4 sm:$0xff]  }
 0x747   :  { %6465 = vmatprep.subr.bf16.mxu0 %v8071_v53  ;;  %v8152_v53 = vld [vmem:[#allocation18 + $0xe44] ss:$16 sps:$4 sm:$0xff]  }
 0x749   :  { %6138 = vmatpush1.bf16.msra.mxu1 %v8066_v55  ;;  %v8155_v55 = vld [vmem:[#allocation18 + $0xe4c] ss:$16 sps:$4 sm:$0xff]  }
 0x74a   :  { %6466 = vmatpush1.bf16.msra.mxu0 %v8069_v49  ;;  %6139 = vmatprep.subr.bf16.mxu1 %v8074_v48  ;;  %v8153_v49 = vld [vmem:[#allocation18 + $0xe48] ss:$16 sps:$4 sm:$0xff]   ;;  %v8158_v48 = vld [vmem:[#allocation18 + $0xe64] ss:$16 sps:$4 sm:$0xff]  }
 0x74b   :  { %6467 = vmatprep.subr.bf16.mxu0 %v8077_v61  ;;  %v8156_v61 = vld [vmem:[#allocation18 + $0xe60] ss:$16 sps:$4 sm:$0xff]  }
 0x74d   :  { %6140 = vmatpush1.bf16.msra.mxu1 %v8072_v57  ;;  %v8159_v57 = vld [vmem:[#allocation18 + $0xe68] ss:$16 sps:$4 sm:$0xff]  }
 0x74e   :  { %6468 = vmatpush1.bf16.msra.mxu0 %v8075_v20  ;;  %6141 = vmatprep.subr.bf16.mxu1 %v8080_v59  ;;  %v8164_v20 = vld [vmem:[#allocation18 + $0xe84] ss:$16 sps:$4 sm:$0xff]   ;;  %v8167_v59 = vld [vmem:[#allocation18 + $0xe8c] ss:$16 sps:$4 sm:$0xff]  }
 0x74f   :  { %6469 = vmatprep.subr.bf16.mxu0 %v8083_v15  ;;  %v8162_v15 = vld [vmem:[#allocation18 + $0xe80] ss:$16 sps:$4 sm:$0xff]  }
 0x751   :  { %6142 = vmatpush1.bf16.msra.mxu1 %v8078_v40  ;;  %v8165_v40 = vld [vmem:[#allocation18 + $0xe88] ss:$16 sps:$4 sm:$0xff]  }
 0x752   :  { %6470 = vmatpush1.bf16.msra.mxu0 %v8081_v63  ;;  %6143 = vmatprep.subr.bf16.mxu1 %v8086_v6  ;;  %v8170_v63 = vld [vmem:[#allocation18 + $0xea4] ss:$16 sps:$4 sm:$0xff]   ;;  %v8173_v6 = vld [vmem:[#allocation18 + $0xeac] ss:$16 sps:$4 sm:$0xff]  }
 0x753   :  { %6471 = vmatprep.subr.bf16.mxu0 %v8089_v50  ;;  %v8168_v50 = vld [vmem:[#allocation18 + $0xea0] ss:$16 sps:$4 sm:$0xff]  }
 0x755   :  { %6144 = vmatpush1.bf16.msra.mxu1 %v8084_v27  ;;  %v8171_v27 = vld [vmem:[#allocation18 + $0xea8] ss:$16 sps:$4 sm:$0xff]  }
 0x756   :  { %6472 = vmatpush1.bf16.msra.mxu0 %v8087_v8  ;;  %6145 = vmatprep.subr.bf16.mxu1 %v8092_v7  ;;  %v8176_v8 = vld [vmem:[#allocation18 + $0xec4] ss:$16 sps:$4 sm:$0xff]   ;;  %v8179_v7 = vld [vmem:[#allocation18 + $0xecc] ss:$16 sps:$4 sm:$0xff]  }
 0x757   :  { %6473 = vmatprep.subr.bf16.mxu0 %v8095_v28  ;;  %v8174_v28 = vld [vmem:[#allocation18 + $0xec0] ss:$16 sps:$4 sm:$0xff]  }
 0x759   :  { %6146 = vmatpush1.bf16.msra.mxu1 %v8090_v14  ;;  %v8177_v14 = vld [vmem:[#allocation18 + $0xec8] ss:$16 sps:$4 sm:$0xff]  }
 0x75a   :  { %6474 = vmatpush1.bf16.msra.mxu0 %v8093_v47  ;;  %6147 = vmatprep.subr.bf16.mxu1 %v8098_v16  ;;  %v8182_v47 = vld [vmem:[#allocation18 + $0xee4] ss:$16 sps:$4 sm:$0xff]   ;;  %v8185_v16 = vld [vmem:[#allocation18 + $0xeec] ss:$16 sps:$4 sm:$0xff]  }
 0x75b   :  { %6475 = vmatprep.subr.bf16.mxu0 %v8101_v60  ;;  %v8180_v60 = vld [vmem:[#allocation18 + $0xee0] ss:$16 sps:$4 sm:$0xff]  }
 0x75d   :  { %6148 = vmatpush1.bf16.msra.mxu1 %v8096_v18  ;;  %v8183_v18 = vld [vmem:[#allocation18 + $0xee8] ss:$16 sps:$4 sm:$0xff]  }
 0x75e   :  { %6476 = vmatpush1.bf16.msra.mxu0 %v8099_v11  ;;  %6149 = vmatprep.subr.bf16.mxu1 %v8104_v19  ;;  %v8188_v11 = vld [vmem:[#allocation18 + $0xf04] ss:$16 sps:$4 sm:$0xff]   ;;  %v8191_v19 = vld [vmem:[#allocation18 + $0xf0c] ss:$16 sps:$4 sm:$0xff]  }
 0x75f   :  { %6477 = vmatprep.subr.bf16.mxu0 %v8107_v22  ;;  %v8186_v22 = vld [vmem:[#allocation18 + $0xf00] ss:$16 sps:$4 sm:$0xff]  }
 0x761   :  { %6150 = vmatpush1.bf16.msra.mxu1 %v8102_v5  ;;  %v8189_v5 = vld [vmem:[#allocation18 + $0xf08] ss:$16 sps:$4 sm:$0xff]  }
 0x762   :  { %6478 = vmatpush1.bf16.msra.mxu0 %v8105_v36  ;;  %6151 = vmatprep.subr.bf16.mxu1 %v8110_v2  ;;  %v8194_v36 = vld [vmem:[#allocation18 + $0xf24] ss:$16 sps:$4 sm:$0xff]   ;;  %v8197_v2 = vld [vmem:[#allocation18 + $0xf2c] ss:$16 sps:$4 sm:$0xff]  }
 0x763   :  { %6479 = vmatprep.subr.bf16.mxu0 %v8113_v1  ;;  %v8192_v1 = vld [vmem:[#allocation18 + $0xf20] ss:$16 sps:$4 sm:$0xff]  }
 0x765   :  { %6152 = vmatpush1.bf16.msra.mxu1 %v8108_v21  ;;  %v8195_v21 = vld [vmem:[#allocation18 + $0xf28] ss:$16 sps:$4 sm:$0xff]  }
 0x766   :  { %6480 = vmatpush1.bf16.msra.mxu0 %v8111_v23  ;;  %6153 = vmatprep.subr.bf16.mxu1 %v8116_v3  ;;  %v8200_v23 = vld [vmem:[#allocation18 + $0xf44] ss:$16 sps:$4 sm:$0xff]   ;;  %v8203_v3 = vld [vmem:[#allocation18 + $0xf4c] ss:$16 sps:$4 sm:$0xff]  }
 0x767   :  { %6481 = vmatprep.subr.bf16.mxu0 %v8119_v24  ;;  %v8198_v24 = vld [vmem:[#allocation18 + $0xf40] ss:$16 sps:$4 sm:$0xff]  }
 0x769   :  { %6154 = vmatpush1.bf16.msra.mxu1 %v8114_v9  ;;  %v8201_v9 = vld [vmem:[#allocation18 + $0xf48] ss:$16 sps:$4 sm:$0xff]  }
 0x76a   :  { %6482 = vmatpush1.bf16.msra.mxu0 %v8117_v30  ;;  %6155 = vmatprep.subr.bf16.mxu1 %v8122_v4  ;;  %v8206_v30 = vld [vmem:[#allocation18 + $0xf64] ss:$16 sps:$4 sm:$0xff]   ;;  %v8209_v4 = vld [vmem:[#allocation18 + $0xf6c] ss:$16 sps:$4 sm:$0xff]  }
 0x76b   :  { %6483 = vmatprep.subr.bf16.mxu0 %v8125_v35  ;;  %v8204_v35 = vld [vmem:[#allocation18 + $0xf60] ss:$16 sps:$4 sm:$0xff]  }
 0x76d   :  { %6156 = vmatpush1.bf16.msra.mxu1 %v8120_v38  ;;  %v8207_v38 = vld [vmem:[#allocation18 + $0xf68] ss:$16 sps:$4 sm:$0xff]  }
 0x76e   :  { %6484 = vmatpush1.bf16.msra.mxu0 %v8123_v39  ;;  %6157 = vmatprep.subr.bf16.mxu1 %v8128_v32  ;;  %v8212_v39 = vld [vmem:[#allocation18 + $0xf84] ss:$16 sps:$4 sm:$0xff]   ;;  %v8215_v32 = vld [vmem:[#allocation18 + $0xf8c] ss:$16 sps:$4 sm:$0xff]  }
 0x76f   :  { %6485 = vmatprep.subr.bf16.mxu0 %v8131_v29  ;;  %v8210_v29 = vld [vmem:[#allocation18 + $0xf80] ss:$16 sps:$4 sm:$0xff]  }
 0x771   :  { %6158 = vmatpush1.bf16.msra.mxu1 %v8126_v62  ;;  %v8213_v62 = vld [vmem:[#allocation18 + $0xf88] ss:$16 sps:$4 sm:$0xff]  }
 0x772   :  { %6486 = vmatpush1.bf16.msra.mxu0 %v8129_v25  ;;  %6159 = vmatprep.subr.bf16.mxu1 %v8134_v42  ;;  %v8218_v25 = vld [vmem:[#allocation18 + $0xfa4] ss:$16 sps:$4 sm:$0xff]   ;;  %v8221_v42 = vld [vmem:[#allocation18 + $0xfac] ss:$16 sps:$4 sm:$0xff]  }
 0x773   :  { %6487 = vmatprep.subr.bf16.mxu0 %v8137_v26  ;;  %v8216_v26 = vld [vmem:[#allocation18 + $0xfa0] ss:$16 sps:$4 sm:$0xff]  }
 0x775   :  { %6160 = vmatpush1.bf16.msra.mxu1 %v8132_v41  ;;  %v8219_v41 = vld [vmem:[#allocation18 + $0xfa8] ss:$16 sps:$4 sm:$0xff]  }
 0x776   :  { %6488 = vmatpush1.bf16.msra.mxu0 %v8135_v0  ;;  %6170 = vmatprep.subr.bf16.mxu1 %v8140_v37  ;;  %v8224_v0 = vld [vmem:[#allocation18 + $0xfc4] ss:$16 sps:$4 sm:$0xff]   ;;  %v8227_v37 = vld [vmem:[#allocation18 + $0xfcc] ss:$16 sps:$4 sm:$0xff]  }
 0x777   :  { %6498 = vmatprep.subr.bf16.mxu0 %v8143_v33  ;;  %v8222_v33 = vld [vmem:[#allocation18 + $0xfc0] ss:$16 sps:$4 sm:$0xff]  }
 0x778   :  { %6162 = vmatmul.mubr.bf16.vlgmr.msra.gmra.mrb[16].mxu1 %v7378_v52 }
 0x779   :  { %6490 = vmatmul.mubr.bf16.vlgmr.msra.gmra.mrb[20].mxu0 %v7378_v52  ;;  %6171 = vmatpush1.bf16.msra.mxu1 %v8138_v34  ;;  %v8225_v34 = vld [vmem:[#allocation18 + $0xfc8] ss:$16 sps:$4 sm:$0xff]   ;;  %v8230_v52 = vld [vmem:[#allocation18 + $0xfe4] ss:$16 sps:$4 sm:$0xff]  }
 0x77a   :  { %6202 = vmatprep.mubr.bf16.mxu1 %v7381_v17  ;;  %6499 = vmatpush1.bf16.msra.mxu0 %v8141_v56  ;;  %v8233_v56 = vld [vmem:[#allocation18 + $0xfec] ss:$16 sps:$4 sm:$0xff]  }
 0x77b   :  { %6530 = vmatprep.mubr.bf16.mxu0 %v7381_v17  ;;  %6172 = vmatprep.subr.bf16.mxu1 %v8146_v43  ;;  %v8228_v43 = vld [vmem:[#allocation18 + $0xfe0] ss:$16 sps:$4 sm:$0xff]   ;;  %v8231_v17 = vld [vmem:[#allocation18 + $0xfe8] ss:$16 sps:$4 sm:$0xff]  }
 0x77c   :  { %6500 = vmatprep.subr.bf16.mxu0 %v8149_v44  ;;  %v7380_v44 = vpack.c.bf16 %v9094_v51, %v9094_v51 }
 0x77d   :  { %6173 = vmatpush1.bf16.msra.mxu1 %v8144_v54  ;;  %v3245_v54 = vld [vmem:[#allocation20] sm:$0xf] }
 0x77e   :  { %6501 = vmatpush1.bf16.msra.mxu0 %v8147_v31  ;;  %6174 = vmatprep.subr.bf16.mxu1 %v8152_v53  ;;  %v3250_v31 = vrot.slane %v3245_v54, %v8773_v10  ;;  %v3258_v53 = vrot.slane %v3245_v54, %v8829_v13 }
 0x77f   :  { %6502 = vmatprep.subr.bf16.mxu0 %v8155_v55  ;;  %v3254_v55 = vrot.slane %v3245_v54, %v8776_v12 }
 0x781   :  { %6175 = vmatpush1.bf16.msra.mxu1 %v8150_v46  ;;  %v3262_v46 = vrot.slane %v3245_v54, %v8832_v58 }
 0x782   :  { %6503 = vmatpush1.bf16.msra.mxu0 %v8153_v49  ;;  %6176 = vmatprep.subr.bf16.mxu1 %v8158_v48 }
 0x783   :  { %6504 = vmatprep.subr.bf16.mxu0 %v8161_v45 }
 0x785   :  { %6177 = vmatpush1.bf16.msra.mxu1 %v8156_v61 }
 0x786   :  { %6505 = vmatpush1.bf16.msra.mxu0 %v8159_v57  ;;  %6178 = vmatprep.subr.bf16.mxu1 %v8164_v20 }
 0x787   :  { %6506 = vmatprep.subr.bf16.mxu0 %v8167_v59 }
 0x789   :  { %6179 = vmatpush1.bf16.msra.mxu1 %v8162_v15 }
 0x78a   :  { %6507 = vmatpush1.bf16.msra.mxu0 %v8165_v40  ;;  %6180 = vmatprep.subr.bf16.mxu1 %v8170_v63 }
 0x78b   :  { %6508 = vmatprep.subr.bf16.mxu0 %v8173_v6 }
 0x78d   :  { %6181 = vmatpush1.bf16.msra.mxu1 %v8168_v50 }
 0x78e   :  { %6509 = vmatpush1.bf16.msra.mxu0 %v8171_v27  ;;  %6182 = vmatprep.subr.bf16.mxu1 %v8176_v8 }
 0x78f   :  { %6510 = vmatprep.subr.bf16.mxu0 %v8179_v7 }
 0x791   :  { %6183 = vmatpush1.bf16.msra.mxu1 %v8174_v28 }
 0x792   :  { %6511 = vmatpush1.bf16.msra.mxu0 %v8177_v14  ;;  %6184 = vmatprep.subr.bf16.mxu1 %v8182_v47 }
 0x793   :  { %6512 = vmatprep.subr.bf16.mxu0 %v8185_v16 }
 0x795   :  { %6185 = vmatpush1.bf16.msra.mxu1 %v8180_v60 }
 0x796   :  { %6513 = vmatpush1.bf16.msra.mxu0 %v8183_v18  ;;  %6186 = vmatprep.subr.bf16.mxu1 %v8188_v11 }
 0x797   :  { %6514 = vmatprep.subr.bf16.mxu0 %v8191_v19 }
 0x799   :  { %6187 = vmatpush1.bf16.msra.mxu1 %v8186_v22 }
 0x79a   :  { %6515 = vmatpush1.bf16.msra.mxu0 %v8189_v5  ;;  %6188 = vmatprep.subr.bf16.mxu1 %v8194_v36 }
 0x79b   :  { %6516 = vmatprep.subr.bf16.mxu0 %v8197_v2 }
 0x79d   :  { %6189 = vmatpush1.bf16.msra.mxu1 %v8192_v1 }
 0x79e   :  { %6517 = vmatpush1.bf16.msra.mxu0 %v8195_v21  ;;  %6190 = vmatprep.subr.bf16.mxu1 %v8200_v23 }
 0x79f   :  { %6518 = vmatprep.subr.bf16.mxu0 %v8203_v3 }
 0x7a1   :  { %6191 = vmatpush1.bf16.msra.mxu1 %v8198_v24 }
 0x7a2   :  { %6519 = vmatpush1.bf16.msra.mxu0 %v8201_v9  ;;  %6192 = vmatprep.subr.bf16.mxu1 %v8206_v30 }
 0x7a3   :  { %6520 = vmatprep.subr.bf16.mxu0 %v8209_v4 }
 0x7a5   :  { %6193 = vmatpush1.bf16.msra.mxu1 %v8204_v35 }
 0x7a6   :  { %6521 = vmatpush1.bf16.msra.mxu0 %v8207_v38  ;;  %6194 = vmatprep.subr.bf16.mxu1 %v8212_v39 }
 0x7a7   :  { %6522 = vmatprep.subr.bf16.mxu0 %v8215_v32 }
 0x7a9   :  { %6195 = vmatpush1.bf16.msra.mxu1 %v8210_v29 }
 0x7aa   :  { %6523 = vmatpush1.bf16.msra.mxu0 %v8213_v62  ;;  %6196 = vmatprep.subr.bf16.mxu1 %v8218_v25 }
 0x7ab   :  { %6524 = vmatprep.subr.bf16.mxu0 %v8221_v42 }
 0x7ad   :  { %6197 = vmatpush1.bf16.msra.mxu1 %v8216_v26 }
 0x7ae   :  { %6525 = vmatpush1.bf16.msra.mxu0 %v8219_v41  ;;  %6198 = vmatprep.subr.bf16.mxu1 %v8224_v0 }
 0x7af   :  { %6526 = vmatprep.subr.bf16.mxu0 %v8227_v37 }
 0x7b1   :  { %6199 = vmatpush1.bf16.msra.mxu1 %v8222_v33 }
 0x7b2   :  { %6527 = vmatpush1.bf16.msra.mxu0 %v8225_v34  ;;  %6200 = vmatprep.subr.bf16.mxu1 %v8230_v52 }
 0x7b3   :  { %6528 = vmatprep.subr.bf16.mxu0 %v8233_v56 }
 0x7b5   :  { %6201 = vmatpush1.bf16.msra.mxu1 %v8228_v43 }
 0x7b6   :  { %6529 = vmatpush1.bf16.msra.mxu0 %v8231_v17 }
 0x7b8   :  { %6203 = vmatmul.mubr.bf16.vlgmr.msra.gmra.mrb[16].mxu1 %v7380_v44 }
 0x7b9   :  { %6531 = vmatmul.mubr.bf16.vlgmr.msra.gmra.mrb[20].mxu0 %v7380_v44 }
 0x88b   :  { %v6204_v49 = vpop.f32.mrb[16].mxu1 }
 0x88c   :  { %v7388_v48 = vadd.f32 %v6204_v49, %v3250_v31  ;;  %v6532_v45 = vpop.f32.mrb[20].mxu0  ;;  %v6206_v61 = vpop.f32.mrb[17].mxu1 }
 0x88d   :  { %v7390_v57 = vadd.f32 %v6532_v45, %v3258_v53  ;;  %v7389_v20 = vadd.f32 %v6206_v61, %v3254_v55  ;;  %v6534_v51 = vpop.f32.mrb[21].mxu0  ;;  %v6208_v59 = vpop.f32.mrb[18].mxu1 }
 0x88e   :  { %6539 = vst [vmem:[#allocation21] sm:$0xff] %v7388_v48  ;;  %v7391_v15 = vadd.f32 %v6534_v51, %v3262_v46  ;;  %v6536_v40 = vpop.f32.mrb[22].mxu0  ;;  %v6209_v10 = vpop.f32.mrb[19].mxu1 }
 0x88f   :  { %6541 = vst [vmem:[#allocation21 + $0x10] sm:$0xff] %v7390_v57  ;;  %6540 = vst [vmem:[#allocation21 + $0x8] sm:$0xff] %v7389_v20  ;;  %v6537_v12 = vpop.f32.mrb[23].mxu0 }
 0x890   :  { %6542 = vst [vmem:[#allocation21 + $0x18] sm:$0xff] %v7391_v15 }
 0x891   :  { %8529 = shalt.err (!%p8526_p8)
}
 0x892   :  { %s8530_s21 = scalar_lea.hbm %s9155_s11, 512 }
 0x893   :  { %p8531_p9 = scmp.ne.s32.totalorder %s9155_s11, %s8530_s21  ;;  %p8534_p10 = scmp.lt.u32.totalorder %s8530_s21, %s9155_s11 }
 0x895   :  { %p8536_p11 = pnand %p8534_p10, %p8531_p9 }
 0x897   :  { %8539 = shalt.err (!%p8536_p11)
}
 0x898   :  { %6552 = dma.vmem_to_hbm [thread:$0]  %s6550_s13, 512, %s9155_s11, [#allocation5]  }
 0x899   :  { %8552 = dma.done.wait [#allocation5], 512  }
 0x89a   :  { %8553 = vsyncadd [#allocation5], 4294966784 }
 0x89b   :  { %6556 = vsyncpa [#allocation4], 1 }
 0x89c   :  { %6557 = vsyncpa [#allocation7], 1 }
 0x89d   :  { %6558 = vsyncpa [#allocation10], 1 }
 0x89e   :  { %6559 = vsyncpa [#allocation13], 1 }
 0x89f   :  { %6560 = vsyncpa [#allocation16], 1 }
 0x8a0   :  { %6561 = vsyncpa [#allocation19], 1 }
 0x8a1   :  { %6562 = vsyncpa [#allocation5], 1 }

</bundles_post_ra>
